<compile_context>
chip_gen: v6e
topology: v6e:2x2x1
jax: 0.10.0
libtpu: 0.0.40
codegen_flags: <defaults>
</compile_context>

<pallas_src>
import functools

import jax
import jax.numpy as jnp
from jax.experimental import pallas as pl
from jax.experimental.pallas import tpu as pltpu


# ------------------------------ fused kernel ------------------------------- #

def _down_kernel(x_ref, w1_ref, w2_ref, g1_ref, b1_ref, g2_ref, b2_ref,
                 o_ref,
                 raw_ref, pad1_ref, pad2_ref,
                 s1_ref, q1_ref, s2_ref, q2_ref,
                 *, n_batch, nb, hp, wp, cin, cout, eps):
    p = pl.program_id(0)      # phase: 0 pool+conv1, 1 bn1+relu+conv2, 2 bn2+relu+store
    n = pl.program_id(1)      # batch block
    hw = hp * wp
    rows = nb * hw
    inv_cnt = 1.0 / float(n_batch * hw)

    def conv3x3(z, pad_ref, w_ref, c):
        # z: (nb, hp, wp, c) f32 -> (nb*hp*wp, cout) f32 via ONE im2col matmul.
        # Only the interior of the padded scratch is (re)written; the halo was
        # zeroed once at kernel start and is never touched again.
        pad_ref[:, 1:hp + 1, 1:wp + 1, :] = z
        taps = [pad_ref[:, dy:dy + hp, dx:dx + wp, :]
                for dy in range(3) for dx in range(3)]
        patches = jnp.concatenate(taps, axis=-1).reshape(rows, 9 * c)
        # TODO(synk): cast patches/weights to bf16 (f32 accumulate) on v6e/v7x
        # once the accuracy budget allows it (~2x MXU throughput).
        # TODO(synk): if a bundle dump shows the 9-tap concatenate's XLU
        # relayouts binding (likely at tiny Cin/Cout), build the patch slab via
        # strided stores into a dedicated patch scratch instead.
        return jnp.dot(patches, w_ref[...], preferred_element_type=jnp.float32)

    def bn_stats(sum_ref, sq_ref):
        # TODO(synk): single-pass E[x^2]-E[x]^2 can cancel for very large
        # N*H*W or badly scaled activations; switch to shifted/Welford sums then.
        mean = sum_ref[...] * inv_cnt                       # (1, cout)
        var = sq_ref[...] * inv_cnt - mean * mean           # biased variance
        return mean, jax.lax.rsqrt(var + eps)

    @pl.when((p == 0) & (n == 0))
    def _init():
        s1_ref[...] = jnp.zeros_like(s1_ref)
        q1_ref[...] = jnp.zeros_like(q1_ref)
        s2_ref[...] = jnp.zeros_like(s2_ref)
        q2_ref[...] = jnp.zeros_like(q2_ref)
        pad1_ref[...] = jnp.zeros_like(pad1_ref)   # halo stays zero forever
        pad2_ref[...] = jnp.zeros_like(pad2_ref)

    @pl.when(p == 0)
    def _pool_conv1():
        xv = x_ref[...]                                    # (nb, hp, 2, wp, 2*cin)
        xm = jnp.maximum(xv[:, :, 0], xv[:, :, 1])         # max over row pairs
        pooled = jnp.maximum(xm[..., :cin], xm[..., cin:])  # (nb, hp, wp, cin)
        acc = conv3x3(pooled.astype(jnp.float32), pad1_ref, w1_ref, cin)
        raw_ref[pl.ds(n * nb, nb)] = acc.reshape(nb, hw, cout)
        s1_ref[...] += jnp.sum(acc, axis=0, keepdims=True)
        q1_ref[...] += jnp.sum(acc * acc, axis=0, keepdims=True)

    @pl.when(p == 1)
    def _bn1_relu_conv2():
        mean1, inv1 = bn_stats(s1_ref, q1_ref)
        z = raw_ref[pl.ds(n * nb, nb)]                     # (nb, hw, cout)
        z = (z - mean1) * (inv1 * g1_ref[...]) + b1_ref[...]
        z = jnp.maximum(z, 0.0).reshape(nb, hp, wp, cout)
        acc = conv3x3(z, pad2_ref, w2_ref, cout)
        # conv2 output re-uses the same raw slot (safe write-after-read within
        # this grid step), halving the full-batch raw scratch footprint.
        raw_ref[pl.ds(n * nb, nb)] = acc.reshape(nb, hw, cout)
        s2_ref[...] += jnp.sum(acc, axis=0, keepdims=True)
        q2_ref[...] += jnp.sum(acc * acc, axis=0, keepdims=True)

    @pl.when(p == 2)
    def _bn2_relu_store():
        mean2, inv2 = bn_stats(s2_ref, q2_ref)
        y = raw_ref[pl.ds(n * nb, nb)]
        y = (y - mean2) * (inv2 * g2_ref[...]) + b2_ref[...]
        y = jnp.maximum(y, 0.0)                            # (nb, hw, cout)
        # Per-image (hw, cout) -> (cout, hw): the kernel emits NCHW layout
        # directly (no XLA transpose after the call) and the stores use hw
        # lanes instead of cout lanes.
        o_ref[pl.ds(n * nb, nb)] = jnp.swapaxes(y, 1, 2).astype(o_ref.dtype)


# ------------------------------- wrapper ------------------------------------ #

def _pick_batch_block(n: int, max_nb: int = 8) -> int:
    """Largest divisor of n that is <= max_nb (images per grid step)."""
    nb = 1
    for d in range(1, min(n, max_nb) + 1):
        if n % d == 0:
            nb = d
    return nb


def _vmem_limit_bytes() -> int:
    # Generation-aware scoped-VMEM cap: leave headroom under v7x's 64 MiB while
    # allowing bigger blocks on v5e/v6e's 128 MiB.
    try:
        cap = pltpu.get_tpu_info().vmem_capacity_bytes
    except Exception:
        cap = 64 * 1024 * 1024
    return int(min(cap * 3 // 4, 100 * 1024 * 1024))


@jax.jit
def down_forward(x_nchw, params):
    N, Cin, H, W = x_nchw.shape
    Cout = params["w1"].shape[-1]
    assert H % 2 == 0 and W % 2 == 0, "MaxPool2d(2,2) path assumes even H, W"
    Hp, Wp = H // 2, W // 2
    HW = Hp * Wp
    NB = _pick_batch_block(N)
    n_blocks = N // NB
    last = n_blocks - 1

    # NCHW -> NHWC (channels on lanes) plus a free metadata reshape exposing the
    # 2x2 pooling windows.  This is the only remaining XLA copy on the input.
    # TODO(synk): fold this relayout into the kernel's per-tile DMA for very
    # large activations.
    x_nhwc = jnp.transpose(x_nchw, (0, 2, 3, 1))
    x_pool = x_nhwc.reshape(N, Hp, 2, Wp, 2 * Cin)

    w1m = params["w1"].reshape(9 * Cin, Cout)        # HWIO -> (9*Cin, Cout)
    w2m = params["w2"].reshape(9 * Cout, Cout)
    g1 = params["g1"].reshape(1, Cout)
    b1 = params["b1"].reshape(1, Cout)
    g2 = params["g2"].reshape(1, Cout)
    b2 = params["b2"].reshape(1, Cout)

    kernel = functools.partial(
        _down_kernel, n_batch=N, nb=NB, hp=Hp, wp=Wp, cin=Cin, cout=Cout,
        eps=1e-5)

    const2 = lambda p, n: (0, 0)
    out = pl.pallas_call(
        kernel,
        out_shape=jax.ShapeDtypeStruct((N, Cout, HW), jnp.float32),
        grid_spec=pltpu.PrefetchScalarGridSpec(
            num_scalar_prefetch=0,
            grid=(3, n_blocks),
            in_specs=[
                # x is only consumed in phase 0; pin the last-fetched block so
                # no redundant HBM DMA is issued during phases 1-2.
                pl.BlockSpec((NB, Hp, 2, Wp, 2 * Cin),
                             lambda p, n: (jnp.where(p == 0, n, last),
                                           0, 0, 0, 0)),
                # TODO(synk): mark these constant-index operands (and the
                # resident output) pipeline_mode=pl.Buffered(1) to save VMEM
                # on v7x (no pipelining benefit since the index never changes).
                pl.BlockSpec((9 * Cin, Cout), const2),
                pl.BlockSpec((9 * Cout, Cout), const2),
                pl.BlockSpec((1, Cout), const2),
                pl.BlockSpec((1, Cout), const2),
                pl.BlockSpec((1, Cout), const2),
                pl.BlockSpec((1, Cout), const2),
            ],
            out_specs=pl.BlockSpec((N, Cout, HW), lambda p, n: (0, 0, 0)),
            scratch_shapes=[
                # Raw conv outputs, shared by conv1 and conv2 (conv2 overwrites
                # its own block once BN1 consumed it).
                # TODO(synk): for large N*H*W tile HW / spill this buffer to
                # HBM (pl.ANY + make_async_copy) instead of keeping it resident.
                pltpu.VMEM((N, HW, Cout), jnp.float32),
                pltpu.VMEM((NB, Hp + 2, Wp + 2, Cin), jnp.float32),   # pad buf 1
                pltpu.VMEM((NB, Hp + 2, Wp + 2, Cout), jnp.float32),  # pad buf 2
                pltpu.VMEM((1, Cout), jnp.float32),                   # sum   conv1
                pltpu.VMEM((1, Cout), jnp.float32),                   # sumsq conv1
                pltpu.VMEM((1, Cout), jnp.float32),                   # sum   conv2
                pltpu.VMEM((1, Cout), jnp.float32),                   # sumsq conv2
            ],
        ),
        compiler_params=pltpu.CompilerParams(
            # Phase axis is a sequential multi-pass BN pipeline and the batch
            # axis carries the BN stat accumulators -> both "arbitrary".
            # TODO(synk): on v7x shard the batch axis over both TensorCores
            # with a cross-core stat reduction (CMEM + core_barrier).
            dimension_semantics=("arbitrary", "arbitrary"),
            vmem_limit_bytes=_vmem_limit_bytes(),
        ),
    )(x_pool, w1m, w2m, g1, b1, g2, b2)

    # (N, Cout, Hp*Wp) -> (N, Cout, Hp, Wp): free metadata reshape, already NCHW.
    return out.reshape(N, Cout, Hp, Wp)


# --------------------------- pure-JAX reference ----------------------------- #

def _ref_conv_bn_relu(x_nchw, w_hwio, gamma, beta, eps=1e-5):
    w_oihw = jnp.transpose(w_hwio, (3, 2, 0, 1))
    y = jax.lax.conv_general_dilated(
        x_nchw, w_oihw, window_strides=(1, 1), padding=((1, 1), (1, 1)),
        dimension_numbers=("NCHW", "OIHW", "NCHW"))
    mean = jnp.mean(y, axis=(0, 2, 3), keepdims=True)
    var = jnp.mean((y - mean) ** 2, axis=(0, 2, 3), keepdims=True)
    y = (y - mean) * jax.lax.rsqrt(var + eps)
    y = y * gamma.reshape(1, -1, 1, 1) + beta.reshape(1, -1, 1, 1)
    return jnp.maximum(y, 0.0)


def ref_down(x_nchw, params):
    x = jax.lax.reduce_window(x_nchw, -jnp.inf, jax.lax.max,
                              (1, 1, 2, 2), (1, 1, 2, 2), "VALID")
    x = _ref_conv_bn_relu(x, params["w1"], params["g1"], params["b1"])
    x = _ref_conv_bn_relu(x, params["w2"], params["g2"], params["b2"])
    return x


# ----------------------------------- main ----------------------------------- #

if __name__ == "__main__":
    key = jax.random.PRNGKey(0)
    k_x, k_w1, k_w2, k_g1, k_b1, k_g2, k_b2 = jax.random.split(key, 7)

    N, Cin, Cout, H, W = 2, 4, 8, 16, 16

    x = jax.random.normal(k_x, (N, Cin, H, W), jnp.float32)

    s1 = (2.0 / (Cin * 9)) ** 0.5
    s2 = (2.0 / (Cout * 9)) ** 0.5
    params = {
        "w1": jax.random.normal(k_w1, (3, 3, Cin, Cout), jnp.float32) * s1,
        "g1": 1.0 + 0.1 * jax.random.normal(k_g1, (Cout,), jnp.float32),
        "b1": 0.1 * jax.random.normal(k_b1, (Cout,), jnp.float32),
        "w2": jax.random.normal(k_w2, (3, 3, Cout, Cout), jnp.float32) * s2,
        "g2": 1.0 + 0.1 * jax.random.normal(k_g2, (Cout,), jnp.float32),
        "b2": 0.1 * jax.random.normal(k_b2, (Cout,), jnp.float32),
    }

    out = jax.block_until_ready(down_forward(x, params))
    expected = jax.block_until_ready(ref_down(x, params))

    assert out.shape == (N, Cout, H // 2, W // 2), out.shape
    assert jnp.allclose(out, expected, rtol=1e-3, atol=1e-3), (
        float(jnp.max(jnp.abs(out - expected))))

    print("KERNEL_OK")
</pallas_src>

<mosaic_0001>
module attributes {stable_mosaic.version = 11 : i64} {
  func.func @_down_kernel(%arg0: i32, %arg1: i32, %arg2: memref<2x8x2x8x8xf32, #tpu.memory_space<vmem>>, %arg3: memref<36x8xf32, #tpu.memory_space<vmem>>, %arg4: memref<72x8xf32, #tpu.memory_space<vmem>>, %arg5: memref<1x8xf32, #tpu.memory_space<vmem>>, %arg6: memref<1x8xf32, #tpu.memory_space<vmem>>, %arg7: memref<1x8xf32, #tpu.memory_space<vmem>>, %arg8: memref<1x8xf32, #tpu.memory_space<vmem>>, %arg9: memref<2x8x64xf32, #tpu.memory_space<vmem>>, %arg10: memref<2x64x8xf32, #tpu.memory_space<vmem>>, %arg11: memref<2x10x10x4xf32, #tpu.memory_space<vmem>>, %arg12: memref<2x10x10x8xf32, #tpu.memory_space<vmem>>, %arg13: memref<1x8xf32, #tpu.memory_space<vmem>>, %arg14: memref<1x8xf32, #tpu.memory_space<vmem>>, %arg15: memref<1x8xf32, #tpu.memory_space<vmem>>, %arg16: memref<1x8xf32, #tpu.memory_space<vmem>>) attributes {dimension_semantics = [#tpu.dimension_semantics<arbitrary>, #tpu.dimension_semantics<arbitrary>], iteration_bounds = array<i64: 3, 1>, scalar_prefetch = 0 : i64, scratch_operands = 7 : i64, tpu.core_type = #tpu.core_type<tc>, window_params = [{transform_indices = @transform_0, window_bounds = array<i64: 2, 8, 2, 8, 8>}, {pipeline_mode = #tpu.pipeline_mode<synchronous>, transform_indices = @transform_1, window_bounds = array<i64: 36, 8>}, {pipeline_mode = #tpu.pipeline_mode<synchronous>, transform_indices = @transform_2, window_bounds = array<i64: 72, 8>}, {pipeline_mode = #tpu.pipeline_mode<synchronous>, transform_indices = @transform_3, window_bounds = array<i64: 1, 8>}, {pipeline_mode = #tpu.pipeline_mode<synchronous>, transform_indices = @transform_4, window_bounds = array<i64: 1, 8>}, {pipeline_mode = #tpu.pipeline_mode<synchronous>, transform_indices = @transform_5, window_bounds = array<i64: 1, 8>}, {pipeline_mode = #tpu.pipeline_mode<synchronous>, transform_indices = @transform_6, window_bounds = array<i64: 1, 8>}, {pipeline_mode = #tpu.pipeline_mode<synchronous>, transform_indices = @transform_7, window_bounds = array<i64: 2, 8, 64>}]} {
    %c0_i32 = arith.constant 0 : i32
    %0 = arith.cmpi eq, %arg0, %c0_i32 : i32
    %c0_i32_0 = arith.constant 0 : i32
    %1 = arith.cmpi eq, %arg1, %c0_i32_0 : i32
    %2 = arith.andi %0, %1 : i1
    %3 = arith.extui %2 : i1 to i32
    %c0_i32_1 = arith.constant 0 : i32
    %4 = arith.cmpi ne, %3, %c0_i32_1 : i32
    scf.if %4 {
      %cst = arith.constant 0.000000e+00 : f32
      %14 = vector.broadcast %cst : f32 to vector<1x8xf32>
      %c0 = arith.constant 0 : index
      %c0_6 = arith.constant 0 : index
      %15 = vector.load %arg13[%c0, %c0_6] : memref<1x8xf32, #tpu.memory_space<vmem>>, vector<1x8xf32>
      tpu.vector_store %arg13[%c0, %c0_6], %14 {strides = array<i32>} : memref<1x8xf32, #tpu.memory_space<vmem>>, vector<1x8xf32>,
      %cst_7 = arith.constant 0.000000e+00 : f32
      %16 = vector.broadcast %cst_7 : f32 to vector<1x8xf32>
      %c0_8 = arith.constant 0 : index
      %c0_9 = arith.constant 0 : index
      %17 = vector.load %arg14[%c0_8, %c0_9] : memref<1x8xf32, #tpu.memory_space<vmem>>, vector<1x8xf32>
      tpu.vector_store %arg14[%c0_8, %c0_9], %16 {strides = array<i32>} : memref<1x8xf32, #tpu.memory_space<vmem>>, vector<1x8xf32>,
      %cst_10 = arith.constant 0.000000e+00 : f32
      %18 = vector.broadcast %cst_10 : f32 to vector<1x8xf32>
      %c0_11 = arith.constant 0 : index
      %c0_12 = arith.constant 0 : index
      %19 = vector.load %arg15[%c0_11, %c0_12] : memref<1x8xf32, #tpu.memory_space<vmem>>, vector<1x8xf32>
      tpu.vector_store %arg15[%c0_11, %c0_12], %18 {strides = array<i32>} : memref<1x8xf32, #tpu.memory_space<vmem>>, vector<1x8xf32>,
      %cst_13 = arith.constant 0.000000e+00 : f32
      %20 = vector.broadcast %cst_13 : f32 to vector<1x8xf32>
      %c0_14 = arith.constant 0 : index
      %c0_15 = arith.constant 0 : index
      %21 = vector.load %arg16[%c0_14, %c0_15] : memref<1x8xf32, #tpu.memory_space<vmem>>, vector<1x8xf32>
      tpu.vector_store %arg16[%c0_14, %c0_15], %20 {strides = array<i32>} : memref<1x8xf32, #tpu.memory_space<vmem>>, vector<1x8xf32>,
      %cst_16 = arith.constant 0.000000e+00 : f32
      %22 = vector.broadcast %cst_16 : f32 to vector<2x10x10x4xf32>
      %c0_17 = arith.constant 0 : index
      %c0_18 = arith.constant 0 : index
      %c0_19 = arith.constant 0 : index
      %c0_20 = arith.constant 0 : index
      %23 = vector.load %arg11[%c0_17, %c0_18, %c0_19, %c0_20] : memref<2x10x10x4xf32, #tpu.memory_space<vmem>>, vector<2x10x10x4xf32>
      tpu.vector_store %arg11[%c0_17, %c0_18, %c0_19, %c0_20], %22 {strides = array<i32>} : memref<2x10x10x4xf32, #tpu.memory_space<vmem>>, vector<2x10x10x4xf32>,
      %cst_21 = arith.constant 0.000000e+00 : f32
      %24 = vector.broadcast %cst_21 : f32 to vector<2x10x10x8xf32>
      %c0_22 = arith.constant 0 : index
      %c0_23 = arith.constant 0 : index
      %c0_24 = arith.constant 0 : index
      %c0_25 = arith.constant 0 : index
      %25 = vector.load %arg12[%c0_22, %c0_23, %c0_24, %c0_25] : memref<2x10x10x8xf32, #tpu.memory_space<vmem>>, vector<2x10x10x8xf32>
      tpu.vector_store %arg12[%c0_22, %c0_23, %c0_24, %c0_25], %24 {strides = array<i32>} : memref<2x10x10x8xf32, #tpu.memory_space<vmem>>, vector<2x10x10x8xf32>,
    } else {
    }
    %c0_i32_2 = arith.constant 0 : i32
    %5 = arith.cmpi eq, %arg0, %c0_i32_2 : i32
    %6 = arith.extui %5 : i1 to i32
    %c0_i32_3 = arith.constant 0 : i32
    %7 = arith.cmpi ne, %6, %c0_i32_3 : i32
    scf.if %7 {
      %c0 = arith.constant 0 : index
      %c0_6 = arith.constant 0 : index
      %c0_7 = arith.constant 0 : index
      %c0_8 = arith.constant 0 : index
      %c0_9 = arith.constant 0 : index
      %14 = vector.load %arg2[%c0, %c0_6, %c0_7, %c0_8, %c0_9] : memref<2x8x2x8x8xf32, #tpu.memory_space<vmem>>, vector<2x8x2x8x8xf32>
      %15 = vector.extract_strided_slice %14 {offsets = [0, 0, 0, 0, 0], sizes = [2, 8, 1, 8, 8], strides = [1, 1, 1, 1, 1]} : vector<2x8x2x8x8xf32> to vector<2x8x1x8x8xf32>
      %16 = vector.shape_cast %15 : vector<2x8x1x8x8xf32> to vector<2x8x8x8xf32>
      %17 = vector.extract_strided_slice %14 {offsets = [0, 0, 1, 0, 0], sizes = [2, 8, 1, 8, 8], strides = [1, 1, 1, 1, 1]} : vector<2x8x2x8x8xf32> to vector<2x8x1x8x8xf32>
      %18 = vector.shape_cast %17 : vector<2x8x1x8x8xf32> to vector<2x8x8x8xf32>
      %19 = arith.maximumf %16, %18 : vector<2x8x8x8xf32>
      %20 = vector.extract_strided_slice %19 {offsets = [0, 0, 0, 0], sizes = [2, 8, 8, 4], strides = [1, 1, 1, 1]} : vector<2x8x8x8xf32> to vector<2x8x8x4xf32>
      %21 = vector.extract_strided_slice %19 {offsets = [0, 0, 0, 4], sizes = [2, 8, 8, 4], strides = [1, 1, 1, 1]} : vector<2x8x8x8xf32> to vector<2x8x8x4xf32>
      %22 = arith.maximumf %20, %21 : vector<2x8x8x4xf32>
      %c0_10 = arith.constant 0 : index
      %c1 = arith.constant 1 : index
      %c1_11 = arith.constant 1 : index
      %c0_12 = arith.constant 0 : index
      %23 = vector.load %arg11[%c0_10, %c1, %c1_11, %c0_12] : memref<2x10x10x4xf32, #tpu.memory_space<vmem>>, vector<2x8x8x4xf32>
      tpu.vector_store %arg11[%c0_10, %c1, %c1_11, %c0_12], %22 {strides = array<i32>} : memref<2x10x10x4xf32, #tpu.memory_space<vmem>>, vector<2x8x8x4xf32>,
      %c0_13 = arith.constant 0 : index
      %c0_14 = arith.constant 0 : index
      %c0_15 = arith.constant 0 : index
      %c0_16 = arith.constant 0 : index
      %24 = vector.load %arg11[%c0_13, %c0_14, %c0_15, %c0_16] : memref<2x10x10x4xf32, #tpu.memory_space<vmem>>, vector<2x8x8x4xf32>
      %c0_17 = arith.constant 0 : index
      %c0_18 = arith.constant 0 : index
      %c1_19 = arith.constant 1 : index
      %c0_20 = arith.constant 0 : index
      %25 = vector.load %arg11[%c0_17, %c0_18, %c1_19, %c0_20] : memref<2x10x10x4xf32, #tpu.memory_space<vmem>>, vector<2x8x8x4xf32>
      %c0_21 = arith.constant 0 : index
      %c0_22 = arith.constant 0 : index
      %c2 = arith.constant 2 : index
      %c0_23 = arith.constant 0 : index
      %26 = vector.load %arg11[%c0_21, %c0_22, %c2, %c0_23] : memref<2x10x10x4xf32, #tpu.memory_space<vmem>>, vector<2x8x8x4xf32>
      %c0_24 = arith.constant 0 : index
      %c1_25 = arith.constant 1 : index
      %c0_26 = arith.constant 0 : index
      %c0_27 = arith.constant 0 : index
      %27 = vector.load %arg11[%c0_24, %c1_25, %c0_26, %c0_27] : memref<2x10x10x4xf32, #tpu.memory_space<vmem>>, vector<2x8x8x4xf32>
      %c0_28 = arith.constant 0 : index
      %c1_29 = arith.constant 1 : index
      %c1_30 = arith.constant 1 : index
      %c0_31 = arith.constant 0 : index
      %28 = vector.load %arg11[%c0_28, %c1_29, %c1_30, %c0_31] : memref<2x10x10x4xf32, #tpu.memory_space<vmem>>, vector<2x8x8x4xf32>
      %c0_32 = arith.constant 0 : index
      %c1_33 = arith.constant 1 : index
      %c2_34 = arith.constant 2 : index
      %c0_35 = arith.constant 0 : index
      %29 = vector.load %arg11[%c0_32, %c1_33, %c2_34, %c0_35] : memref<2x10x10x4xf32, #tpu.memory_space<vmem>>, vector<2x8x8x4xf32>
      %c0_36 = arith.constant 0 : index
      %c2_37 = arith.constant 2 : index
      %c0_38 = arith.constant 0 : index
      %c0_39 = arith.constant 0 : index
      %30 = vector.load %arg11[%c0_36, %c2_37, %c0_38, %c0_39] : memref<2x10x10x4xf32, #tpu.memory_space<vmem>>, vector<2x8x8x4xf32>
      %c0_40 = arith.constant 0 : index
      %c2_41 = arith.constant 2 : index
      %c1_42 = arith.constant 1 : index
      %c0_43 = arith.constant 0 : index
      %31 = vector.load %arg11[%c0_40, %c2_41, %c1_42, %c0_43] : memref<2x10x10x4xf32, #tpu.memory_space<vmem>>, vector<2x8x8x4xf32>
      %c0_44 = arith.constant 0 : index
      %c2_45 = arith.constant 2 : index
      %c2_46 = arith.constant 2 : index
      %c0_47 = arith.constant 0 : index
      %32 = vector.load %arg11[%c0_44, %c2_45, %c2_46, %c0_47] : memref<2x10x10x4xf32, #tpu.memory_space<vmem>>, vector<2x8x8x4xf32>
      %33 = tpu.concatenate %24, %25, %26, %27, %28, %29, %30, %31, %32 in 3 : vector<2x8x8x4xf32>, vector<2x8x8x4xf32>, vector<2x8x8x4xf32>, vector<2x8x8x4xf32>, vector<2x8x8x4xf32>, vector<2x8x8x4xf32>, vector<2x8x8x4xf32>, vector<2x8x8x4xf32>, vector<2x8x8x4xf32> -> vector<2x8x8x36xf32>
      %34 = vector.shape_cast %33 : vector<2x8x8x36xf32> to vector<128x36xf32>
      %c0_48 = arith.constant 0 : index
      %c0_49 = arith.constant 0 : index
      %35 = vector.load %arg3[%c0_48, %c0_49] : memref<36x8xf32, #tpu.memory_space<vmem>>, vector<36x8xf32>
      %cst = arith.constant dense<0.000000e+00> : vector<128x8xf32>
      %36 = tpu.matmul %34, %35, %cst {dimension_numbers = #tpu.dot_dimension_numbers<[1], [0], [0], [1], [0, 0, 1, 1], [], []>} : vector<128x36xf32>, vector<36x8xf32>, vector<128x8xf32> -> vector<128x8xf32>
      %37 = vector.shape_cast %36 : vector<128x8xf32> to vector<2x64x8xf32>
      %c2_i32_50 = arith.constant 2 : i32
      %38 = arith.muli %arg1, %c2_i32_50 : i32
      %39 = arith.index_cast %38 : i32 to index
      %c0_51 = arith.constant 0 : index
      %c0_52 = arith.constant 0 : index
      %40 = vector.load %arg10[%39, %c0_51, %c0_52] : memref<2x64x8xf32, #tpu.memory_space<vmem>>, vector<2x64x8xf32>
      tpu.vector_store %arg10[%39, %c0_51, %c0_52], %37 {strides = array<i32>} : memref<2x64x8xf32, #tpu.memory_space<vmem>>, vector<2x64x8xf32>,
      %c0_53 = arith.constant 0 : index
      %c0_54 = arith.constant 0 : index
      %41 = vector.load %arg13[%c0_53, %c0_54] : memref<1x8xf32, #tpu.memory_space<vmem>>, vector<1x8xf32>
      %cst_55 = arith.constant dense<0.000000e+00> : vector<8xf32>
      %42 = vector.multi_reduction <add>, %36, %cst_55 [0] : vector<128x8xf32> to vector<8xf32>
      %43 = vector.shape_cast %42 : vector<8xf32> to vector<1x8xf32>
      %44 = arith.addf %41, %43 : vector<1x8xf32>
      %c0_56 = arith.constant 0 : index
      %c0_57 = arith.constant 0 : index
      %45 = vector.load %arg13[%c0_56, %c0_57] : memref<1x8xf32, #tpu.memory_space<vmem>>, vector<1x8xf32>
      tpu.vector_store %arg13[%c0_56, %c0_57], %44 {strides = array<i32>} : memref<1x8xf32, #tpu.memory_space<vmem>>, vector<1x8xf32>,
      %c0_58 = arith.constant 0 : index
      %c0_59 = arith.constant 0 : index
      %46 = vector.load %arg14[%c0_58, %c0_59] : memref<1x8xf32, #tpu.memory_space<vmem>>, vector<1x8xf32>
      %47 = arith.mulf %36, %36 : vector<128x8xf32>
      %cst_60 = arith.constant dense<0.000000e+00> : vector<8xf32>
      %48 = vector.multi_reduction <add>, %47, %cst_60 [0] : vector<128x8xf32> to vector<8xf32>
      %49 = vector.shape_cast %48 : vector<8xf32> to vector<1x8xf32>
      %50 = arith.addf %46, %49 : vector<1x8xf32>
      %c0_61 = arith.constant 0 : index
      %c0_62 = arith.constant 0 : index
      %51 = vector.load %arg14[%c0_61, %c0_62] : memref<1x8xf32, #tpu.memory_space<vmem>>, vector<1x8xf32>
      tpu.vector_store %arg14[%c0_61, %c0_62], %50 {strides = array<i32>} : memref<1x8xf32, #tpu.memory_space<vmem>>, vector<1x8xf32>,
    } else {
    }
    %c1_i32 = arith.constant 1 : i32
    %8 = arith.cmpi eq, %arg0, %c1_i32 : i32
    %9 = arith.extui %8 : i1 to i32
    %c0_i32_4 = arith.constant 0 : i32
    %10 = arith.cmpi ne, %9, %c0_i32_4 : i32
    scf.if %10 {
      %c0 = arith.constant 0 : index
      %c0_6 = arith.constant 0 : index
      %14 = vector.load %arg13[%c0, %c0_6] : memref<1x8xf32, #tpu.memory_space<vmem>>, vector<1x8xf32>
      %cst = arith.constant 7.812500e-03 : f32
      %15 = vector.broadcast %cst : f32 to vector<1x8xf32>
      %16 = arith.mulf %14, %15 : vector<1x8xf32>
      %c0_7 = arith.constant 0 : index
      %c0_8 = arith.constant 0 : index
      %17 = vector.load %arg14[%c0_7, %c0_8] : memref<1x8xf32, #tpu.memory_space<vmem>>, vector<1x8xf32>
      %cst_9 = arith.constant 7.812500e-03 : f32
      %18 = vector.broadcast %cst_9 : f32 to vector<1x8xf32>
      %19 = arith.mulf %17, %18 : vector<1x8xf32>
      %20 = arith.mulf %16, %16 : vector<1x8xf32>
      %21 = arith.subf %19, %20 : vector<1x8xf32>
      %cst_10 = arith.constant 9.99999974E-6 : f32
      %22 = vector.broadcast %cst_10 : f32 to vector<1x8xf32>
      %23 = arith.addf %21, %22 : vector<1x8xf32>
      %24 = math.rsqrt %23 : vector<1x8xf32>
      %c2_i32_11 = arith.constant 2 : i32
      %25 = arith.muli %arg1, %c2_i32_11 : i32
      %26 = arith.index_cast %25 : i32 to index
      %c0_12 = arith.constant 0 : index
      %c0_13 = arith.constant 0 : index
      %27 = vector.load %arg10[%26, %c0_12, %c0_13] : memref<2x64x8xf32, #tpu.memory_space<vmem>>, vector<2x64x8xf32>
      %28 = vector.shape_cast %16 : vector<1x8xf32> to vector<1x1x8xf32>
      %29 = vector.broadcast %28 : vector<1x1x8xf32> to vector<2x64x8xf32>
      %30 = arith.subf %27, %29 : vector<2x64x8xf32>
      %c0_14 = arith.constant 0 : index
      %c0_15 = arith.constant 0 : index
      %31 = vector.load %arg5[%c0_14, %c0_15] : memref<1x8xf32, #tpu.memory_space<vmem>>, vector<1x8xf32>
      %32 = arith.mulf %24, %31 : vector<1x8xf32>
      %33 = vector.shape_cast %32 : vector<1x8xf32> to vector<1x1x8xf32>
      %34 = vector.broadcast %33 : vector<1x1x8xf32> to vector<2x64x8xf32>
      %35 = arith.mulf %30, %34 : vector<2x64x8xf32>
      %c0_16 = arith.constant 0 : index
      %c0_17 = arith.constant 0 : index
      %36 = vector.load %arg6[%c0_16, %c0_17] : memref<1x8xf32, #tpu.memory_space<vmem>>, vector<1x8xf32>
      %37 = vector.shape_cast %36 : vector<1x8xf32> to vector<1x1x8xf32>
      %38 = vector.broadcast %37 : vector<1x1x8xf32> to vector<2x64x8xf32>
      %39 = arith.addf %35, %38 : vector<2x64x8xf32>
      %cst_18 = arith.constant 0.000000e+00 : f32
      %40 = vector.broadcast %cst_18 : f32 to vector<2x64x8xf32>
      %41 = arith.maximumf %39, %40 : vector<2x64x8xf32>
      %42 = vector.shape_cast %41 : vector<2x64x8xf32> to vector<2x8x8x8xf32>
      %c0_19 = arith.constant 0 : index
      %c1 = arith.constant 1 : index
      %c1_20 = arith.constant 1 : index
      %c0_21 = arith.constant 0 : index
      %43 = vector.load %arg12[%c0_19, %c1, %c1_20, %c0_21] : memref<2x10x10x8xf32, #tpu.memory_space<vmem>>, vector<2x8x8x8xf32>
      tpu.vector_store %arg12[%c0_19, %c1, %c1_20, %c0_21], %42 {strides = array<i32>} : memref<2x10x10x8xf32, #tpu.memory_space<vmem>>, vector<2x8x8x8xf32>,
      %c0_22 = arith.constant 0 : index
      %c0_23 = arith.constant 0 : index
      %c0_24 = arith.constant 0 : index
      %c0_25 = arith.constant 0 : index
      %44 = vector.load %arg12[%c0_22, %c0_23, %c0_24, %c0_25] : memref<2x10x10x8xf32, #tpu.memory_space<vmem>>, vector<2x8x8x8xf32>
      %c0_26 = arith.constant 0 : index
      %c0_27 = arith.constant 0 : index
      %c1_28 = arith.constant 1 : index
      %c0_29 = arith.constant 0 : index
      %45 = vector.load %arg12[%c0_26, %c0_27, %c1_28, %c0_29] : memref<2x10x10x8xf32, #tpu.memory_space<vmem>>, vector<2x8x8x8xf32>
      %c0_30 = arith.constant 0 : index
      %c0_31 = arith.constant 0 : index
      %c2 = arith.constant 2 : index
      %c0_32 = arith.constant 0 : index
      %46 = vector.load %arg12[%c0_30, %c0_31, %c2, %c0_32] : memref<2x10x10x8xf32, #tpu.memory_space<vmem>>, vector<2x8x8x8xf32>
      %c0_33 = arith.constant 0 : index
      %c1_34 = arith.constant 1 : index
      %c0_35 = arith.constant 0 : index
      %c0_36 = arith.constant 0 : index
      %47 = vector.load %arg12[%c0_33, %c1_34, %c0_35, %c0_36] : memref<2x10x10x8xf32, #tpu.memory_space<vmem>>, vector<2x8x8x8xf32>
      %c0_37 = arith.constant 0 : index
      %c1_38 = arith.constant 1 : index
      %c1_39 = arith.constant 1 : index
      %c0_40 = arith.constant 0 : index
      %48 = vector.load %arg12[%c0_37, %c1_38, %c1_39, %c0_40] : memref<2x10x10x8xf32, #tpu.memory_space<vmem>>, vector<2x8x8x8xf32>
      %c0_41 = arith.constant 0 : index
      %c1_42 = arith.constant 1 : index
      %c2_43 = arith.constant 2 : index
      %c0_44 = arith.constant 0 : index
      %49 = vector.load %arg12[%c0_41, %c1_42, %c2_43, %c0_44] : memref<2x10x10x8xf32, #tpu.memory_space<vmem>>, vector<2x8x8x8xf32>
      %c0_45 = arith.constant 0 : index
      %c2_46 = arith.constant 2 : index
      %c0_47 = arith.constant 0 : index
      %c0_48 = arith.constant 0 : index
      %50 = vector.load %arg12[%c0_45, %c2_46, %c0_47, %c0_48] : memref<2x10x10x8xf32, #tpu.memory_space<vmem>>, vector<2x8x8x8xf32>
      %c0_49 = arith.constant 0 : index
      %c2_50 = arith.constant 2 : index
      %c1_51 = arith.constant 1 : index
      %c0_52 = arith.constant 0 : index
      %51 = vector.load %arg12[%c0_49, %c2_50, %c1_51, %c0_52] : memref<2x10x10x8xf32, #tpu.memory_space<vmem>>, vector<2x8x8x8xf32>
      %c0_53 = arith.constant 0 : index
      %c2_54 = arith.constant 2 : index
      %c2_55 = arith.constant 2 : index
      %c0_56 = arith.constant 0 : index
      %52 = vector.load %arg12[%c0_53, %c2_54, %c2_55, %c0_56] : memref<2x10x10x8xf32, #tpu.memory_space<vmem>>, vector<2x8x8x8xf32>
      %53 = tpu.concatenate %44, %45, %46, %47, %48, %49, %50, %51, %52 in 3 : vector<2x8x8x8xf32>, vector<2x8x8x8xf32>, vector<2x8x8x8xf32>, vector<2x8x8x8xf32>, vector<2x8x8x8xf32>, vector<2x8x8x8xf32>, vector<2x8x8x8xf32>, vector<2x8x8x8xf32>, vector<2x8x8x8xf32> -> vector<2x8x8x72xf32>
      %54 = vector.shape_cast %53 : vector<2x8x8x72xf32> to vector<128x72xf32>
      %c0_57 = arith.constant 0 : index
      %c0_58 = arith.constant 0 : index
      %55 = vector.load %arg4[%c0_57, %c0_58] : memref<72x8xf32, #tpu.memory_space<vmem>>, vector<72x8xf32>
      %cst_59 = arith.constant dense<0.000000e+00> : vector<128x8xf32>
      %56 = tpu.matmul %54, %55, %cst_59 {dimension_numbers = #tpu.dot_dimension_numbers<[1], [0], [0], [1], [0, 0, 1, 1], [], []>} : vector<128x72xf32>, vector<72x8xf32>, vector<128x8xf32> -> vector<128x8xf32>
      %57 = vector.shape_cast %56 : vector<128x8xf32> to vector<2x64x8xf32>
      %c2_i32_60 = arith.constant 2 : i32
      %58 = arith.muli %arg1, %c2_i32_60 : i32
      %59 = arith.index_cast %58 : i32 to index
      %c0_61 = arith.constant 0 : index
      %c0_62 = arith.constant 0 : index
      %60 = vector.load %arg10[%59, %c0_61, %c0_62] : memref<2x64x8xf32, #tpu.memory_space<vmem>>, vector<2x64x8xf32>
      tpu.vector_store %arg10[%59, %c0_61, %c0_62], %57 {strides = array<i32>} : memref<2x64x8xf32, #tpu.memory_space<vmem>>, vector<2x64x8xf32>,
      %c0_63 = arith.constant 0 : index
      %c0_64 = arith.constant 0 : index
      %61 = vector.load %arg15[%c0_63, %c0_64] : memref<1x8xf32, #tpu.memory_space<vmem>>, vector<1x8xf32>
      %cst_65 = arith.constant dense<0.000000e+00> : vector<8xf32>
      %62 = vector.multi_reduction <add>, %56, %cst_65 [0] : vector<128x8xf32> to vector<8xf32>
      %63 = vector.shape_cast %62 : vector<8xf32> to vector<1x8xf32>
      %64 = arith.addf %61, %63 : vector<1x8xf32>
      %c0_66 = arith.constant 0 : index
      %c0_67 = arith.constant 0 : index
      %65 = vector.load %arg15[%c0_66, %c0_67] : memref<1x8xf32, #tpu.memory_space<vmem>>, vector<1x8xf32>
      tpu.vector_store %arg15[%c0_66, %c0_67], %64 {strides = array<i32>} : memref<1x8xf32, #tpu.memory_space<vmem>>, vector<1x8xf32>,
      %c0_68 = arith.constant 0 : index
      %c0_69 = arith.constant 0 : index
      %66 = vector.load %arg16[%c0_68, %c0_69] : memref<1x8xf32, #tpu.memory_space<vmem>>, vector<1x8xf32>
      %67 = arith.mulf %56, %56 : vector<128x8xf32>
      %cst_70 = arith.constant dense<0.000000e+00> : vector<8xf32>
      %68 = vector.multi_reduction <add>, %67, %cst_70 [0] : vector<128x8xf32> to vector<8xf32>
      %69 = vector.shape_cast %68 : vector<8xf32> to vector<1x8xf32>
      %70 = arith.addf %66, %69 : vector<1x8xf32>
      %c0_71 = arith.constant 0 : index
      %c0_72 = arith.constant 0 : index
      %71 = vector.load %arg16[%c0_71, %c0_72] : memref<1x8xf32, #tpu.memory_space<vmem>>, vector<1x8xf32>
      tpu.vector_store %arg16[%c0_71, %c0_72], %70 {strides = array<i32>} : memref<1x8xf32, #tpu.memory_space<vmem>>, vector<1x8xf32>,
    } else {
    }
    %c2_i32 = arith.constant 2 : i32
    %11 = arith.cmpi eq, %arg0, %c2_i32 : i32
    %12 = arith.extui %11 : i1 to i32
    %c0_i32_5 = arith.constant 0 : i32
    %13 = arith.cmpi ne, %12, %c0_i32_5 : i32
    scf.if %13 {
      %c0 = arith.constant 0 : index
      %c0_6 = arith.constant 0 : index
      %14 = vector.load %arg15[%c0, %c0_6] : memref<1x8xf32, #tpu.memory_space<vmem>>, vector<1x8xf32>
      %cst = arith.constant 7.812500e-03 : f32
      %15 = vector.broadcast %cst : f32 to vector<1x8xf32>
      %16 = arith.mulf %14, %15 : vector<1x8xf32>
      %c0_7 = arith.constant 0 : index
      %c0_8 = arith.constant 0 : index
      %17 = vector.load %arg16[%c0_7, %c0_8] : memref<1x8xf32, #tpu.memory_space<vmem>>, vector<1x8xf32>
      %cst_9 = arith.constant 7.812500e-03 : f32
      %18 = vector.broadcast %cst_9 : f32 to vector<1x8xf32>
      %19 = arith.mulf %17, %18 : vector<1x8xf32>
      %20 = arith.mulf %16, %16 : vector<1x8xf32>
      %21 = arith.subf %19, %20 : vector<1x8xf32>
      %cst_10 = arith.constant 9.99999974E-6 : f32
      %22 = vector.broadcast %cst_10 : f32 to vector<1x8xf32>
      %23 = arith.addf %21, %22 : vector<1x8xf32>
      %24 = math.rsqrt %23 : vector<1x8xf32>
      %c2_i32_11 = arith.constant 2 : i32
      %25 = arith.muli %arg1, %c2_i32_11 : i32
      %26 = arith.index_cast %25 : i32 to index
      %c0_12 = arith.constant 0 : index
      %c0_13 = arith.constant 0 : index
      %27 = vector.load %arg10[%26, %c0_12, %c0_13] : memref<2x64x8xf32, #tpu.memory_space<vmem>>, vector<2x64x8xf32>
      %28 = vector.shape_cast %16 : vector<1x8xf32> to vector<1x1x8xf32>
      %29 = vector.broadcast %28 : vector<1x1x8xf32> to vector<2x64x8xf32>
      %30 = arith.subf %27, %29 : vector<2x64x8xf32>
      %c0_14 = arith.constant 0 : index
      %c0_15 = arith.constant 0 : index
      %31 = vector.load %arg7[%c0_14, %c0_15] : memref<1x8xf32, #tpu.memory_space<vmem>>, vector<1x8xf32>
      %32 = arith.mulf %24, %31 : vector<1x8xf32>
      %33 = vector.shape_cast %32 : vector<1x8xf32> to vector<1x1x8xf32>
      %34 = vector.broadcast %33 : vector<1x1x8xf32> to vector<2x64x8xf32>
      %35 = arith.mulf %30, %34 : vector<2x64x8xf32>
      %c0_16 = arith.constant 0 : index
      %c0_17 = arith.constant 0 : index
      %36 = vector.load %arg8[%c0_16, %c0_17] : memref<1x8xf32, #tpu.memory_space<vmem>>, vector<1x8xf32>
      %37 = vector.shape_cast %36 : vector<1x8xf32> to vector<1x1x8xf32>
      %38 = vector.broadcast %37 : vector<1x1x8xf32> to vector<2x64x8xf32>
      %39 = arith.addf %35, %38 : vector<2x64x8xf32>
      %cst_18 = arith.constant 0.000000e+00 : f32
      %40 = vector.broadcast %cst_18 : f32 to vector<2x64x8xf32>
      %41 = arith.maximumf %39, %40 : vector<2x64x8xf32>
      %42 = tpu.transpose %41, [0, 2, 1] : vector<2x64x8xf32> -> vector<2x8x64xf32>
      %c2_i32_19 = arith.constant 2 : i32
      %43 = arith.muli %arg1, %c2_i32_19 : i32
      %44 = arith.index_cast %43 : i32 to index
      %c0_20 = arith.constant 0 : index
      %c0_21 = arith.constant 0 : index
      %45 = vector.load %arg9[%44, %c0_20, %c0_21] : memref<2x8x64xf32, #tpu.memory_space<vmem>>, vector<2x8x64xf32>
      tpu.vector_store %arg9[%44, %c0_20, %c0_21], %42 {strides = array<i32>} : memref<2x8x64xf32, #tpu.memory_space<vmem>>, vector<2x8x64xf32>,
    } else {
    }
    return
  }
  func.func @transform_0(%arg0: i32, %arg1: i32) -> (i32, i32, i32, i32, i32) {
    %c0_i32 = arith.constant 0 : i32
    %0 = arith.cmpi eq, %arg0, %c0_i32 : i32
    %c0_i32_0 = arith.constant 0 : i32
    %1 = arith.select %0, %arg1, %c0_i32_0 : i32
    %c0_i32_1 = arith.constant 0 : i32
    %c0_i32_2 = arith.constant 0 : i32
    %c0_i32_3 = arith.constant 0 : i32
    %c0_i32_4 = arith.constant 0 : i32
    %c0_i32_5 = arith.constant 0 : i32
    return %1, %c0_i32_1, %c0_i32_2, %c0_i32_3, %c0_i32_4 : i32, i32, i32, i32, i32
  }
  func.func @transform_1(%arg0: i32, %arg1: i32) -> (i32, i32) {
    %c0_i32 = arith.constant 0 : i32
    %c0_i32_0 = arith.constant 0 : i32
    %c0_i32_1 = arith.constant 0 : i32
    return %c0_i32, %c0_i32_0 : i32, i32
  }
  func.func @transform_2(%arg0: i32, %arg1: i32) -> (i32, i32) {
    %c0_i32 = arith.constant 0 : i32
    %c0_i32_0 = arith.constant 0 : i32
    %c0_i32_1 = arith.constant 0 : i32
    return %c0_i32, %c0_i32_0 : i32, i32
  }
  func.func @transform_3(%arg0: i32, %arg1: i32) -> (i32, i32) {
    %c0_i32 = arith.constant 0 : i32
    %c0_i32_0 = arith.constant 0 : i32
    %c0_i32_1 = arith.constant 0 : i32
    return %c0_i32, %c0_i32_0 : i32, i32
  }
  func.func @transform_4(%arg0: i32, %arg1: i32) -> (i32, i32) {
    %c0_i32 = arith.constant 0 : i32
    %c0_i32_0 = arith.constant 0 : i32
    %c0_i32_1 = arith.constant 0 : i32
    return %c0_i32, %c0_i32_0 : i32, i32
  }
  func.func @transform_5(%arg0: i32, %arg1: i32) -> (i32, i32) {
    %c0_i32 = arith.constant 0 : i32
    %c0_i32_0 = arith.constant 0 : i32
    %c0_i32_1 = arith.constant 0 : i32
    return %c0_i32, %c0_i32_0 : i32, i32
  }
  func.func @transform_6(%arg0: i32, %arg1: i32) -> (i32, i32) {
    %c0_i32 = arith.constant 0 : i32
    %c0_i32_0 = arith.constant 0 : i32
    %c0_i32_1 = arith.constant 0 : i32
    return %c0_i32, %c0_i32_0 : i32, i32
  }
  func.func @transform_7(%arg0: i32, %arg1: i32) -> (i32, i32, i32) {
    %c0_i32 = arith.constant 0 : i32
    %c0_i32_0 = arith.constant 0 : i32
    %c0_i32_1 = arith.constant 0 : i32
    %c0_i32_2 = arith.constant 0 : i32
    return %c0_i32, %c0_i32_0, %c0_i32_1 : i32, i32, i32
  }
}

</mosaic_0001>

<bundles_post_ra>
// kernel: down_forward.1
= control target key start
LH: loop header
LB: loop body
LE: loop exit
PB: predicated region body
PF: predicated region fallthrough
CT: control target
= control target key end

     0   :  { %s3447_s24 = smov 0   ;;  %s3449_s25 = smov 0   ;;  %s4962_s0 = inlined_call_operand.vmem [shape: f32[2,8,2,8,8], index: 0, kind: input, shape index: {}]   ;;  %s4963_s1 = inlined_call_operand.vmem [shape: f32[36,8], index: 1, kind: input, shape index: {}]   ;;  %s4964_s2 = inlined_call_operand.vmem [shape: f32[72,8], index: 2, kind: input, shape index: {}]   ;;  %s4965_s3 = inlined_call_operand.vmem [shape: f32[1,8], index: 3, kind: input, shape index: {}]   ;;  %s4966_s4 = inlined_call_operand.vmem [shape: f32[1,8], index: 4, kind: input, shape index: {}]   ;;  %s4967_s5 = inlined_call_operand.vmem [shape: f32[1,8], index: 5, kind: input, shape index: {}]   ;;  %s4968_s6 = inlined_call_operand.vmem [shape: f32[1,8], index: 6, kind: input, shape index: {}]   ;;  %s4969_s7 = inlined_call_operand.vmem [shape: f32[2,8,64], index: 7, kind: output, shape index: {}]  }
   0x1   :  { %s3451_s26 = smov 0  }
   0x2 LB: > { %s29_s27 = sadd.s32 1, %s3383_s25  ;;  %p3125_p0 = scmp.ge.s32.totalorder %s3387_s26, 1  ;;  %s3387_s26 = sphi %s3451_s26, %s17_s26   ;;  %s3383_s25 = sphi %s3449_s25, %s4971_s25   ;;  %s3379_s24 = sphi %s3447_s24, %s4970_s24  }
   0x3   : > { %p31_p1 = scmp.ge.s32.totalorder %s29_s27, 3  ;;  %p254_p2 = scmp.lt.s32.totalorder %s3387_s26, 4 }
   0x5   : > { %s4973_s27 = smov (%p31_p1, %s29_s27), 0  ;;  %p255_p3 = pnand %p3125_p0, %p254_p2 }
   0x6   : > { %p295_p4 = scmp.eq.s32.totalorder (!%p255_p3), %s3379_s24, 0 }
   0x7   : > { %258 = sbr.rel (%p255_p3) target bundleno = 1573 (0x625), region = 48 }
   0xc   : > { %300 = sbr.rel (!%p295_p4) target bundleno = 55 (0x37), region = 52  ;;  %vm301_vm0 = vcmask (%p295_p4), 57344   ;;  %vm306_vm1 = vcmask (%p295_p4), 31744   ;;  %vm308_vm2 = vcmask (%p295_p4), 25600   ;;  %v3389_v0 = vmov (%p295_p4), 0.0  }
   0xd   : > { %302 = vst.msk [vmem:[#allocation5] sm:$0x1] (%p295_p4), %vm301_vm0, %v3389_v0  ;;  %303 = vst.msk [vmem:[#allocation6] sm:$0x1] (%p295_p4), %vm301_vm0, %v3389_v0  ;;  %vm348_vm3 = vcmask (%p295_p4), 64512   ;;  %vm350_vm4 = vcmask (%p295_p4), 58368  }
   0xe   : > { %304 = vst.msk [vmem:[#allocation7] sm:$0x1] (%p295_p4), %vm301_vm0, %v3389_v0  ;;  %305 = vst.msk [vmem:[#allocation8] sm:$0x1] (%p295_p4), %vm301_vm0, %v3389_v0 }
   0xf   : > { %307 = vst.msk [vmem:[#allocation3] sm:$0xff] (%p295_p4), %vm306_vm1, %v3389_v0  ;;  %310 = vst.msk [vmem:[#allocation3 + $0x10] sm:$0xff] (%p295_p4), %vm306_vm1, %v3389_v0 }
  0x10   : > { %312 = vst.msk [vmem:[#allocation3 + $0x20] sm:$0xff] (%p295_p4), %vm306_vm1, %v3389_v0  ;;  %314 = vst.msk [vmem:[#allocation3 + $0x30] sm:$0xff] (%p295_p4), %vm306_vm1, %v3389_v0 }
  0x11   : > { %316 = vst.msk [vmem:[#allocation3 + $0x40] sm:$0xff] %vm306_vm1, %v3389_v0  ;;  %318 = vst.msk [vmem:[#allocation3 + $0x50] sm:$0xff] %vm306_vm1, %v3389_v0 }
  0x12   : > { %320 = vst.msk [vmem:[#allocation3 + $0x60] sm:$0xff] %vm306_vm1, %v3389_v0  ;;  %322 = vst.msk [vmem:[#allocation3 + $0x70] sm:$0xff] %vm306_vm1, %v3389_v0 }
  0x13   : > { %324 = vst.msk [vmem:[#allocation3 + $0x80] sm:$0xff] %vm306_vm1, %v3389_v0  ;;  %326 = vst.msk [vmem:[#allocation3 + $0x90] sm:$0xff] %vm306_vm1, %v3389_v0 }
  0x14   : > { %328 = vst.msk [vmem:[#allocation3 + $0xa0] sm:$0xff] %vm306_vm1, %v3389_v0  ;;  %330 = vst.msk [vmem:[#allocation3 + $0xb0] sm:$0xff] %vm306_vm1, %v3389_v0 }
  0x15   : > { %332 = vst.msk [vmem:[#allocation3 + $0xc0] sm:$0xff] %vm306_vm1, %v3389_v0  ;;  %334 = vst.msk [vmem:[#allocation3 + $0xd0] sm:$0xff] %vm306_vm1, %v3389_v0 }
  0x16   : > { %336 = vst.msk [vmem:[#allocation3 + $0xe0] sm:$0xff] %vm306_vm1, %v3389_v0  ;;  %338 = vst.msk [vmem:[#allocation3 + $0xf0] sm:$0xff] %vm306_vm1, %v3389_v0 }
  0x17   : > { %340 = vst.msk [vmem:[#allocation3 + $0x100] sm:$0xff] %vm306_vm1, %v3389_v0  ;;  %342 = vst.msk [vmem:[#allocation3 + $0x110] sm:$0xff] %vm306_vm1, %v3389_v0 }
  0x18   : > { %344 = vst.msk [vmem:[#allocation3 + $0x120] sm:$0xff] %vm306_vm1, %v3389_v0  ;;  %346 = vst.msk [vmem:[#allocation3 + $0x130] sm:$0xff] %vm306_vm1, %v3389_v0 }
  0x19   : > { %309 = vst.msk [vmem:[#allocation3 + $0x8] sm:$0x3] %vm308_vm2, %v3389_v0  ;;  %311 = vst.msk [vmem:[#allocation3 + $0x18] sm:$0x3] %vm308_vm2, %v3389_v0 }
  0x1a   : > { %313 = vst.msk [vmem:[#allocation3 + $0x28] sm:$0x3] %vm308_vm2, %v3389_v0  ;;  %315 = vst.msk [vmem:[#allocation3 + $0x38] sm:$0x3] %vm308_vm2, %v3389_v0 }
  0x1b   : > { %317 = vst.msk [vmem:[#allocation3 + $0x48] sm:$0x3] %vm308_vm2, %v3389_v0  ;;  %319 = vst.msk [vmem:[#allocation3 + $0x58] sm:$0x3] %vm308_vm2, %v3389_v0 }
  0x1c   : > { %321 = vst.msk [vmem:[#allocation3 + $0x68] sm:$0x3] %vm308_vm2, %v3389_v0  ;;  %323 = vst.msk [vmem:[#allocation3 + $0x78] sm:$0x3] %vm308_vm2, %v3389_v0 }
  0x1d   : > { %325 = vst.msk [vmem:[#allocation3 + $0x88] sm:$0x3] %vm308_vm2, %v3389_v0  ;;  %327 = vst.msk [vmem:[#allocation3 + $0x98] sm:$0x3] %vm308_vm2, %v3389_v0 }
  0x1e   : > { %329 = vst.msk [vmem:[#allocation3 + $0xa8] sm:$0x3] %vm308_vm2, %v3389_v0  ;;  %331 = vst.msk [vmem:[#allocation3 + $0xb8] sm:$0x3] %vm308_vm2, %v3389_v0 }
  0x1f   : > { %333 = vst.msk [vmem:[#allocation3 + $0xc8] sm:$0x3] %vm308_vm2, %v3389_v0  ;;  %335 = vst.msk [vmem:[#allocation3 + $0xd8] sm:$0x3] %vm308_vm2, %v3389_v0 }
  0x20   : > { %337 = vst.msk [vmem:[#allocation3 + $0xe8] sm:$0x3] %vm308_vm2, %v3389_v0  ;;  %339 = vst.msk [vmem:[#allocation3 + $0xf8] sm:$0x3] %vm308_vm2, %v3389_v0 }
  0x21   : > { %341 = vst.msk [vmem:[#allocation3 + $0x108] sm:$0x3] %vm308_vm2, %v3389_v0  ;;  %343 = vst.msk [vmem:[#allocation3 + $0x118] sm:$0x3] %vm308_vm2, %v3389_v0 }
  0x22   : > { %345 = vst.msk [vmem:[#allocation3 + $0x128] sm:$0x3] %vm308_vm2, %v3389_v0  ;;  %347 = vst.msk [vmem:[#allocation3 + $0x138] sm:$0x3] %vm308_vm2, %v3389_v0 }
  0x23   : > { %349 = vst.msk [vmem:[#allocation4] sm:$0xff] %vm348_vm3, %v3389_v0  ;;  %352 = vst.msk [vmem:[#allocation4 + $0x10] sm:$0xff] %vm348_vm3, %v3389_v0 }
  0x24   : > { %354 = vst.msk [vmem:[#allocation4 + $0x20] sm:$0xff] %vm348_vm3, %v3389_v0  ;;  %356 = vst.msk [vmem:[#allocation4 + $0x30] sm:$0xff] %vm348_vm3, %v3389_v0 }
  0x25   : > { %358 = vst.msk [vmem:[#allocation4 + $0x40] sm:$0xff] %vm348_vm3, %v3389_v0  ;;  %360 = vst.msk [vmem:[#allocation4 + $0x50] sm:$0xff] %vm348_vm3, %v3389_v0 }
  0x26   : > { %362 = vst.msk [vmem:[#allocation4 + $0x60] sm:$0xff] %vm348_vm3, %v3389_v0  ;;  %364 = vst.msk [vmem:[#allocation4 + $0x70] sm:$0xff] %vm348_vm3, %v3389_v0 }
  0x27   : > { %366 = vst.msk [vmem:[#allocation4 + $0x80] sm:$0xff] %vm348_vm3, %v3389_v0  ;;  %368 = vst.msk [vmem:[#allocation4 + $0x90] sm:$0xff] %vm348_vm3, %v3389_v0 }
  0x28   : > { %370 = vst.msk [vmem:[#allocation4 + $0xa0] sm:$0xff] %vm348_vm3, %v3389_v0  ;;  %372 = vst.msk [vmem:[#allocation4 + $0xb0] sm:$0xff] %vm348_vm3, %v3389_v0 }
  0x29   : > { %374 = vst.msk [vmem:[#allocation4 + $0xc0] sm:$0xff] %vm348_vm3, %v3389_v0  ;;  %376 = vst.msk [vmem:[#allocation4 + $0xd0] sm:$0xff] %vm348_vm3, %v3389_v0 }
  0x2a   : > { %378 = vst.msk [vmem:[#allocation4 + $0xe0] sm:$0xff] %vm348_vm3, %v3389_v0  ;;  %380 = vst.msk [vmem:[#allocation4 + $0xf0] sm:$0xff] %vm348_vm3, %v3389_v0 }
  0x2b   : > { %382 = vst.msk [vmem:[#allocation4 + $0x100] sm:$0xff] %vm348_vm3, %v3389_v0  ;;  %384 = vst.msk [vmem:[#allocation4 + $0x110] sm:$0xff] %vm348_vm3, %v3389_v0 }
  0x2c   : > { %386 = vst.msk [vmem:[#allocation4 + $0x120] sm:$0xff] %vm348_vm3, %v3389_v0  ;;  %388 = vst.msk [vmem:[#allocation4 + $0x130] sm:$0xff] %vm348_vm3, %v3389_v0 }
  0x2d   : > { %351 = vst.msk [vmem:[#allocation4 + $0x8] sm:$0x3] %vm350_vm4, %v3389_v0  ;;  %353 = vst.msk [vmem:[#allocation4 + $0x18] sm:$0x3] %vm350_vm4, %v3389_v0 }
  0x2e   : > { %355 = vst.msk [vmem:[#allocation4 + $0x28] sm:$0x3] %vm350_vm4, %v3389_v0  ;;  %357 = vst.msk [vmem:[#allocation4 + $0x38] sm:$0x3] %vm350_vm4, %v3389_v0 }
  0x2f   : > { %359 = vst.msk [vmem:[#allocation4 + $0x48] sm:$0x3] %vm350_vm4, %v3389_v0  ;;  %361 = vst.msk [vmem:[#allocation4 + $0x58] sm:$0x3] %vm350_vm4, %v3389_v0 }
  0x30   : > { %363 = vst.msk [vmem:[#allocation4 + $0x68] sm:$0x3] %vm350_vm4, %v3389_v0  ;;  %365 = vst.msk [vmem:[#allocation4 + $0x78] sm:$0x3] %vm350_vm4, %v3389_v0 }
  0x31   : > { %367 = vst.msk [vmem:[#allocation4 + $0x88] sm:$0x3] %vm350_vm4, %v3389_v0  ;;  %369 = vst.msk [vmem:[#allocation4 + $0x98] sm:$0x3] %vm350_vm4, %v3389_v0 }
  0x32   : > { %371 = vst.msk [vmem:[#allocation4 + $0xa8] sm:$0x3] %vm350_vm4, %v3389_v0  ;;  %373 = vst.msk [vmem:[#allocation4 + $0xb8] sm:$0x3] %vm350_vm4, %v3389_v0 }
  0x33   : > { %375 = vst.msk [vmem:[#allocation4 + $0xc8] sm:$0x3] %vm350_vm4, %v3389_v0  ;;  %377 = vst.msk [vmem:[#allocation4 + $0xd8] sm:$0x3] %vm350_vm4, %v3389_v0 }
  0x34   : > { %379 = vst.msk [vmem:[#allocation4 + $0xe8] sm:$0x3] %vm350_vm4, %v3389_v0  ;;  %381 = vst.msk [vmem:[#allocation4 + $0xf8] sm:$0x3] %vm350_vm4, %v3389_v0 }
  0x35   : > { %383 = vst.msk [vmem:[#allocation4 + $0x108] sm:$0x3] %vm350_vm4, %v3389_v0  ;;  %385 = vst.msk [vmem:[#allocation4 + $0x118] sm:$0x3] %vm350_vm4, %v3389_v0 }
  0x36   : > { %387 = vst.msk [vmem:[#allocation4 + $0x128] sm:$0x3] %vm350_vm4, %v3389_v0  ;;  %389 = vst.msk [vmem:[#allocation4 + $0x138] sm:$0x3] %vm350_vm4, %v3389_v0 }
  0x37 PF: > { %p3127_p5 = scmp.ne.s32.totalorder %s3379_s24, 0 }
  0x38   : > { %s3390_s21 = smov (!%p3127_p5), 124   ;;  %s3391_s15 = smov (!%p3127_p5), 4  }
  0x39   : > { %392 = sbr.rel (%p3127_p5) target bundleno = 776 (0x308), region = 56  ;;  %s3392_s16 = smov (!%p3127_p5), 8  }
  0x3a   : > { %s3394_s17 = smov (!%p3127_p5), 16   ;;  %s3395_s18 = smov (!%p3127_p5), 20  }
  0x3b   : > { %s3396_s19 = smov (!%p3127_p5), 24   ;;  %s3397_s10 = smov (!%p3127_p5), 28  }
  0x3c   : > { %s3398_s13 = smov (!%p3127_p5), 32  }
  0x3e   : > { %v393_v1 = vld [vmem:[%s4962_s0] sm:$0xff]  ;;  %v394_v2 = vld [vmem:[%s4962_s0 + $0x8] sm:$0xff]  ;;  %v395_v3 = vld [vmem:[%s4962_s0 + $0x10] sm:$0xff]  ;;  %vm522_vm5 = vcmask 31744   ;;  %vm1385_vm6 = vcmask 1043456   ;;  %vm1212_vm7 = vcmask 64512  }
  0x3f   : > { %v3642_v4 = vmax.f32 %v393_v1, %v394_v2  ;;  %v396_v5 = vld [vmem:[%s4962_s0 + $0x18] sm:$0xff]  ;;  %v397_v6 = vld [vmem:[%s4962_s0 + $0x20] sm:$0xff]  ;;  %v398_v7 = vld [vmem:[%s4962_s0 + $0x28] sm:$0xff]  ;;  %vm1229_vm8 = vcmask 97280   ;;  %vm1246_vm9 = vcmask 130048   ;;  %vm1263_vm10 = vcmask 162816  }
  0x40   : > { %v3653_v8 = vmax.f32 %v397_v6, %v398_v7  ;;  %v399_v9 = vld [vmem:[%s4962_s0 + $0x30] sm:$0xff]  ;;  %v400_v10 = vld [vmem:[%s4962_s0 + $0x38] sm:$0xff]  ;;  %v3663_v11 = vmax.f32 %v395_v3, %v396_v5  ;;  %v401_v13 = vld [vmem:[%s4962_s0 + $0x40] sm:$0xff]  ;;  %vm1280_vm11 = vcmask 195584   ;;  %vm1297_vm12 = vcmask 228352  }
  0x41   : > { %457 = vrot.lane.b32.xlu0 %v3642_v4, %s3390_s21  ;;  %v3667_v12 = vmax.f32 %v399_v9, %v400_v10  ;;  %v402_v14 = vld [vmem:[%s4962_s0 + $0x48] sm:$0xff]  ;;  %v403_v15 = vld [vmem:[%s4962_s0 + $0x50] sm:$0xff]  ;;  %v404_v16 = vld [vmem:[%s4962_s0 + $0x58] sm:$0xff]  ;;  %vm1314_vm13 = vcmask 261120   ;;  %vm1336_vm14 = vcmask 293888   ;;  %vm1592_vm15 = vcmask 57344  }
  0x42   : > { %461 = vrot.lane.b32.xlu1 %v3653_v8, %s3390_s21  ;;  %v3683_v17 = vmax.f32 %v401_v13, %v402_v14  ;;  %v3687_v18 = vmax.f32 %v403_v15, %v404_v16  ;;  %v405_v19 = vld [vmem:[%s4962_s0 + $0x60] sm:$0xff]  ;;  %v406_v20 = vld [vmem:[%s4962_s0 + $0x68] sm:$0xff]  ;;  %v407_v21 = vld [vmem:[%s4962_s0 + $0x70] sm:$0xff] }
  0x43   : > { %v408_v22 = vld [vmem:[%s4962_s0 + $0x78] sm:$0xff]  ;;  %v3703_v23 = vmax.f32 %v405_v19, %v406_v20  ;;  %v409_v25 = vld [vmem:[%s4962_s0 + $0x80] sm:$0xff]  ;;  %v410_v26 = vld [vmem:[%s4962_s0 + $0x88] sm:$0xff] }
  0x44   : > { %v3707_v24 = vmax.f32 %v407_v21, %v408_v22  ;;  %v411_v27 = vld [vmem:[%s4962_s0 + $0x90] sm:$0xff]  ;;  %v412_v28 = vld [vmem:[%s4962_s0 + $0x98] sm:$0xff]  ;;  %v3723_v29 = vmax.f32 %v409_v25, %v410_v26  ;;  %v413_v30 = vld [vmem:[%s4962_s0 + $0xa0] sm:$0xff] }
  0x45   : > { %459 = vrot.lane.b32.xlu0 %v3663_v11, %s3390_s21  ;;  %v414_v31 = vld [vmem:[%s4962_s0 + $0xa8] sm:$0xff]  ;;  %v3733_v32 = vmax.f32 %v411_v27, %v412_v28  ;;  %v415_v33 = vld [vmem:[%s4962_s0 + $0xb0] sm:$0xff]  ;;  %v416_v34 = vld [vmem:[%s4962_s0 + $0xb8] sm:$0xff] }
  0x46   : > { %463 = vrot.lane.b32.xlu1 %v3667_v12, %s3390_s21  ;;  %v3743_v35 = vmax.f32 %v413_v30, %v414_v31  ;;  %v417_v36 = vld [vmem:[%s4962_s0 + $0xc0] sm:$0xff]  ;;  %v418_v37 = vld [vmem:[%s4962_s0 + $0xc8] sm:$0xff]  ;;  %v3753_v38 = vmax.f32 %v415_v33, %v416_v34  ;;  %v419_v39 = vld [vmem:[%s4962_s0 + $0xd0] sm:$0xff] }
  0x47   : > { %v420_v40 = vld [vmem:[%s4962_s0 + $0xd8] sm:$0xff]  ;;  %v3763_v41 = vmax.f32 %v417_v36, %v418_v37  ;;  %v421_v42 = vld [vmem:[%s4962_s0 + $0xe0] sm:$0xff]  ;;  %v422_v43 = vld [vmem:[%s4962_s0 + $0xe8] sm:$0xff] }
  0x48   : > { %v3773_v44 = vmax.f32 %v419_v39, %v420_v40  ;;  %v423_v45 = vld [vmem:[%s4962_s0 + $0xf0] sm:$0xff]  ;;  %v424_v46 = vld [vmem:[%s4962_s0 + $0xf8] sm:$0xff]  ;;  %v3783_v47 = vmax.f32 %v421_v42, %v422_v43  ;;  %v555_v49 = vld [vmem:[#allocation3 + $0x1] sm:$0xff] }
  0x49   : > { %465 = vrot.lane.b32.xlu0 %v3683_v17, %s3390_s21  ;;  %v3787_v48 = vmax.f32 %v423_v45, %v424_v46  ;;  %v571_v50 = vld [vmem:[#allocation3 + $0x2] sm:$0xff]  ;;  %v1334_v30 = vld [vmem:[%s4963_s1 + $0x18] sm:$0xff]  ;;  %v1333_v31 = vld [vmem:[%s4963_s1 + $0x10] sm:$0xff] }
  0x4a   : > { %467 = vrot.lane.b32.xlu1 %v3687_v18, %s3390_s21  ;;  %v1335_v28 = vld [vmem:[%s4963_s1 + $0x20] sm:$0xf] }
  0x4b   : > { %3214 = vmatprep.subr.msk.mxu0 %vm1385_vm6, %v1335_v28  ;;  %3290 = vmatprep.subr.msk.mxu1 %vm1385_vm6, %v1335_v28  ;;  %v1331_v34 = vld [vmem:[%s4963_s1] sm:$0xff] }
  0x4c   : > { %3215 = vmatpush3.msk.msra.mxu0 %vm1385_vm6, %v1335_v28  ;;  %3295 = vmatpush3.msk.msra.mxu1 %vm1385_vm6, %v1335_v28  ;;  %v563_v46 = vld [vmem:[#allocation3 + $0xa1] sm:$0xff] }
  0x4d   : > { %469 = vrot.lane.b32.xlu0 %v3703_v23, %s3390_s21  ;;  %3216 = vmatprep.subr.mxu0 %v1334_v30 }
  0x4e   : > { %471 = vrot.lane.b32.xlu1 %v3707_v24, %s3390_s21  ;;  %3291 = vmatprep.subr.mxu1 %v1334_v30 }
  0x4f   : > { %3217 = vmatpush3.msra.mxu0 %v1334_v30  ;;  %3296 = vmatpush3.msra.mxu1 %v1334_v30 }
  0x50   : > { %3218 = vmatprep.subr.mxu0 %v1333_v31  ;;  %3292 = vmatprep.subr.mxu1 %v1333_v31 }
  0x51   : > { %473 = vrot.lane.b32.xlu0 %v3723_v29, %s3390_s21  ;;  %3219 = vmatpush3.msra.mxu0 %v1333_v31 }
  0x52   : > { %475 = vrot.lane.b32.xlu1 %v3733_v32, %s3390_s21  ;;  %3297 = vmatpush3.msra.mxu1 %v1333_v31 }
  0x55   : > { %477 = vrot.lane.b32.xlu0 %v3743_v35, %s3390_s21 }
  0x56   : > { %479 = vrot.lane.b32.xlu1 %v3753_v38, %s3390_s21 }
  0x59   : > { %481 = vrot.lane.b32.xlu0 %v3763_v41, %s3390_s21 }
  0x5a   : > { %483 = vrot.lane.b32.xlu1 %v3773_v44, %s3390_s21 }
  0x5d   : > { %485 = vrot.lane.b32.xlu0 %v3783_v47, %s3390_s21 }
  0x5e   : > { %487 = vrot.lane.b32.xlu1 %v3787_v48, %s3390_s21  ;;  %s3393_s21 = smov 12  }
  0x61   : > { %700 = vrot.lane.b32.xlu0 %v555_v49, %s3391_s15 }
  0x65   : > { %764 = vrot.lane.b32.xlu0 %v571_v50, %s3392_s16 }
  0xb3   : > { %v458_v51 = vpop.permute.xlu0 %457 }
  0xb4   : > { %v505_v52 = vmax.f32 %v3642_v4, %v458_v51  ;;  %v462_v53 = vpop.permute.xlu1 %461 }
  0xb5   : > { %v507_v54 = vmax.f32 %v3653_v8, %v462_v53 }
  0xb6   : > { %523 = vst.msk [vmem:[#allocation3 + $0x11] sm:$0xff] %vm522_vm5, %v505_v52  ;;  %v579_v52 = vld [vmem:[#allocation3 + $0xa2] sm:$0xff] }
  0xb7   : > { %v460_v55 = vpop.permute.xlu0 %459  ;;  %525 = vst.msk [vmem:[#allocation3 + $0x31] sm:$0xff] %vm522_vm5, %v507_v54 }
  0xb8   : > { %v506_v56 = vmax.f32 %v3663_v11, %v460_v55  ;;  %v464_v57 = vpop.permute.xlu1 %463 }
  0xb9   : > { %v508_v58 = vmax.f32 %v3667_v12, %v464_v57 }
  0xba   : > { %524 = vst.msk [vmem:[#allocation3 + $0x21] sm:$0xff] %vm522_vm5, %v506_v56  ;;  %v643_v56 = vld [vmem:[#allocation3 + $0x90] sm:$0xff] }
  0xbb   : > { %526 = vst.msk [vmem:[#allocation3 + $0x41] sm:$0xff] %vm522_vm5, %v508_v58  ;;  %v466_v59 = vpop.permute.xlu0 %465 }
  0xbc   : > { %v509_v60 = vmax.f32 %v3683_v17, %v466_v59  ;;  %v468_v61 = vpop.permute.xlu1 %467 }
  0xbd   : > { %v3804_v62 = vld [vmem:[#allocation3 + $0x10] sm:$0xff]  ;;  %v510_v0 = vmax.f32 %v3687_v18, %v468_v61 }
  0xbe   : > { %v556_v63 = vld [vmem:[#allocation3 + $0x11] sm:$0xff]  ;;  %828 = vrot.lane.b32.xlu0 %v3804_v62, %s3393_s21  ;;  %527 = vst.msk [vmem:[#allocation3 + $0x51] sm:$0xff] %vm522_vm5, %v509_v60 }
  0xbf   : > { %702 = vrot.lane.b32.xlu1 %v556_v63, %s3391_s15  ;;  %528 = vst.msk [vmem:[#allocation3 + $0x61] sm:$0xff] %vm522_vm5, %v510_v0  ;;  %v470_v1 = vpop.permute.xlu0 %469  ;;  %v572_v4 = vld [vmem:[#allocation3 + $0x12] sm:$0xff] }
  0xc0   : > { %v511_v2 = vmax.f32 %v3703_v23, %v470_v1  ;;  %v472_v3 = vpop.permute.xlu1 %471  ;;  %v558_v12 = vld [vmem:[#allocation3 + $0x31] sm:$0xff] }
  0xc1   : > { %v512_v5 = vmax.f32 %v3707_v24, %v472_v3  ;;  %v604_v6 = vld [vmem:[#allocation3 + $0x21] sm:$0xff]  ;;  %v574_v22 = vld [vmem:[#allocation3 + $0x32] sm:$0xff] }
  0xc2   : > { %892 = vrot.lane.b32.xlu0 %v556_v63, %s3394_s17  ;;  %529 = vst.msk [vmem:[#allocation3 + $0x71] sm:$0xff] %vm522_vm5, %v511_v2  ;;  %v3817_v7 = vld [vmem:[#allocation3 + $0x20] sm:$0xff]  ;;  %v3845_v27 = vld [vmem:[#allocation3 + $0x30] sm:$0xff] }
  0xc3   : > { %766 = vrot.lane.b32.xlu1 %v572_v4, %s3392_s16  ;;  %530 = vst.msk [vmem:[#allocation3 + $0x81] sm:$0xff] %vm522_vm5, %v512_v5  ;;  %v474_v8 = vpop.permute.xlu0 %473  ;;  %v620_v20 = vld [vmem:[#allocation3 + $0x22] sm:$0xff]  ;;  %v659_v0 = vld [vmem:[#allocation3 + $0x91] sm:$0xff] }
  0xc4   : > { %v513_v9 = vmax.f32 %v3723_v29, %v474_v8  ;;  %v476_v10 = vpop.permute.xlu1 %475  ;;  %v3854_v29 = vld [vmem:[#allocation3 + $0x40] sm:$0xff] }
  0xc5   : > { %v514_v11 = vmax.f32 %v3733_v32, %v476_v10  ;;  %v1332_v32 = vld [vmem:[%s4963_s1 + $0x8] sm:$0xff]  ;;  %v576_v37 = vld [vmem:[#allocation3 + $0x52] sm:$0xff] }
  0xc6   : > { %894 = vrot.lane.b32.xlu0 %v604_v6, %s3394_s17  ;;  %531 = vst.msk [vmem:[#allocation3 + $0xb1] sm:$0xff] %vm522_vm5, %v513_v9  ;;  %v559_v33 = vld [vmem:[#allocation3 + $0x41] sm:$0xff]  ;;  %3220 = vmatprep.subr.mxu0 %v1332_v32 }
  0xc7   : > { %830 = vrot.lane.b32.xlu1 %v3817_v7, %s3393_s21  ;;  %v478_v13 = vpop.permute.xlu0 %477  ;;  %532 = vst.msk [vmem:[#allocation3 + $0xc1] sm:$0xff] %vm522_vm5, %v514_v11  ;;  %3293 = vmatprep.subr.mxu1 %v1332_v32  ;;  %v622_v36 = vld [vmem:[#allocation3 + $0x42] sm:$0xff] }
  0xc8   : > { %v515_v14 = vmax.f32 %v3743_v35, %v478_v13  ;;  %v480_v15 = vpop.permute.xlu1 %479  ;;  %3221 = vmatpush3.msra.mxu0 %v1332_v32  ;;  %3298 = vmatpush3.msra.mxu1 %v1332_v32  ;;  %v560_v35 = vld [vmem:[#allocation3 + $0x51] sm:$0xff]  ;;  %v3890_v39 = vld [vmem:[#allocation3 + $0x60] sm:$0xff] }
  0xc9   : > { %v516_v16 = vmax.f32 %v3753_v38, %v480_v15  ;;  %3222 = vmatprep.subr.mxu0 %v1331_v34  ;;  %3294 = vmatprep.subr.mxu1 %v1331_v34  ;;  %v3884_v38 = vld [vmem:[#allocation3 + $0x50] sm:$0xff]  ;;  %v561_v40 = vld [vmem:[#allocation3 + $0x61] sm:$0xff] }
  0xca   : > { %706 = vrot.lane.b32.xlu0 %v558_v12, %s3391_s15  ;;  %533 = vst.msk [vmem:[#allocation3 + $0xd1] sm:$0xff] %vm522_vm5, %v515_v14  ;;  %3223 = vmatpush3.msra.mxu0 %v1331_v34  ;;  %v624_v42 = vld [vmem:[#allocation3 + $0x62] sm:$0xff]  ;;  %v578_v43 = vld [vmem:[#allocation3 + $0x72] sm:$0xff] }
  0xcb   : > { %704 = vrot.lane.b32.xlu1 %v604_v6, %s3391_s15  ;;  %v482_v17 = vpop.permute.xlu0 %481  ;;  %534 = vst.msk [vmem:[#allocation3 + $0xe1] sm:$0xff] %vm522_vm5, %v516_v16  ;;  %3299 = vmatpush3.msra.mxu1 %v1331_v34  ;;  %v594_v45 = vld [vmem:[#allocation3 + $0x80] sm:$0xff]  ;;  %v675_v13 = vld [vmem:[#allocation3 + $0x92] sm:$0xff] }
  0xcc   : > { %v517_v18 = vmax.f32 %v3763_v41, %v482_v17  ;;  %v484_v19 = vpop.permute.xlu1 %483  ;;  %v562_v41 = vld [vmem:[#allocation3 + $0x71] sm:$0xff]  ;;  %v610_v49 = vld [vmem:[#allocation3 + $0x81] sm:$0xff] }
  0xcd   : > { %v518_v21 = vmax.f32 %v3773_v44, %v484_v19  ;;  %v3908_v44 = vld [vmem:[#allocation3 + $0x70] sm:$0xff]  ;;  %v626_v51 = vld [vmem:[#allocation3 + $0x82] sm:$0xff] }
  0xce   : > { %958 = vrot.lane.b32.xlu0 %v620_v20, %s3395_s18  ;;  %535 = vst.msk [vmem:[#allocation3 + $0xf1] sm:$0xff] %vm522_vm5, %v517_v18  ;;  %v580_v55 = vld [vmem:[#allocation3 + $0xb2] sm:$0xff]  ;;  %v3941_v63 = vld [vmem:[#allocation3 + $0xc0] sm:$0xff] }
  0xcf   : > { %956 = vrot.lane.b32.xlu1 %v572_v4, %s3395_s18  ;;  %v486_v23 = vpop.permute.xlu0 %485  ;;  %536 = vst.msk [vmem:[#allocation3 + $0x101] sm:$0xff] %vm522_vm5, %v518_v21  ;;  %v3939_v61 = vld [vmem:[#allocation3 + $0xb0] sm:$0xff]  ;;  %v565_v5 = vld [vmem:[#allocation3 + $0xc1] sm:$0xff] }
  0xd0   : > { %v519_v24 = vmax.f32 %v3783_v47, %v486_v23  ;;  %v488_v25 = vpop.permute.xlu1 %487  ;;  %v628_v16 = vld [vmem:[#allocation3 + $0xc2] sm:$0xff] }
  0xd1   : > { %v520_v26 = vmax.f32 %v3787_v48, %v488_v25  ;;  %v564_v48 = vld [vmem:[#allocation3 + $0xb1] sm:$0xff] }
  0xd2   : > { %770 = vrot.lane.b32.xlu0 %v574_v22, %s3392_s16  ;;  %537 = vst.msk [vmem:[#allocation3 + $0x111] sm:$0xff] %vm522_vm5, %v519_v24  ;;  %v566_v11 = vld [vmem:[#allocation3 + $0xd1] sm:$0xff] }
  0xd3   : > { %768 = vrot.lane.b32.xlu1 %v620_v20, %s3392_s16  ;;  %538 = vst.msk [vmem:[#allocation3 + $0x121] sm:$0xff] %vm522_vm5, %v520_v26  ;;  %v701_v47 = vpop.permute.xlu0 %700  ;;  %v582_v21 = vld [vmem:[#allocation3 + $0xd2] sm:$0xff] }
  0xd4   : > { %v3977_v26 = vld [vmem:[#allocation3 + $0xd0] sm:$0xff] }
  0xd6   : > { %1022 = vrot.lane.b32.xlu0 %v3845_v27, %s3396_s19 }
  0xd7   : > { %1020 = vrot.lane.b32.xlu1 %v3817_v7, %s3396_s19  ;;  %v765_v50 = vpop.permute.xlu0 %764 }
  0xda   : > { %834 = vrot.lane.b32.xlu0 %v3854_v29, %s3393_s21 }
  0xdb   : > { %832 = vrot.lane.b32.xlu1 %v3845_v27, %s3393_s21 }
  0xde   : > { %1086 = vrot.lane.b32.xlu0 %v558_v12, %s3397_s10 }
  0xdf   : > { %1084 = vrot.lane.b32.xlu1 %v604_v6, %s3397_s10 }
  0xe2   : > { %708 = vrot.lane.b32.xlu0 %v559_v33, %s3391_s15 }
  0xe3   : > { %896 = vrot.lane.b32.xlu1 %v558_v12, %s3394_s17  ;;  %v539_v12 = vld [vmem:[#allocation3] sm:$0xff] }
  0xe4   : > { %v1196_v17 = vsel %vm522_vm5, %v539_v12, %v701_v47  ;;  %v4040_v12 = vld [vmem:[#allocation3 + $0xf0] sm:$0xff] }
  0xe6   : > { %960 = vrot.lane.b32.xlu0 %v574_v22, %s3395_s18 }
  0xe7   : > { %1148 = vrot.lane.b32.xlu1 %v620_v20, %s3398_s13  ;;  %v1213_v20 = vsel %vm1212_vm7, %v1196_v17, %v765_v50  ;;  %v567_v50 = vld [vmem:[#allocation3 + $0xe1] sm:$0xff] }
  0xe8   : > { %v4050_v17 = vld [vmem:[#allocation3 + $0x100] sm:$0xff] }
  0xea   : > { %710 = vrot.lane.b32.xlu0 %v560_v35, %s3391_s15 }
  0xeb   : > { %898 = vrot.lane.b32.xlu1 %v559_v33, %s3394_s17 }
  0xee   : > { %962 = vrot.lane.b32.xlu0 %v622_v36, %s3395_s18 }
  0xef   : > { %1150 = vrot.lane.b32.xlu1 %v574_v22, %s3398_s13 }
  0xf2   : > { %774 = vrot.lane.b32.xlu0 %v576_v37, %s3392_s16 }
  0xf3   : > { %772 = vrot.lane.b32.xlu1 %v622_v36, %s3392_s16 }
  0xf6   : > { %1026 = vrot.lane.b32.xlu0 %v3884_v38, %s3396_s19 }
  0xf7   : > { %1024 = vrot.lane.b32.xlu1 %v3854_v29, %s3396_s19 }
  0xfa   : > { %838 = vrot.lane.b32.xlu0 %v3890_v39, %s3393_s21 }
  0xfb   : > { %836 = vrot.lane.b32.xlu1 %v3884_v38, %s3393_s21 }
  0xfe   : > { %1090 = vrot.lane.b32.xlu0 %v560_v35, %s3397_s10 }
  0xff   : > { %1088 = vrot.lane.b32.xlu1 %v559_v33, %s3397_s10 }
 0x102   : > { %712 = vrot.lane.b32.xlu0 %v561_v40, %s3391_s15 }
 0x103   : > { %900 = vrot.lane.b32.xlu1 %v560_v35, %s3394_s17 }
 0x106   : > { %964 = vrot.lane.b32.xlu0 %v576_v37, %s3395_s18 }
 0x107   : > { %1152 = vrot.lane.b32.xlu1 %v622_v36, %s3398_s13  ;;  %v3991_v36 = vld [vmem:[#allocation3 + $0xe0] sm:$0xff] }
 0x10a   : > { %714 = vrot.lane.b32.xlu0 %v562_v41, %s3391_s15 }
 0x10b   : > { %902 = vrot.lane.b32.xlu1 %v561_v40, %s3394_s17 }
 0x10e   : > { %966 = vrot.lane.b32.xlu0 %v624_v42, %s3395_s18 }
 0x10f   : > { %1154 = vrot.lane.b32.xlu1 %v576_v37, %s3398_s13 }
 0x112   : > { %778 = vrot.lane.b32.xlu0 %v578_v43, %s3392_s16 }
 0x113   : > { %776 = vrot.lane.b32.xlu1 %v624_v42, %s3392_s16 }
 0x116   : > { %1030 = vrot.lane.b32.xlu0 %v3908_v44, %s3396_s19 }
 0x117   : > { %1028 = vrot.lane.b32.xlu1 %v3890_v39, %s3396_s19 }
 0x11a   : > { %842 = vrot.lane.b32.xlu0 %v594_v45, %s3393_s21 }
 0x11b   : > { %840 = vrot.lane.b32.xlu1 %v3908_v44, %s3393_s21 }
 0x11e   : > { %1094 = vrot.lane.b32.xlu0 %v562_v41, %s3397_s10 }
 0x11f   : > { %1092 = vrot.lane.b32.xlu1 %v561_v40, %s3397_s10 }
 0x122   : > { %716 = vrot.lane.b32.xlu0 %v563_v46, %s3391_s15 }
 0x123   : > { %904 = vrot.lane.b32.xlu1 %v562_v41, %s3394_s17 }
 0x126   : > { %968 = vrot.lane.b32.xlu0 %v578_v43, %s3395_s18 }
 0x127   : > { %1156 = vrot.lane.b32.xlu1 %v624_v42, %s3398_s13 }
 0x12a   : > { %718 = vrot.lane.b32.xlu0 %v564_v48, %s3391_s15 }
 0x12b   : > { %906 = vrot.lane.b32.xlu1 %v610_v49, %s3394_s17 }
 0x12e   : > { %970 = vrot.lane.b32.xlu0 %v626_v51, %s3395_s18 }
 0x12f   : > { %1158 = vrot.lane.b32.xlu1 %v578_v43, %s3398_s13 }
 0x130   : > { %v829_v54 = vpop.permute.xlu0 %828 }
 0x131   : > { %v3927_v53 = vpop.permute.xlu1 %702  ;;  %v1230_v22 = vsel %vm1229_vm8, %v1213_v20, %v829_v54 }
 0x132   : > { %782 = vrot.lane.b32.xlu0 %v580_v55, %s3392_s16  ;;  %v1197_v31 = vsel %vm522_vm5, %v3804_v62, %v3927_v53 }
 0x133   : > { %780 = vrot.lane.b32.xlu1 %v579_v52, %s3392_s16 }
 0x134   : > { %v893_v58 = vpop.permute.xlu0 %892 }
 0x135   : > { %v3931_v57 = vpop.permute.xlu1 %766  ;;  %v1247_v25 = vsel %vm1246_vm9, %v1230_v22, %v893_v58  ;;  %v630_v58 = vld [vmem:[#allocation3 + $0xe2] sm:$0xff] }
 0x136   : > { %1034 = vrot.lane.b32.xlu0 %v643_v56, %s3396_s19  ;;  %v1214_v35 = vsel %vm1212_vm7, %v1197_v31, %v3931_v57 }
 0x137   : > { %1032 = vrot.lane.b32.xlu1 %v594_v45, %s3396_s19 }
 0x138   : > { %v3937_v60 = vpop.permute.xlu0 %894 }
 0x139   : > { %v3935_v59 = vpop.permute.xlu1 %830 }
 0x13a   : > { %846 = vrot.lane.b32.xlu0 %v3941_v63, %s3393_s21  ;;  %v1231_v40 = vsel %vm1229_vm8, %v1214_v35, %v3935_v59  ;;  %v570_v35 = vld [vmem:[#allocation3 + $0x111] sm:$0xff] }
 0x13b   : > { %844 = vrot.lane.b32.xlu1 %v3939_v61, %s3393_s21  ;;  %v1248_v42 = vsel %vm1246_vm9, %v1231_v40, %v3937_v60 }
 0x13c   : > { %v3949_v2 = vpop.permute.xlu0 %706 }
 0x13d   : > { %v3947_v1 = vpop.permute.xlu1 %704 }
 0x13e   : > { %1098 = vrot.lane.b32.xlu0 %v659_v0, %s3397_s10  ;;  %v584_v0 = vld [vmem:[#allocation3 + $0xf2] sm:$0xff] }
 0x13f   : > { %1096 = vrot.lane.b32.xlu1 %v610_v49, %s3397_s10 }
 0x140   : > { %v959_v4 = vpop.permute.xlu0 %958 }
 0x141   : > { %v957_v3 = vpop.permute.xlu1 %956  ;;  %v1265_v43 = vsel %vm1263_vm10, %v1248_v42, %v959_v4 }
 0x142   : > { %720 = vrot.lane.b32.xlu0 %v565_v5, %s3391_s15  ;;  %v1264_v28 = vsel %vm1263_vm10, %v1247_v25, %v957_v3  ;;  %v1198_v3 = vsel %vm522_vm5, %v3817_v7, %v3947_v1 }
 0x143   : > { %908 = vrot.lane.b32.xlu1 %v564_v48, %s3394_s17 }
 0x144   : > { %v3957_v8 = vpop.permute.xlu0 %770 }
 0x145   : > { %v3955_v6 = vpop.permute.xlu1 %768 }
 0x146   : > { %972 = vrot.lane.b32.xlu0 %v580_v55, %s3395_s18  ;;  %v568_v55 = vld [vmem:[#allocation3 + $0xf1] sm:$0xff]  ;;  %v1215_v4 = vsel %vm1212_vm7, %v1198_v3, %v3955_v6 }
 0x147   : > { %1160 = vrot.lane.b32.xlu1 %v626_v51, %s3398_s13 }
 0x148   : > { %v1023_v10 = vpop.permute.xlu0 %1022 }
 0x149   : > { %v1021_v9 = vpop.permute.xlu1 %1020  ;;  %v1282_v45 = vsel %vm1280_vm11, %v1265_v43, %v1023_v10 }
 0x14a   : > { %722 = vrot.lane.b32.xlu0 %v566_v11, %s3391_s15  ;;  %v1281_v30 = vsel %vm1280_vm11, %v1264_v28, %v1021_v9 }
 0x14b   : > { %910 = vrot.lane.b32.xlu1 %v565_v5, %s3394_s17 }
 0x14c   : > { %v3965_v15 = vpop.permute.xlu0 %834 }
 0x14d   : > { %v3963_v14 = vpop.permute.xlu1 %832 }
 0x14e   : > { %974 = vrot.lane.b32.xlu0 %v628_v16, %s3395_s18 }
 0x14f   : > { %1162 = vrot.lane.b32.xlu1 %v675_v13, %s3398_s13 }
 0x150   : > { %v1087_v19 = vpop.permute.xlu0 %1086 }
 0x151   : > { %v1085_v18 = vpop.permute.xlu1 %1084  ;;  %v1299_v46 = vsel %vm1297_vm12, %v1282_v45, %v1087_v19  ;;  %v586_v45 = vld [vmem:[#allocation3 + $0x112] sm:$0xff] }
 0x152   : > { %786 = vrot.lane.b32.xlu0 %v582_v21, %s3392_s16  ;;  %v1298_v32 = vsel %vm1297_vm12, %v1281_v30, %v1085_v18  ;;  %v1199_v18 = vsel %vm522_vm5, %v3845_v27, %v3949_v2 }
 0x153   : > { %784 = vrot.lane.b32.xlu1 %v628_v16, %s3392_s16  ;;  %v1216_v19 = vsel %vm1212_vm7, %v1199_v18, %v3957_v8 }
 0x154   : > { %v3974_v24 = vpop.permute.xlu0 %708  ;;  %v1233_v20 = vsel %vm1229_vm8, %v1216_v19, %v3965_v15  ;;  %v569_v15 = vld [vmem:[#allocation3 + $0x101] sm:$0xff] }
 0x155   : > { %v897_v23 = vpop.permute.xlu1 %896 }
 0x156   : > { %1038 = vrot.lane.b32.xlu0 %v3977_v26, %s3396_s19 }
 0x157   : > { %1036 = vrot.lane.b32.xlu1 %v3941_v63, %s3396_s19 }
 0x158   : > { %v961_v34 = vpop.permute.xlu0 %960 }
 0x159   : > { %v1149_v33 = vpop.permute.xlu1 %1148 }
 0x15a   : > { %v1315_v37 = vsel %vm1314_vm13, %v1298_v32, %v1149_v33  ;;  %850 = vrot.lane.b32.xlu0 %v3991_v36, %s3393_s21 }
 0x15b   : > { %848 = vrot.lane.b32.xlu1 %v3977_v26, %s3393_s21  ;;  %3224 = vmatprep.mubr.msk.f32.mxu0 %vm1336_vm14, %v1315_v37 }
 0x15c   : > { %v4001_v41 = vpop.permute.xlu0 %710 }
 0x15d   : > { %v899_v62 = vpop.permute.xlu1 %898 }
 0x15e   : > { %1102 = vrot.lane.b32.xlu0 %v566_v11, %s3397_s10 }
 0x15f   : > { %1100 = vrot.lane.b32.xlu1 %v565_v5, %s3397_s10  ;;  %v1232_v5 = vsel %vm1229_vm8, %v1215_v4, %v3963_v14 }
 0x160   : > { %v963_v48 = vpop.permute.xlu0 %962 }
 0x161   : > { %v1151_v47 = vpop.permute.xlu1 %1150 }
 0x162   : > { %v1316_v49 = vsel %vm1314_vm13, %v1299_v46, %v1151_v47  ;;  %724 = vrot.lane.b32.xlu0 %v567_v50, %s3391_s15  ;;  %v1200_v46 = vsel %vm522_vm5, %v3854_v29, %v3974_v24 }
 0x163   : > { %912 = vrot.lane.b32.xlu1 %v566_v11, %s3394_s17  ;;  %3225 = vmatmul.mubr.msk.f32.vlgmr.msra.gmra.mxu0 %vm1336_vm14, %v1316_v49  ;;  %v1249_v11 = vsel %vm1246_vm9, %v1232_v5, %v897_v23  ;;  %v1250_v23 = vsel %vm1246_vm9, %v1233_v20, %v899_v62  ;;  %v632_v62 = vld [vmem:[#allocation3 + $0x102] sm:$0xff] }
 0x164   : > { %v4016_v52 = vpop.permute.xlu0 %774  ;;  %v1266_v13 = vsel %vm1263_vm10, %v1249_v11, %v961_v34  ;;  %v1267_v27 = vsel %vm1263_vm10, %v1250_v23, %v963_v48  ;;  %v634_v20 = vld [vmem:[#allocation3 + $0x122] sm:$0xff] }
 0x165   : > { %v4014_v51 = vpop.permute.xlu1 %772 }
 0x166   : > { %976 = vrot.lane.b32.xlu0 %v582_v21, %s3395_s18  ;;  %v1217_v47 = vsel %vm1212_vm7, %v1200_v46, %v4014_v51 }
 0x167   : > { %1164 = vrot.lane.b32.xlu1 %v628_v16, %s3398_s13 }
 0x168   : > { %v1027_v54 = vpop.permute.xlu0 %1026 }
 0x169   : > { %v1025_v53 = vpop.permute.xlu1 %1024  ;;  %v1284_v2 = vsel %vm1280_vm11, %v1267_v27, %v1027_v54  ;;  %v4102_v54 = vld [vmem:[#allocation3 + $0x110] sm:$0xff] }
 0x16a   : > { %726 = vrot.lane.b32.xlu0 %v568_v55, %s3391_s15  ;;  %v1283_v7 = vsel %vm1280_vm11, %v1266_v13, %v1025_v53 }
 0x16b   : > { %914 = vrot.lane.b32.xlu1 %v567_v50, %s3394_s17 }
 0x16c   : > { %v4024_v57 = vpop.permute.xlu0 %838 }
 0x16d   : > { %v4022_v56 = vpop.permute.xlu1 %836 }
 0x16e   : > { %978 = vrot.lane.b32.xlu0 %v630_v58, %s3395_s18  ;;  %v1234_v48 = vsel %vm1229_vm8, %v1217_v47, %v4022_v56 }
 0x16f   : > { %1166 = vrot.lane.b32.xlu1 %v582_v21, %s3398_s13 }
 0x170   : > { %v1091_v60 = vpop.permute.xlu0 %1090 }
 0x171   : > { %v1089_v59 = vpop.permute.xlu1 %1088  ;;  %v1301_v8 = vsel %vm1297_vm12, %v1284_v2, %v1091_v60  ;;  %v1201_v60 = vsel %vm522_vm5, %v3884_v38, %v4001_v41 }
 0x172   : > { %790 = vrot.lane.b32.xlu0 %v584_v0, %s3392_s16  ;;  %v1300_v1 = vsel %vm1297_vm12, %v1283_v7, %v1089_v59  ;;  %v602_v59 = vld [vmem:[#allocation3 + $0x120] sm:$0xff] }
 0x173   : > { %788 = vrot.lane.b32.xlu1 %v630_v58, %s3392_s16 }
 0x174   : > { %v4037_v10 = vpop.permute.xlu0 %712 }
 0x175   : > { %v901_v9 = vpop.permute.xlu1 %900  ;;  %v1202_v2 = vsel %vm522_vm5, %v3890_v39, %v4037_v10  ;;  %v683_v10 = vld [vmem:[#allocation3 + $0x132] sm:$0xff] }
 0x176   : > { %1042 = vrot.lane.b32.xlu0 %v4040_v12, %s3396_s19  ;;  %v1251_v53 = vsel %vm1246_vm9, %v1234_v48, %v901_v9 }
 0x177   : > { %1040 = vrot.lane.b32.xlu1 %v3991_v36, %s3396_s19 }
 0x178   : > { %v965_v14 = vpop.permute.xlu0 %964 }
 0x179   : > { %v1153_v6 = vpop.permute.xlu1 %1152 }
 0x17a   : > { %v1317_v16 = vsel %vm1314_vm13, %v1300_v1, %v1153_v6  ;;  %854 = vrot.lane.b32.xlu0 %v4050_v17, %s3393_s21 }
 0x17b   : > { %852 = vrot.lane.b32.xlu1 %v4040_v12, %s3393_s21  ;;  %3227 = vmatprep.mubr.msk.f32.mxu0 %vm1336_vm14, %v1317_v16 }
 0x17c   : > { %v4064_v22 = vpop.permute.xlu0 %714 }
 0x17d   : > { %v903_v21 = vpop.permute.xlu1 %902 }
 0x17e   : > { %1106 = vrot.lane.b32.xlu0 %v568_v55, %s3397_s10 }
 0x17f   : > { %1104 = vrot.lane.b32.xlu1 %v567_v50, %s3397_s10 }
 0x180   : > { %v967_v28 = vpop.permute.xlu0 %966 }
 0x181   : > { %v1155_v25 = vpop.permute.xlu1 %1154 }
 0x182   : > { %v1318_v30 = vsel %vm1314_vm13, %v1301_v8, %v1155_v25  ;;  %728 = vrot.lane.b32.xlu0 %v569_v15, %s3391_s15  ;;  %v667_v25 = vld [vmem:[#allocation3 + $0x131] sm:$0xff] }
 0x183   : > { %916 = vrot.lane.b32.xlu1 %v568_v55, %s3394_s17  ;;  %3228 = vmatmul.mubr.msk.f32.gmra.mxu0 %vm1336_vm14, %v1318_v30  ;;  %v1268_v55 = vsel %vm1263_vm10, %v1251_v53, %v965_v14 }
 0x184   : > { %v4078_v32 = vpop.permute.xlu0 %778 }
 0x185   : > { %v4076_v31 = vpop.permute.xlu1 %776 }
 0x186   : > { %980 = vrot.lane.b32.xlu0 %v584_v0, %s3395_s18  ;;  %v1219_v8 = vsel %vm1212_vm7, %v1202_v2, %v4076_v31 }
 0x187   : > { %1168 = vrot.lane.b32.xlu1 %v630_v58, %s3398_s13 }
 0x188   : > { %v1031_v34 = vpop.permute.xlu0 %1030 }
 0x189   : > { %v1029_v33 = vpop.permute.xlu1 %1028 }
 0x18a   : > { %730 = vrot.lane.b32.xlu0 %v570_v35, %s3391_s15  ;;  %v1285_v29 = vsel %vm1280_vm11, %v1268_v55, %v1029_v33 }
 0x18b   : > { %918 = vrot.lane.b32.xlu1 %v569_v15, %s3394_s17 }
 0x18c   : > { %v4086_v40 = vpop.permute.xlu0 %842 }
 0x18d   : > { %v4084_v37 = vpop.permute.xlu1 %840 }
 0x18e   : > { %982 = vrot.lane.b32.xlu0 %v632_v62, %s3395_s18 }
 0x18f   : > { %1170 = vrot.lane.b32.xlu1 %v584_v0, %s3398_s13  ;;  %v1218_v0 = vsel %vm1212_vm7, %v1201_v60, %v4016_v52 }
 0x190   : > { %v1095_v43 = vpop.permute.xlu0 %1094  ;;  %v1235_v3 = vsel %vm1229_vm8, %v1218_v0, %v4024_v57  ;;  %v618_v57 = vld [vmem:[#allocation3 + $0x121] sm:$0xff] }
 0x191   : > { %v1093_v42 = vpop.permute.xlu1 %1092  ;;  %v1252_v9 = vsel %vm1246_vm9, %v1235_v3, %v903_v21  ;;  %v651_v21 = vld [vmem:[#allocation3 + $0x130] sm:$0xff] }
 0x192   : > { %794 = vrot.lane.b32.xlu0 %v586_v45, %s3392_s16  ;;  %v1302_v24 = vsel %vm1297_vm12, %v1285_v29, %v1093_v42  ;;  %v1269_v38 = vsel %vm1263_vm10, %v1252_v9, %v967_v28  ;;  %v1236_v28 = vsel %vm1229_vm8, %v1219_v8, %v4084_v37  ;;  %v1203_v37 = vsel %vm522_vm5, %v3908_v44, %v4064_v22 }
 0x193   : > { %792 = vrot.lane.b32.xlu1 %v632_v62, %s3392_s16  ;;  %v1286_v41 = vsel %vm1280_vm11, %v1269_v38, %v1031_v34 }
 0x194   : > { %v4099_v50 = vpop.permute.xlu0 %716  ;;  %v1303_v52 = vsel %vm1297_vm12, %v1286_v41, %v1095_v43  ;;  %v1220_v43 = vsel %vm1212_vm7, %v1203_v37, %v4078_v32 }
 0x195   : > { %v905_v49 = vpop.permute.xlu1 %904 }
 0x196   : > { %1046 = vrot.lane.b32.xlu0 %v4102_v54, %s3396_s19  ;;  %v1253_v33 = vsel %vm1246_vm9, %v1236_v28, %v905_v49 }
 0x197   : > { %1044 = vrot.lane.b32.xlu1 %v4050_v17, %s3396_s19 }
 0x198   : > { %v969_v56 = vpop.permute.xlu0 %968 }
 0x199   : > { %v1157_v51 = vpop.permute.xlu1 %1156  ;;  %v1270_v34 = vsel %vm1263_vm10, %v1253_v33, %v969_v56 }
 0x19a   : > { %v1319_v58 = vsel %vm1314_vm13, %v1302_v24, %v1157_v51  ;;  %858 = vrot.lane.b32.xlu0 %v602_v59, %s3393_s21 }
 0x19b   : > { %856 = vrot.lane.b32.xlu1 %v4102_v54, %s3393_s21  ;;  %3230 = vmatprep.mubr.msk.f32.mxu0 %vm1336_vm14, %v1319_v58 }
 0x19c   : > { %v4123_v5 = vpop.permute.xlu0 %718 }
 0x19d   : > { %v907_v4 = vpop.permute.xlu1 %906 }
 0x19e   : > { %1110 = vrot.lane.b32.xlu0 %v570_v35, %s3397_s10 }
 0x19f   : > { %1108 = vrot.lane.b32.xlu1 %v569_v15, %s3397_s10 }
 0x1a0   : > { %v971_v13 = vpop.permute.xlu0 %970 }
 0x1a1   : > { %v1159_v11 = vpop.permute.xlu1 %1158 }
 0x1a2   : > { %v1320_v7 = vsel %vm1314_vm13, %v1303_v52, %v1159_v11  ;;  %922 = vrot.lane.b32.xlu0 %v618_v57, %s3394_s17 }
 0x1a3   : > { %920 = vrot.lane.b32.xlu1 %v570_v35, %s3394_s17  ;;  %3231 = vmatmul.mubr.msk.f32.gmra.mxu0 %vm1336_vm14, %v1320_v7 }
 0x1a4   : > { %v4135_v6 = vpop.permute.xlu0 %782 }
 0x1a5   : > { %v781_v1 = vpop.permute.xlu1 %780 }
 0x1a6   : > { %1174 = vrot.lane.b32.xlu0 %v586_v45, %s3398_s13 }
 0x1a7   : > { %1172 = vrot.lane.b32.xlu1 %v632_v62, %s3398_s13 }
 0x1a8   : > { %v1035_v16 = vpop.permute.xlu0 %1034 }
 0x1a9   : > { %v1033_v14 = vpop.permute.xlu1 %1032 }
 0x1aa   : > { %1048 = vrot.lane.b32.xlu0 %v602_v59, %s3396_s19  ;;  %v1287_v39 = vsel %vm1280_vm11, %v1270_v34, %v1033_v14  ;;  %v547_v59 = vld [vmem:[#allocation3 + $0xa0] sm:$0xff] }
 0x1ab   : > { %984 = vrot.lane.b32.xlu1 %v586_v45, %s3395_s18  ;;  %v1237_v45 = vsel %vm1229_vm8, %v1220_v43, %v4086_v40  ;;  %v1204_v3 = vsel %vm522_vm5, %v547_v59, %v4099_v50  ;;  %v1205_v50 = vsel %vm522_vm5, %v3939_v61, %v4123_v5 }
 0x1ac   : > { %v4141_v19 = vpop.permute.xlu0 %846  ;;  %v1254_v48 = vsel %vm1246_vm9, %v1237_v45, %v907_v4  ;;  %v1221_v4 = vsel %vm1212_vm7, %v1204_v3, %v781_v1  ;;  %v1222_v1 = vsel %vm1212_vm7, %v1205_v50, %v4135_v6 }
 0x1ad   : > { %v845_v18 = vpop.permute.xlu1 %844  ;;  %v1271_v49 = vsel %vm1263_vm10, %v1254_v48, %v971_v13 }
 0x1ae   : > { %1112 = vrot.lane.b32.xlu0 %v618_v57, %s3397_s10  ;;  %v1288_v53 = vsel %vm1280_vm11, %v1271_v49, %v1035_v16  ;;  %v1238_v9 = vsel %vm1229_vm8, %v1221_v4, %v845_v18  ;;  %v1239_v18 = vsel %vm1229_vm8, %v1222_v1, %v4141_v19 }
 0x1af   : > { %986 = vrot.lane.b32.xlu1 %v634_v20, %s3395_s18 }
 0x1b0   : > { %v1099_v27 = vpop.permute.xlu0 %1098 }
 0x1b1   : > { %v1097_v23 = vpop.permute.xlu1 %1096  ;;  %v1305_v44 = vsel %vm1297_vm12, %v1288_v53, %v1099_v27 }
 0x1b2   : > { %1176 = vrot.lane.b32.xlu0 %v634_v20, %s3398_s13  ;;  %v1304_v35 = vsel %vm1297_vm12, %v1287_v39, %v1097_v23 }
 0x1b3   : > { %1050 = vrot.lane.b32.xlu1 %v651_v21, %s3396_s19 }
 0x1b4   : > { %v4154_v15 = vpop.permute.xlu0 %720 }
 0x1b5   : > { %v909_v30 = vpop.permute.xlu1 %908 }
 0x1b6   : > { %v1255_v52 = vsel %vm1246_vm9, %v1238_v9, %v909_v30 }
 0x1b7   : > { %1114 = vrot.lane.b32.xlu1 %v667_v25, %s3397_s10 }
 0x1b8   : > { %v973_v31 = vpop.permute.xlu0 %972 }
 0x1b9   : > { %v1161_v62 = vpop.permute.xlu1 %1160  ;;  %v1272_v11 = vsel %vm1263_vm10, %v1255_v52, %v973_v31 }
 0x1ba   : > { %v1321_v42 = vsel %vm1314_vm13, %v1304_v35, %v1161_v62  ;;  %v1206_v35 = vsel %vm522_vm5, %v3941_v63, %v4154_v15 }
 0x1bb   : > { %1178 = vrot.lane.b32.xlu1 %v683_v10, %s3398_s13  ;;  %3233 = vmatprep.mubr.msk.f32.mxu0 %vm1336_vm14, %v1321_v42 }
 0x1bc   : > { %v4171_v47 = vpop.permute.xlu0 %722 }
 0x1bd   : > { %v911_v46 = vpop.permute.xlu1 %910  ;;  %v1207_v63 = vsel %vm522_vm5, %v3977_v26, %v4171_v47 }
 0x1be   : > { %v1256_v23 = vsel %vm1246_vm9, %v1239_v18, %v911_v46 }
 0x1c0   : > { %v975_v55 = vpop.permute.xlu0 %974 }
 0x1c1   : > { %v1163_v22 = vpop.permute.xlu1 %1162  ;;  %v1273_v27 = vsel %vm1263_vm10, %v1256_v23, %v975_v55 }
 0x1c2   : > { %v1322_v29 = vsel %vm1314_vm13, %v1305_v44, %v1163_v22 }
 0x1c3   : > { %3234 = vmatmul.mubr.msk.f32.gmra.mxu0 %vm1336_vm14, %v1322_v29 }
 0x1c4   : > { %v787_v24 = vpop.permute.xlu0 %786 }
 0x1c5   : > { %v785_v32 = vpop.permute.xlu1 %784  ;;  %v1224_v15 = vsel %vm1212_vm7, %v1207_v63, %v787_v24 }
 0x1c6   : > { %v1223_v62 = vsel %vm1212_vm7, %v1206_v35, %v785_v32 }
 0x1c8   : > { %v1039_v51 = vpop.permute.xlu0 %1038 }
 0x1c9   : > { %v1037_v40 = vpop.permute.xlu1 %1036  ;;  %v1290_v2 = vsel %vm1280_vm11, %v1273_v27, %v1039_v51 }
 0x1ca   : > { %v1289_v13 = vsel %vm1280_vm11, %v1272_v11, %v1037_v40 }
 0x1cc   : > { %v851_v58 = vpop.permute.xlu0 %850 }
 0x1cd   : > { %v849_v56 = vpop.permute.xlu1 %848  ;;  %v1241_v22 = vsel %vm1229_vm8, %v1224_v15, %v851_v58 }
 0x1ce   : > { %v1240_v31 = vsel %vm1229_vm8, %v1223_v62, %v849_v56 }
 0x1d0   : > { %v1103_v0 = vpop.permute.xlu0 %1102 }
 0x1d1   : > { %v1101_v60 = vpop.permute.xlu1 %1100  ;;  %v1307_v8 = vsel %vm1297_vm12, %v1290_v2, %v1103_v0 }
 0x1d2   : > { %v1306_v7 = vsel %vm1297_vm12, %v1289_v13, %v1101_v60 }
 0x1d4   : > { %v4183_v41 = vpop.permute.xlu0 %724 }
 0x1d5   : > { %v913_v38 = vpop.permute.xlu1 %912  ;;  %v1208_v52 = vsel %vm522_vm5, %v3991_v36, %v4183_v41 }
 0x1d6   : > { %v1257_v43 = vsel %vm1246_vm9, %v1240_v31, %v913_v38 }
 0x1d8   : > { %v977_v14 = vpop.permute.xlu0 %976 }
 0x1d9   : > { %v1165_v57 = vpop.permute.xlu1 %1164  ;;  %v1274_v45 = vsel %vm1263_vm10, %v1257_v43, %v977_v14 }
 0x1da   : > { %v1323_v16 = vsel %vm1314_vm13, %v1306_v7, %v1165_v57 }
 0x1db   : > { %3236 = vmatprep.mubr.msk.f32.mxu1 %vm1336_vm14, %v1323_v16 }
 0x1dc   : > { %v727_v21 = vpop.permute.xlu0 %726 }
 0x1dd   : > { %v915_v20 = vpop.permute.xlu1 %914  ;;  %v1209_v11 = vsel %vm522_vm5, %v4040_v12, %v727_v21 }
 0x1de   : > { %v1258_v32 = vsel %vm1246_vm9, %v1241_v22, %v915_v20 }
 0x1e0   : > { %v979_v61 = vpop.permute.xlu0 %978 }
 0x1e1   : > { %v1167_v25 = vpop.permute.xlu1 %1166  ;;  %v1275_v40 = vsel %vm1263_vm10, %v1258_v32, %v979_v61 }
 0x1e2   : > { %v1324_v5 = vsel %vm1314_vm13, %v1307_v8, %v1167_v25 }
 0x1e3   : > { %3237 = vmatmul.mubr.msk.f32.vlgmr.msra.gmra.mxu1 %vm1336_vm14, %v1324_v5 }
 0x1e4   : > { %v791_v28 = vpop.permute.xlu0 %790 }
 0x1e5   : > { %v789_v6 = vpop.permute.xlu1 %788  ;;  %v1226_v7 = vsel %vm1212_vm7, %v1209_v11, %v791_v28 }
 0x1e6   : > { %v1225_v13 = vsel %vm1212_vm7, %v1208_v52, %v789_v6 }
 0x1e8   : > { %v1043_v19 = vpop.permute.xlu0 %1042 }
 0x1e9   : > { %v1041_v30 = vpop.permute.xlu1 %1040  ;;  %v1292_v51 = vsel %vm1280_vm11, %v1275_v40, %v1043_v19 }
 0x1ea   : > { %v1291_v46 = vsel %vm1280_vm11, %v1274_v45, %v1041_v30 }
 0x1ec   : > { %v855_v34 = vpop.permute.xlu0 %854 }
 0x1ed   : > { %v853_v33 = vpop.permute.xlu1 %852  ;;  %v1243_v14 = vsel %vm1229_vm8, %v1226_v7, %v855_v34 }
 0x1ee   : > { %v1242_v57 = vsel %vm1229_vm8, %v1225_v13, %v853_v33 }
 0x1f0   : > { %v1107_v10 = vpop.permute.xlu0 %1106 }
 0x1f1   : > { %v1105_v39 = vpop.permute.xlu1 %1104  ;;  %v1309_v56 = vsel %vm1297_vm12, %v1292_v51, %v1107_v10 }
 0x1f2   : > { %v1308_v48 = vsel %vm1297_vm12, %v1291_v46, %v1105_v39 }
 0x1f4   : > { %v729_v37 = vpop.permute.xlu0 %728 }
 0x1f5   : > { %v917_v42 = vpop.permute.xlu1 %916  ;;  %v1210_v61 = vsel %vm522_vm5, %v4050_v17, %v729_v37 }
 0x1f6   : > { %v1259_v1 = vsel %vm1246_vm9, %v1242_v57, %v917_v42 }
 0x1f8   : > { %v981_v53 = vpop.permute.xlu0 %980 }
 0x1f9   : > { %v1169_v49 = vpop.permute.xlu1 %1168  ;;  %v1276_v20 = vsel %vm1263_vm10, %v1259_v1, %v981_v53 }
 0x1fa   : > { %v1325_v44 = vsel %vm1314_vm13, %v1308_v48, %v1169_v49 }
 0x1fb   : > { %3239 = vmatprep.mubr.msk.f32.mxu1 %vm1336_vm14, %v1325_v44 }
 0x1fc   : > { %v731_v29 = vpop.permute.xlu0 %730 }
 0x1fd   : > { %v919_v55 = vpop.permute.xlu1 %918  ;;  %v1211_v45 = vsel %vm522_vm5, %v4102_v54, %v731_v29 }
 0x1fe   : > { %v1260_v18 = vsel %vm1246_vm9, %v1243_v14, %v919_v55 }
 0x200   : > { %v983_v60 = vpop.permute.xlu0 %982 }
 0x201   : > { %v1171_v59 = vpop.permute.xlu1 %1170  ;;  %v1277_v36 = vsel %vm1263_vm10, %v1260_v18, %v983_v60 }
 0x202   : > { %v1326_v26 = vsel %vm1314_vm13, %v1309_v56, %v1171_v59 }
 0x203   : > { %3240 = vmatmul.mubr.msk.f32.gmra.mxu1 %vm1336_vm14, %v1326_v26 }
 0x204   : > { %v795_v24 = vpop.permute.xlu0 %794 }
 0x205   : > { %v793_v47 = vpop.permute.xlu1 %792  ;;  %v1228_v53 = vsel %vm1212_vm7, %v1211_v45, %v795_v24 }
 0x206   : > { %v1227_v28 = vsel %vm1212_vm7, %v1210_v61, %v793_v47 }
 0x208   : > { %v1047_v58 = vpop.permute.xlu0 %1046 }
 0x209   : > { %v1045_v0 = vpop.permute.xlu1 %1044  ;;  %v1294_v41 = vsel %vm1280_vm11, %v1277_v36, %v1047_v58 }
 0x20a   : > { %v1293_v12 = vsel %vm1280_vm11, %v1276_v20, %v1045_v0 }
 0x20c   : > { %v859_v4 = vpop.permute.xlu0 %858 }
 0x20d   : > { %v857_v3 = vpop.permute.xlu1 %856  ;;  %v1245_v63 = vsel %vm1229_vm8, %v1228_v53, %v859_v4 }
 0x20e   : > { %v1244_v30 = vsel %vm1229_vm8, %v1227_v28, %v857_v3 }
 0x210   : > { %v1111_v38 = vpop.permute.xlu0 %1110 }
 0x211   : > { %v1109_v9 = vpop.permute.xlu1 %1108  ;;  %v1311_v23 = vsel %vm1297_vm12, %v1294_v41, %v1111_v38 }
 0x212   : > { %v1310_v21 = vsel %vm1297_vm12, %v1293_v12, %v1109_v9 }
 0x214   : > { %v923_v50 = vpop.permute.xlu0 %922 }
 0x215   : > { %v921_v16 = vpop.permute.xlu1 %920  ;;  %v1262_v54 = vsel %vm1246_vm9, %v1245_v63, %v923_v50 }
 0x216   : > { %v1261_v19 = vsel %vm1246_vm9, %v1244_v30, %v921_v16 }
 0x218   : > { %v1175_v2 = vpop.permute.xlu0 %1174 }
 0x219   : > { %v1173_v27 = vpop.permute.xlu1 %1172  ;;  %v1328_v25 = vsel %vm1314_vm13, %v1311_v23, %v1175_v2 }
 0x21a   : > { %v1327_v8 = vsel %vm1314_vm13, %v1310_v21, %v1173_v27 }
 0x21b   : > { %3242 = vmatprep.mubr.msk.f32.mxu1 %vm1336_vm14, %v1327_v8 }
 0x21c   : > { %3243 = vmatmul.mubr.msk.f32.gmra.mxu1 %vm1336_vm14, %v1328_v25  ;;  %v1049_v6 = vpop.permute.xlu0 %1048 }
 0x21d   : > { %v985_v5 = vpop.permute.xlu1 %984 }
 0x21e   : > { %v1278_v33 = vsel %vm1263_vm10, %v1261_v19, %v985_v5 }
 0x21f   : > { %v1295_v10 = vsel %vm1280_vm11, %v1278_v33, %v1049_v6 }
 0x220   : > { %v1113_v39 = vpop.permute.xlu0 %1112 }
 0x221   : > { %v987_v34 = vpop.permute.xlu1 %986  ;;  %v1312_v62 = vsel %vm1297_vm12, %v1295_v10, %v1113_v39 }
 0x222   : > { %v1279_v32 = vsel %vm1263_vm10, %v1262_v54, %v987_v34 }
 0x223   : > { %v3226_v35 = vpop.f32.mrf.mxu0 }
 0x224   : > { %1538 = vst.msk [vmem:[#allocation2 + $0x8] sm:$0xff] %vm1212_vm7, %v3226_v35  ;;  %v1596_v17 = vmul.f32 %v3226_v35, %v3226_v35  ;;  %v1177_v42 = vpop.permute.xlu0 %1176  ;;  %v1555_v46 = vsel %vm1212_vm7, %v3226_v35, 0.0 }
 0x225   : > { %v1051_v31 = vpop.permute.xlu1 %1050  ;;  %v1455_v37 = vpop.f32.mrf.mxu0  ;;  %v1329_v43 = vsel %vm1314_vm13, %v1312_v62, %v1177_v42 }
 0x226   : > { %1537 = vst.msk [vmem:[#allocation2] sm:$0xff] %vm1212_vm7, %v1455_v37  ;;  %v1554_v48 = vsel %vm1212_vm7, %v1455_v37, 0.0  ;;  %v1595_v49 = vmul.f32 %v1455_v37, %v1455_v37  ;;  %3245 = vmatprep.mubr.msk.f32.mxu1 %vm1336_vm14, %v1329_v43  ;;  %v1612_v15 = vsel %vm1212_vm7, %v1596_v17, 0.0  ;;  %v1296_v40 = vsel %vm1280_vm11, %v1279_v32, %v1051_v31 }
 0x227   : > { %v1556_v44 = vadd.f32 %v1555_v46, %v1554_v48 }
 0x228   : > { %v1611_v22 = vsel %vm1212_vm7, %v1595_v49, 0.0 }
 0x229   : > { %v1115_v55 = vpop.permute.xlu1 %1114  ;;  %v1613_v29 = vadd.f32 %v1612_v15, %v1611_v22 }
 0x22a   : > { %v1313_v51 = vsel %vm1297_vm12, %v1296_v40, %v1115_v55 }
 0x22d   : > { %v1179_v56 = vpop.permute.xlu1 %1178 }
 0x22e   : > { %v1330_v59 = vsel %vm1314_vm13, %v1313_v51, %v1179_v56 }
 0x22f   : > { %3246 = vmatmul.mubr.msk.f32.gmra.mxu1 %vm1336_vm14, %v1330_v59 }
 0x243   : > { %v3229_v60 = vpop.f32.mrf.mxu0 }
 0x244   : > { %1540 = vst.msk [vmem:[#allocation2 + $0x18] sm:$0xff] %vm1212_vm7, %v3229_v60  ;;  %v1598_v47 = vmul.f32 %v3229_v60, %v3229_v60  ;;  %v1559_v3 = vsel %vm1212_vm7, %v3229_v60, 0.0 }
 0x245   : > { %v1465_v26 = vpop.f32.mrf.mxu0 }
 0x246   : > { %1539 = vst.msk [vmem:[#allocation2 + $0x10] sm:$0xff] %vm1212_vm7, %v1465_v26  ;;  %v1557_v24 = vsel %vm1212_vm7, %v1465_v26, 0.0  ;;  %v1597_v0 = vmul.f32 %v1465_v26, %v1465_v26  ;;  %v1616_v52 = vsel %vm1212_vm7, %v1598_v47, 0.0 }
 0x247   : > { %v1558_v58 = vadd.f32 %v1557_v24, %v1556_v44 }
 0x248   : > { %v1614_v4 = vsel %vm1212_vm7, %v1597_v0, 0.0 }
 0x249   : > { %v1615_v9 = vadd.f32 %v1614_v4, %v1613_v29  ;;  %v1560_v38 = vadd.f32 %v1559_v3, %v1558_v58 }
 0x24b   : > { %v1617_v11 = vadd.f32 %v1616_v52, %v1615_v9 }
 0x263   : > { %v3232_v13 = vpop.f32.mrf.mxu0 }
 0x264   : > { %1542 = vst.msk [vmem:[#allocation2 + $0x28] sm:$0xff] %vm1212_vm7, %v3232_v13  ;;  %v1600_v57 = vmul.f32 %v3232_v13, %v3232_v13  ;;  %v1563_v1 = vsel %vm1212_vm7, %v3232_v13, 0.0 }
 0x265   : > { %v1475_v7 = vpop.f32.mrf.mxu0 }
 0x266   : > { %1541 = vst.msk [vmem:[#allocation2 + $0x20] sm:$0xff] %vm1212_vm7, %v1475_v7  ;;  %v1561_v14 = vsel %vm1212_vm7, %v1475_v7, 0.0  ;;  %v1599_v16 = vmul.f32 %v1475_v7, %v1475_v7  ;;  %v1620_v12 = vsel %vm1212_vm7, %v1600_v57, 0.0 }
 0x267   : > { %v1562_v50 = vadd.f32 %v1561_v14, %v1560_v38 }
 0x268   : > { %v1618_v18 = vsel %vm1212_vm7, %v1599_v16, 0.0 }
 0x269   : > { %v1619_v20 = vadd.f32 %v1618_v18, %v1617_v11  ;;  %v1564_v36 = vadd.f32 %v1563_v1, %v1562_v50 }
 0x26b   : > { %v1621_v41 = vadd.f32 %v1620_v12, %v1619_v20 }
 0x283   : > { %v3235_v21 = vpop.f32.mrf.mxu0 }
 0x284   : > { %1544 = vst.msk [vmem:[#allocation2 + $0x38] sm:$0xff] %vm1212_vm7, %v3235_v21  ;;  %v1602_v27 = vmul.f32 %v3235_v21, %v3235_v21  ;;  %v1567_v61 = vsel %vm1212_vm7, %v3235_v21, 0.0 }
 0x285   : > { %v1485_v23 = vpop.f32.mrf.mxu0 }
 0x286   : > { %1543 = vst.msk [vmem:[#allocation2 + $0x30] sm:$0xff] %vm1212_vm7, %v1485_v23  ;;  %v1565_v2 = vsel %vm1212_vm7, %v1485_v23, 0.0  ;;  %v1601_v8 = vmul.f32 %v1485_v23, %v1485_v23  ;;  %v1624_v30 = vsel %vm1212_vm7, %v1602_v27, 0.0 }
 0x287   : > { %v1566_v25 = vadd.f32 %v1565_v2, %v1564_v36 }
 0x288   : > { %v1622_v5 = vsel %vm1212_vm7, %v1601_v8, 0.0 }
 0x289   : > { %v1568_v6 = vadd.f32 %v1567_v61, %v1566_v25  ;;  %v1623_v28 = vadd.f32 %v1622_v5, %v1621_v41  ;;  %v1553_v25 = vld [vmem:[#allocation5] sm:$0x1] }
 0x28b   : > { %v1625_v19 = vadd.f32 %v1624_v30, %v1623_v28 }
 0x2a3   : > { %v3238_v33 = vpop.f32.mrf.mxu1 }
 0x2a4   : > { %1546 = vst.msk [vmem:[#allocation2 + $0x48] sm:$0xff] %vm1212_vm7, %v3238_v33  ;;  %v1604_v39 = vmul.f32 %v3238_v33, %v3238_v33  ;;  %v1571_v17 = vsel %vm1212_vm7, %v3238_v33, 0.0 }
 0x2a5   : > { %v1495_v34 = vpop.f32.mrf.mxu1 }
 0x2a6   : > { %1545 = vst.msk [vmem:[#allocation2 + $0x40] sm:$0xff] %vm1212_vm7, %v1495_v34  ;;  %v1569_v10 = vsel %vm1212_vm7, %v1495_v34, 0.0  ;;  %v1603_v35 = vmul.f32 %v1495_v34, %v1495_v34  ;;  %v1628_v43 = vsel %vm1212_vm7, %v1604_v39, 0.0 }
 0x2a7   : > { %v1570_v62 = vadd.f32 %v1569_v10, %v1568_v6  ;;  %v1594_v6 = vld [vmem:[#allocation6] sm:$0x1] }
 0x2a8   : > { %v1626_v31 = vsel %vm1212_vm7, %v1603_v35, 0.0 }
 0x2a9   : > { %v1627_v42 = vadd.f32 %v1626_v31, %v1625_v19  ;;  %v1572_v37 = vadd.f32 %v1571_v17, %v1570_v62 }
 0x2ab   : > { %v1629_v45 = vadd.f32 %v1628_v43, %v1627_v42 }
 0x2c3   : > { %v3241_v46 = vpop.f32.mrf.mxu1 }
 0x2c4   : > { %1548 = vst.msk [vmem:[#allocation2 + $0x58] sm:$0xff] %vm1212_vm7, %v3241_v46  ;;  %v1606_v55 = vmul.f32 %v3241_v46, %v3241_v46  ;;  %v1575_v32 = vsel %vm1212_vm7, %v3241_v46, 0.0 }
 0x2c5   : > { %v1505_v48 = vpop.f32.mrf.mxu1 }
 0x2c6   : > { %1547 = vst.msk [vmem:[#allocation2 + $0x50] sm:$0xff] %vm1212_vm7, %v1505_v48  ;;  %v1605_v44 = vmul.f32 %v1505_v48, %v1505_v48  ;;  %v1573_v63 = vsel %vm1212_vm7, %v1505_v48, 0.0  ;;  %v1632_v56 = vsel %vm1212_vm7, %v1606_v55, 0.0 }
 0x2c7   : > { %v1574_v22 = vadd.f32 %v1573_v63, %v1572_v37 }
 0x2c8   : > { %v1630_v15 = vsel %vm1212_vm7, %v1605_v44, 0.0 }
 0x2c9   : > { %v1631_v29 = vadd.f32 %v1630_v15, %v1629_v45  ;;  %v1576_v51 = vadd.f32 %v1575_v32, %v1574_v22 }
 0x2cb   : > { %v1633_v26 = vadd.f32 %v1632_v56, %v1631_v29 }
 0x2dc   : > { %v3244_v49 = vpop.f32.mrf.mxu1 }
 0x2dd   : > { %1550 = vst.msk [vmem:[#allocation2 + $0x68] sm:$0xff] %vm1212_vm7, %v3244_v49  ;;  %v1608_v47 = vmul.f32 %v3244_v49, %v3244_v49  ;;  %v1579_v58 = vsel %vm1212_vm7, %v3244_v49, 0.0 }
 0x2de   : > { %v1515_v53 = vpop.f32.mrf.mxu1 }
 0x2df   : > { %1549 = vst.msk [vmem:[#allocation2 + $0x60] sm:$0xff] %vm1212_vm7, %v1515_v53  ;;  %v1607_v54 = vmul.f32 %v1515_v53, %v1515_v53  ;;  %v1577_v40 = vsel %vm1212_vm7, %v1515_v53, 0.0  ;;  %v1636_v9 = vsel %vm1212_vm7, %v1608_v47, 0.0 }
 0x2e0   : > { %v1578_v60 = vadd.f32 %v1577_v40, %v1576_v51 }
 0x2e1   : > { %v1634_v59 = vsel %vm1212_vm7, %v1607_v54, 0.0 }
 0x2e2   : > { %v1635_v24 = vadd.f32 %v1634_v59, %v1633_v26  ;;  %v1580_v4 = vadd.f32 %v1579_v58, %v1578_v60 }
 0x2e4   : > { %v1637_v7 = vadd.f32 %v1636_v9, %v1635_v24 }
 0x2ef   : > { %v3247_v0 = vpop.f32.mrf.mxu1 }
 0x2f0   : > { %1552 = vst.msk [vmem:[#allocation2 + $0x78] sm:$0xff] %vm1212_vm7, %v3247_v0  ;;  %v1610_v38 = vmul.f32 %v3247_v0, %v3247_v0  ;;  %v1583_v57 = vsel %vm1212_vm7, %v3247_v0, 0.0 }
 0x2f1   : > { %v1525_v3 = vpop.f32.mrf.mxu1 }
 0x2f2   : > { %1551 = vst.msk [vmem:[#allocation2 + $0x70] sm:$0xff] %vm1212_vm7, %v1525_v3  ;;  %v1581_v52 = vsel %vm1212_vm7, %v1525_v3, 0.0  ;;  %v1609_v11 = vmul.f32 %v1525_v3, %v1525_v3  ;;  %v1640_v1 = vsel %vm1212_vm7, %v1610_v38, 0.0 }
 0x2f3   : > { %v1582_v13 = vadd.f32 %v1581_v52, %v1580_v4 }
 0x2f4   : > { %v1638_v14 = vsel %vm1212_vm7, %v1609_v11, 0.0 }
 0x2f5   : > { %v1584_v16 = vadd.f32 %v1583_v57, %v1582_v13  ;;  %v1639_v50 = vadd.f32 %v1638_v14, %v1637_v7 }
 0x2f7   : > { %v1585_v18 = vrot.slane %v1584_v16, 4  ;;  %v1641_v20 = vadd.f32 %v1640_v1, %v1639_v50 }
 0x2f9   : > { %v1586_v36 = vadd.f32 %v1585_v18, %v1584_v16  ;;  %v1642_v12 = vrot.slane %v1641_v20, 4 }
 0x2fb   : > { %v1587_v41 = vrot.slane %v1586_v36, 2  ;;  %v1643_v21 = vadd.f32 %v1642_v12, %v1641_v20 }
 0x2fd   : > { %v1588_v23 = vadd.f32 %v1587_v41, %v1586_v36  ;;  %v1644_v27 = vrot.slane %v1643_v21, 2 }
 0x2ff   : > { %v1589_v2 = vrot.slane %v1588_v23, 1  ;;  %v1645_v8 = vadd.f32 %v1644_v27, %v1643_v21 }
 0x301   : > { %v1590_v61 = vadd.f32 %v1589_v2, %v1588_v23  ;;  %v1646_v5 = vrot.slane %v1645_v8, 1 }
 0x303   : > { %v1591_v28 = vadd.f32 %v1590_v61, %v1553_v25  ;;  %v1647_v30 = vadd.f32 %v1646_v5, %v1645_v8 }
 0x305   : > { %1593 = vst.msk [vmem:[#allocation5] sm:$0x1] %vm1592_vm15, %v1591_v28  ;;  %v1648_v19 = vadd.f32 %v1647_v30, %v1594_v6 }
 0x307   : > { %1649 = vst.msk [vmem:[#allocation6] sm:$0x1] %vm1592_vm15, %v1648_v19 }
 0x308 PF: > { %p3145_p6 = scmp.ne.s32.totalorder %s3379_s24, 1 }
 0x309   : > { %s3399_s14 = smov (!%p3145_p6), 16   ;;  %s3400_s15 = smov (!%p3145_p6), 8  }
 0x30a   : > { %1653 = sbr.rel (%p3145_p6) target bundleno = 1407 (0x57f), region = 60  ;;  %s3401_s19 = smov (!%p3145_p6), 24  }
 0x30b   : > { %s3402_s20 = smov (!%p3145_p6), 32   ;;  %s3403_s22 = smov (!%p3145_p6), 40  }
 0x30c   : > { %s3404_s12 = smov (!%p3145_p6), 48   ;;  %s3405_s28 = smov (!%p3145_p6), 56  }
 0x30d   : > { %s3406_s10 = smov (!%p3145_p6), 64  }
 0x30f   : > { %v1816_v33 = vld [vmem:[#allocation4 + $0x2] sm:$0xff]  ;;  %v1654_v39 = vld [vmem:[#allocation5] sm:$0x1]  ;;  %v1656_v35 = vld [vmem:[#allocation6] sm:$0x1]  ;;  %v1682_v42 = vlaneseq  ;;  %vm1767_vm0 = vcmask 64512  }
 0x310   : > { %v1800_v34 = vld [vmem:[#allocation4 + $0x1] sm:$0xff]  ;;  %2009 = vrot.lane.b32.xlu1 %v1816_v33, %s3399_s14  ;;  %v1655_v10 = vmul.f32 0.0078125, %v1654_v39  ;;  %v1657_v62 = vmul.f32 0.0078125, %v1656_v35  ;;  %v1703_v49 = vld [vmem:[%s4965_s3] sm:$0x1]  ;;  %v1667_v44 = vld [vmem:[#allocation2 + $0x10] sm:$0xff] }
 0x311   : > { %1945 = vrot.lane.b32.xlu0 %v1800_v34, %s3400_s15  ;;  %v1683_v43 = vshrl.u32 %v1682_v42, 7  ;;  %v1665_v48 = vld [vmem:[#allocation2] sm:$0xff]  ;;  %v1666_v53 = vld [vmem:[#allocation2 + $0x8] sm:$0xff]  ;;  %v1668_v63 = vld [vmem:[#allocation2 + $0x18] sm:$0xff]  ;;  %vm2457_vm1 = vcmask 130048   ;;  %vm2474_vm2 = vcmask 195584  }
 0x312   : > { %v1658_v17 = vmul.f32 %v1655_v10, %v1655_v10  ;;  %v1669_v15 = vld [vmem:[#allocation2 + $0x20] sm:$0xff]  ;;  %v1670_v22 = vld [vmem:[#allocation2 + $0x28] sm:$0xff]  ;;  %v1671_v55 = vld [vmem:[#allocation2 + $0x30] sm:$0xff]  ;;  %vm2491_vm3 = vcmask 261120   ;;  %vm2508_vm4 = vcmask 326656   ;;  %vm2525_vm5 = vcmask 392192  }
 0x313   : > { %v1684_v45 = vsub.s32 0, %v1683_v43  ;;  %v1672_v54 = vld [vmem:[#allocation2 + $0x38] sm:$0xff]  ;;  %v1673_v60 = vld [vmem:[#allocation2 + $0x40] sm:$0xff]  ;;  %v1674_v58 = vld [vmem:[#allocation2 + $0x48] sm:$0xff]  ;;  %vm2542_vm6 = vcmask 457728   ;;  %vm2559_vm7 = vcmask 523264  }
 0x314   : > { %v1659_v31 = vsub.f32 %v1657_v62, %v1658_v17  ;;  %v4336_v4 = vld [vmem:[%s4966_s4] ss:$0 sm:$0xff]  ;;  %vm2585_vm8 = vcmask 588800   ;;  %vm2834_vm9 = vcmask 57344  }
 0x315   : > { %v4318_v46 = vrot.slane %v1655_v10, %v1684_v45 }
 0x316   : > { %v1660_v37 = vadd.f32 1e-05, %v1659_v31 }
 0x317   : > { %v1687_v32 = vsub.f32 %v1665_v48, %v4318_v46  ;;  %v1688_v51 = vsub.f32 %v1666_v53, %v4318_v46  ;;  %v1689_v56 = vsub.f32 %v1667_v44, %v4318_v46  ;;  %v1690_v59 = vsub.f32 %v1668_v63, %v4318_v46  ;;  %v2583_v63 = vld [vmem:[%s4964_s2 + $0x38] sm:$0xff] }
 0x318   : > { %3361 = vrsqrt.f32 %v1660_v37  ;;  %v1691_v26 = vsub.f32 %v1669_v15, %v4318_v46  ;;  %v1692_v47 = vsub.f32 %v1670_v22, %v4318_v46  ;;  %v1693_v24 = vsub.f32 %v1671_v55, %v4318_v46  ;;  %v1675_v37 = vld [vmem:[#allocation2 + $0x50] sm:$0xff]  ;;  %v1676_v55 = vld [vmem:[#allocation2 + $0x58] sm:$0xff] }
 0x319   : > { %v1694_v0 = vsub.f32 %v1672_v54, %v4318_v46  ;;  %v1695_v9 = vsub.f32 %v1673_v60, %v4318_v46  ;;  %v1696_v38 = vsub.f32 %v1674_v58, %v4318_v46  ;;  %v1697_v43 = vsub.f32 %v1675_v37, %v4318_v46  ;;  %v2582_v22 = vld [vmem:[%s4964_s2 + $0x30] sm:$0xff]  ;;  %v2576_v58 = vld [vmem:[%s4964_s2] sm:$0xff] }
 0x31a   : > { %v1698_v54 = vsub.f32 %v1676_v55, %v4318_v46 }
 0x325   : > { %v3362_v29 = vpop.eup %3361 }
 0x326   : > { %v1704_v40 = vmul.f32 %v3362_v29, %v1703_v49  ;;  %v2581_v29 = vld [vmem:[%s4964_s2 + $0x28] sm:$0xff] }
 0x328   : > { %v4331_v3 = vrot.slane %v1704_v40, %v1684_v45  ;;  %v2584_v45 = vld [vmem:[%s4964_s2 + $0x40] sm:$0xff] }
 0x329   : > { %3248 = vmatprep.subr.mxu0 %v2584_v45  ;;  %3300 = vmatprep.subr.mxu1 %v2584_v45 }
 0x32a   : > { %v1711_v52 = vmul.f32 %v4331_v3, %v1687_v32  ;;  %v1712_v11 = vmul.f32 %v4331_v3, %v1688_v51  ;;  %v1713_v13 = vmul.f32 %v4331_v3, %v1689_v56  ;;  %v1714_v7 = vmul.f32 %v4331_v3, %v1690_v59  ;;  %3249 = vmatpush3.msra.mxu0 %v2584_v45  ;;  %v2580_v59 = vld [vmem:[%s4964_s2 + $0x20] sm:$0xff] }
 0x32b   : > { %v1715_v57 = vmul.f32 %v4331_v3, %v1691_v26  ;;  %v1716_v14 = vmul.f32 %v4331_v3, %v1692_v47  ;;  %v1717_v16 = vmul.f32 %v4331_v3, %v1693_v24  ;;  %v1718_v50 = vmul.f32 %v4331_v3, %v1694_v0  ;;  %3309 = vmatpush3.msra.mxu1 %v2584_v45  ;;  %v2579_v26 = vld [vmem:[%s4964_s2 + $0x18] sm:$0xff]  ;;  %v2578_v47 = vld [vmem:[%s4964_s2 + $0x10] sm:$0xff]  ;;  %v2577_v0 = vld [vmem:[%s4964_s2 + $0x8] sm:$0xff] }
 0x32c   : > { %v1734_v1 = vadd.f32 %v4336_v4, %v1711_v52  ;;  %v1735_v18 = vadd.f32 %v4336_v4, %v1712_v11  ;;  %v1736_v20 = vadd.f32 %v4336_v4, %v1713_v13  ;;  %v1737_v36 = vadd.f32 %v4336_v4, %v1714_v7  ;;  %3250 = vmatprep.subr.mxu0 %v2583_v63 }
 0x32d   : > { %v1738_v12 = vadd.f32 %v4336_v4, %v1715_v57  ;;  %v1739_v41 = vadd.f32 %v4336_v4, %v1716_v14  ;;  %v1740_v21 = vadd.f32 %v4336_v4, %v1717_v16  ;;  %v1741_v23 = vadd.f32 %v4336_v4, %v1718_v50  ;;  %3301 = vmatprep.subr.mxu1 %v2583_v63  ;;  %v1678_v16 = vld [vmem:[#allocation2 + $0x68] sm:$0xff] }
 0x32e   : > { %v1750_v27 = vmax.f32 %v1734_v1, 0.0  ;;  %v1751_v2 = vmax.f32 %v1735_v18, 0.0  ;;  %v1752_v8 = vmax.f32 %v1736_v20, 0.0  ;;  %v1753_v25 = vmax.f32 %v1737_v36, 0.0  ;;  %3251 = vmatpush3.msra.mxu0 %v2583_v63  ;;  %3310 = vmatpush3.msra.mxu1 %v2583_v63  ;;  %v1888_v63 = vld [vmem:[#allocation4 + $0x90] sm:$0xff] }
 0x32f   : > { %v1754_v61 = vmax.f32 %v1738_v12, 0.0  ;;  %v1755_v5 = vmax.f32 %v1739_v41, 0.0  ;;  %v1756_v6 = vmax.f32 %v1740_v21, 0.0  ;;  %v1757_v28 = vmax.f32 %v1741_v23, 0.0  ;;  %3252 = vmatprep.subr.mxu0 %v2582_v22  ;;  %3302 = vmatprep.subr.mxu1 %v2582_v22  ;;  %v1679_v21 = vld [vmem:[#allocation2 + $0x70] sm:$0xff] }
 0x330   : > { %1768 = vst.msk [vmem:[#allocation4 + $0x11] sm:$0xff] %vm1767_vm0, %v1750_v27  ;;  %1769 = vst.msk [vmem:[#allocation4 + $0x21] sm:$0xff] %vm1767_vm0, %v1751_v2  ;;  %v1719_v30 = vmul.f32 %v4331_v3, %v1695_v9  ;;  %v1720_v19 = vmul.f32 %v4331_v3, %v1696_v38  ;;  %v1721_v48 = vmul.f32 %v4331_v3, %v1697_v43  ;;  %3253 = vmatpush3.msra.mxu0 %v2582_v22  ;;  %v1677_v9 = vld [vmem:[#allocation2 + $0x60] sm:$0xff] }
 0x331   : > { %1770 = vst.msk [vmem:[#allocation4 + $0x31] sm:$0xff] %vm1767_vm0, %v1752_v8  ;;  %1771 = vst.msk [vmem:[#allocation4 + $0x41] sm:$0xff] %vm1767_vm0, %v1753_v25  ;;  %v1722_v32 = vmul.f32 %v4331_v3, %v1698_v54  ;;  %3311 = vmatpush3.msra.mxu1 %v2582_v22  ;;  %3254 = vmatprep.subr.mxu0 %v2581_v29  ;;  %v1699_v38 = vsub.f32 %v1677_v9, %v4318_v46  ;;  %v1784_v9 = vld [vmem:[#allocation4] sm:$0xff] }
 0x332   : > { %1772 = vst.msk [vmem:[#allocation4 + $0x51] sm:$0xff] %vm1767_vm0, %v1754_v61  ;;  %1773 = vst.msk [vmem:[#allocation4 + $0x61] sm:$0xff] %vm1767_vm0, %v1755_v5  ;;  %v1742_v33 = vadd.f32 %v4336_v4, %v1719_v30  ;;  %v1743_v34 = vadd.f32 %v4336_v4, %v1720_v19  ;;  %v1744_v44 = vadd.f32 %v4336_v4, %v1721_v48  ;;  %3303 = vmatprep.subr.mxu1 %v2581_v29 }
 0x333   : > { %1774 = vst.msk [vmem:[#allocation4 + $0x71] sm:$0xff] %vm1767_vm0, %v1756_v6  ;;  %1775 = vst.msk [vmem:[#allocation4 + $0x81] sm:$0xff] %vm1767_vm0, %v1757_v28  ;;  %v1745_v56 = vadd.f32 %v4336_v4, %v1722_v32  ;;  %3255 = vmatpush3.msra.mxu0 %v2581_v29  ;;  %3312 = vmatpush3.msra.mxu1 %v2581_v29  ;;  %v1723_v52 = vmul.f32 %v4331_v3, %v1699_v38  ;;  %v1680_v6 = vld [vmem:[#allocation2 + $0x78] sm:$0xff] }
 0x334   : > { %v1758_v39 = vmax.f32 %v1742_v33, 0.0  ;;  %v1759_v10 = vmax.f32 %v1743_v34, 0.0  ;;  %v1760_v15 = vmax.f32 %v1744_v44, 0.0  ;;  %3256 = vmatprep.subr.mxu0 %v2580_v59  ;;  %3304 = vmatprep.subr.mxu1 %v2580_v59  ;;  %v1700_v50 = vsub.f32 %v1678_v16, %v4318_v46  ;;  %v1904_v32 = vld [vmem:[#allocation4 + $0x91] sm:$0xff] }
 0x335   : > { %v1761_v60 = vmax.f32 %v1745_v56, 0.0  ;;  %3257 = vmatpush3.msra.mxu0 %v2580_v59  ;;  %3313 = vmatpush3.msra.mxu1 %v2580_v59  ;;  %v1746_v13 = vadd.f32 %v4336_v4, %v1723_v52  ;;  %v1701_v23 = vsub.f32 %v1679_v21, %v4318_v46  ;;  %v1702_v28 = vsub.f32 %v1680_v6, %v4318_v46 }
 0x336   : > { %1776 = vst.msk [vmem:[#allocation4 + $0xb1] sm:$0xff] %vm1767_vm0, %v1758_v39  ;;  %1777 = vst.msk [vmem:[#allocation4 + $0xc1] sm:$0xff] %vm1767_vm0, %v1759_v10  ;;  %3258 = vmatprep.subr.mxu0 %v2579_v26  ;;  %3305 = vmatprep.subr.mxu1 %v2579_v26  ;;  %v1724_v1 = vmul.f32 %v4331_v3, %v1700_v50 }
 0x337   : > { %v1817_v35 = vld [vmem:[#allocation4 + $0x12] sm:$0xff]  ;;  %v4372_v17 = vld [vmem:[#allocation4 + $0x20] sm:$0xff]  ;;  %1778 = vst.msk [vmem:[#allocation4 + $0xd1] sm:$0xff] %vm1767_vm0, %v1760_v15  ;;  %1779 = vst.msk [vmem:[#allocation4 + $0xe1] sm:$0xff] %vm1767_vm0, %v1761_v60  ;;  %3259 = vmatpush3.msra.mxu0 %v2579_v26  ;;  %3314 = vmatpush3.msra.mxu1 %v2579_v26  ;;  %v1762_v7 = vmax.f32 %v1746_v13, 0.0  ;;  %v1725_v27 = vmul.f32 %v4331_v3, %v1701_v23  ;;  %v1726_v30 = vmul.f32 %v4331_v3, %v1702_v28 }
 0x338   : > { %v1801_v62 = vld [vmem:[#allocation4 + $0x11] sm:$0xff]  ;;  %2011 = vrot.lane.b32.xlu1 %v1817_v35, %s3399_s14  ;;  %v1802_v42 = vld [vmem:[#allocation4 + $0x21] sm:$0xff]  ;;  %3260 = vmatprep.subr.mxu0 %v2578_v47  ;;  %v1747_v36 = vadd.f32 %v4336_v4, %v1724_v1 }
 0x339   : > { %1947 = vrot.lane.b32.xlu0 %v1801_v62, %s3400_s15  ;;  %v4374_v31 = vld [vmem:[#allocation4 + $0x10] sm:$0xff]  ;;  %v4389_v49 = vld [vmem:[#allocation4 + $0x22] sm:$0xff]  ;;  %3306 = vmatprep.subr.mxu1 %v2578_v47  ;;  %1780 = vst.msk [vmem:[#allocation4 + $0xf1] sm:$0xff] %vm1767_vm0, %v1762_v7  ;;  %v1748_v8 = vadd.f32 %v4336_v4, %v1725_v27  ;;  %v1749_v34 = vadd.f32 %v4336_v4, %v1726_v30 }
 0x33a   : > { %v4391_v53 = vld [vmem:[#allocation4 + $0x31] sm:$0xff]  ;;  %v4433_v24 = vld [vmem:[#allocation4 + $0x40] sm:$0xff]  ;;  %3261 = vmatpush3.msra.mxu0 %v2578_v47  ;;  %3315 = vmatpush3.msra.mxu1 %v2578_v47  ;;  %v1763_v12 = vmax.f32 %v1747_v36, 0.0 }
 0x33b   : > { %v4414_v40 = vld [vmem:[#allocation4 + $0x30] sm:$0xff]  ;;  %3262 = vmatprep.subr.mxu0 %v2577_v0  ;;  %3307 = vmatprep.subr.mxu1 %v2577_v0  ;;  %v1851_v11 = vld [vmem:[#allocation4 + $0x41] sm:$0xff]  ;;  %v1764_v25 = vmax.f32 %v1748_v8, 0.0  ;;  %v1765_v39 = vmax.f32 %v1749_v34, 0.0 }
 0x33c   : > { %2075 = vrot.lane.b32.xlu1 %v4372_v17, %s3401_s19  ;;  %v1819_v51 = vld [vmem:[#allocation4 + $0x32] sm:$0xff]  ;;  %3263 = vmatpush3.msra.mxu0 %v2577_v0  ;;  %v1820_v57 = vld [vmem:[#allocation4 + $0x42] sm:$0xff]  ;;  %1781 = vst.msk [vmem:[#allocation4 + $0x101] sm:$0xff] %vm1767_vm0, %v1763_v12 }
 0x33d   : > { %2073 = vrot.lane.b32.xlu0 %v4374_v31, %s3401_s19  ;;  %3316 = vmatpush3.msra.mxu1 %v2577_v0  ;;  %v1805_v14 = vld [vmem:[#allocation4 + $0x51] sm:$0xff]  ;;  %v4474_v41 = vld [vmem:[#allocation4 + $0x60] sm:$0xff]  ;;  %1782 = vst.msk [vmem:[#allocation4 + $0x111] sm:$0xff] %vm1767_vm0, %v1764_v25  ;;  %1783 = vst.msk [vmem:[#allocation4 + $0x121] sm:$0xff] %vm1767_vm0, %v1765_v39 }
 0x33e   : > { %3264 = vmatprep.subr.mxu0 %v2576_v58  ;;  %3308 = vmatprep.subr.mxu1 %v2576_v58  ;;  %v4464_v18 = vld [vmem:[#allocation4 + $0x50] sm:$0xff]  ;;  %v1853_v2 = vld [vmem:[#allocation4 + $0x61] sm:$0xff] }
 0x33f   : > { %3265 = vmatpush3.msra.mxu0 %v2576_v58  ;;  %3317 = vmatpush3.msra.mxu1 %v2576_v58  ;;  %v1821_v20 = vld [vmem:[#allocation4 + $0x52] sm:$0xff]  ;;  %v1822_v61 = vld [vmem:[#allocation4 + $0x62] sm:$0xff] }
 0x340   : > { %1949 = vrot.lane.b32.xlu1 %v1802_v42, %s3400_s15  ;;  %v1807_v5 = vld [vmem:[#allocation4 + $0x71] sm:$0xff]  ;;  %v1839_v46 = vld [vmem:[#allocation4 + $0x80] sm:$0xff] }
 0x341   : > { %2137 = vrot.lane.b32.xlu0 %v1801_v62, %s3402_s20  ;;  %v4496_v19 = vld [vmem:[#allocation4 + $0x70] sm:$0xff]  ;;  %v1855_v3 = vld [vmem:[#allocation4 + $0x81] sm:$0xff] }
 0x342   : > { %v1823_v33 = vld [vmem:[#allocation4 + $0x72] sm:$0xff]  ;;  %v1808_v4 = vld [vmem:[#allocation4 + $0xa1] sm:$0xff] }
 0x343   : > { %v1824_v62 = vld [vmem:[#allocation4 + $0xa2] sm:$0xff]  ;;  %v4520_v48 = vld [vmem:[#allocation4 + $0xb0] sm:$0xff] }
 0x344   : > { %2201 = vrot.lane.b32.xlu1 %v1817_v35, %s3403_s22  ;;  %v1871_v37 = vld [vmem:[#allocation4 + $0x82] sm:$0xff]  ;;  %v1920_v47 = vld [vmem:[#allocation4 + $0x92] sm:$0xff] }
 0x345   : > { %2139 = vrot.lane.b32.xlu0 %v1802_v42, %s3402_s20  ;;  %v4531_v55 = vld [vmem:[#allocation4 + $0xc0] sm:$0xff]  ;;  %v1811_v52 = vld [vmem:[#allocation4 + $0xd1] sm:$0xff] }
 0x346   : > { %v1857_v59 = vld [vmem:[#allocation4 + $0xc1] sm:$0xff]  ;;  %v4563_v12 = vld [vmem:[#allocation4 + $0xd0] sm:$0xff] }
 0x347   : > { %v1826_v38 = vld [vmem:[#allocation4 + $0xc2] sm:$0xff]  ;;  %v1827_v21 = vld [vmem:[#allocation4 + $0xd2] sm:$0xff] }
 0x348   : > { %2013 = vrot.lane.b32.xlu1 %v4389_v49, %s3399_s14  ;;  %v4585_v34 = vld [vmem:[#allocation4 + $0xe0] sm:$0xff] }
 0x349   : > { %1951 = vrot.lane.b32.xlu0 %v4391_v53, %s3400_s15 }
 0x34c   : > { %2265 = vrot.lane.b32.xlu1 %v4372_v17, %s3404_s12 }
 0x34d   : > { %2203 = vrot.lane.b32.xlu0 %v4389_v49, %s3403_s22 }
 0x350   : > { %2077 = vrot.lane.b32.xlu1 %v4414_v40, %s3401_s19 }
 0x351   : > { %2015 = vrot.lane.b32.xlu0 %v1819_v51, %s3399_s14 }
 0x354   : > { %2329 = vrot.lane.b32.xlu1 %v1802_v42, %s3405_s28  ;;  %v1809_v42 = vld [vmem:[#allocation4 + $0xb1] sm:$0xff] }
 0x355   : > { %2267 = vrot.lane.b32.xlu0 %v4414_v40, %s3404_s12 }
 0x358   : > { %2141 = vrot.lane.b32.xlu1 %v4391_v53, %s3402_s20 }
 0x359   : > { %2079 = vrot.lane.b32.xlu0 %v4433_v24, %s3401_s19 }
 0x35c   : > { %2393 = vrot.lane.b32.xlu1 %v4389_v49, %s3406_s10  ;;  %v1825_v49 = vld [vmem:[#allocation4 + $0xb2] sm:$0xff] }
 0x35d   : > { %2331 = vrot.lane.b32.xlu0 %v4391_v53, %s3405_s28 }
 0x360   : > { %2143 = vrot.lane.b32.xlu1 %v1851_v11, %s3402_s20 }
 0x361   : > { %1953 = vrot.lane.b32.xlu0 %v1851_v11, %s3400_s15 }
 0x364   : > { %2395 = vrot.lane.b32.xlu1 %v1819_v51, %s3406_s10 }
 0x365   : > { %2205 = vrot.lane.b32.xlu0 %v1819_v51, %s3403_s22 }
 0x368   : > { %2017 = vrot.lane.b32.xlu1 %v1820_v57, %s3399_s14 }
 0x369   : > { %1955 = vrot.lane.b32.xlu0 %v1805_v14, %s3400_s15 }
 0x36c   : > { %2269 = vrot.lane.b32.xlu1 %v4433_v24, %s3404_s12 }
 0x36d   : > { %2207 = vrot.lane.b32.xlu0 %v1820_v57, %s3403_s22 }
 0x370   : > { %2081 = vrot.lane.b32.xlu1 %v4464_v18, %s3401_s19 }
 0x371   : > { %2019 = vrot.lane.b32.xlu0 %v1821_v20, %s3399_s14 }
 0x374   : > { %2333 = vrot.lane.b32.xlu1 %v1851_v11, %s3405_s28 }
 0x375   : > { %2271 = vrot.lane.b32.xlu0 %v4464_v18, %s3404_s12 }
 0x378   : > { %2145 = vrot.lane.b32.xlu1 %v1805_v14, %s3402_s20 }
 0x379   : > { %2083 = vrot.lane.b32.xlu0 %v4474_v41, %s3401_s19 }
 0x37c   : > { %2397 = vrot.lane.b32.xlu1 %v1820_v57, %s3406_s10 }
 0x37d   : > { %2335 = vrot.lane.b32.xlu0 %v1805_v14, %s3405_s28 }
 0x380   : > { %2147 = vrot.lane.b32.xlu1 %v1853_v2, %s3402_s20 }
 0x381   : > { %1957 = vrot.lane.b32.xlu0 %v1853_v2, %s3400_s15 }
 0x382   : > { %v2010_v10 = vpop.permute.xlu1 %2009 }
 0x383   : > { %v1946_v35 = vpop.permute.xlu0 %1945 }
 0x384   : > { %2399 = vrot.lane.b32.xlu1 %v1821_v20, %s3406_s10  ;;  %v2441_v11 = vsel %vm1767_vm0, %v1784_v9, %v1946_v35 }
 0x385   : > { %2209 = vrot.lane.b32.xlu0 %v1821_v20, %s3403_s22  ;;  %v2458_v57 = vsel %vm2457_vm1, %v2441_v11, %v2010_v10 }
 0x388   : > { %2021 = vrot.lane.b32.xlu1 %v1822_v61, %s3399_s14 }
 0x389   : > { %1959 = vrot.lane.b32.xlu0 %v1807_v5, %s3400_s15 }
 0x38c   : > { %2273 = vrot.lane.b32.xlu1 %v4474_v41, %s3404_s12 }
 0x38d   : > { %2211 = vrot.lane.b32.xlu0 %v1822_v61, %s3403_s22 }
 0x390   : > { %2085 = vrot.lane.b32.xlu1 %v4496_v19, %s3401_s19 }
 0x391   : > { %2023 = vrot.lane.b32.xlu0 %v1823_v33, %s3399_s14 }
 0x394   : > { %2337 = vrot.lane.b32.xlu1 %v1853_v2, %s3405_s28 }
 0x395   : > { %2275 = vrot.lane.b32.xlu0 %v4496_v19, %s3404_s12 }
 0x398   : > { %2149 = vrot.lane.b32.xlu1 %v1807_v5, %s3402_s20 }
 0x399   : > { %2087 = vrot.lane.b32.xlu0 %v1839_v46, %s3401_s19 }
 0x39c   : > { %2401 = vrot.lane.b32.xlu1 %v1822_v61, %s3406_s10 }
 0x39d   : > { %2339 = vrot.lane.b32.xlu0 %v1807_v5, %s3405_s28 }
 0x3a0   : > { %2151 = vrot.lane.b32.xlu1 %v1855_v3, %s3402_s20 }
 0x3a1   : > { %1961 = vrot.lane.b32.xlu0 %v1808_v4, %s3400_s15 }
 0x3a4   : > { %2403 = vrot.lane.b32.xlu1 %v1823_v33, %s3406_s10 }
 0x3a5   : > { %2213 = vrot.lane.b32.xlu0 %v1823_v33, %s3403_s22 }
 0x3a8   : > { %2025 = vrot.lane.b32.xlu1 %v1824_v62, %s3399_s14  ;;  %v1859_v62 = vld [vmem:[#allocation4 + $0xe1] sm:$0xff] }
 0x3a9   : > { %1963 = vrot.lane.b32.xlu0 %v1809_v42, %s3400_s15 }
 0x3aa   : > { %v4516_v43 = vpop.permute.xlu1 %2011 }
 0x3ab   : > { %v1948_v45 = vpop.permute.xlu0 %1947 }
 0x3ac   : > { %2277 = vrot.lane.b32.xlu1 %v1839_v46, %s3404_s12  ;;  %v2442_v23 = vsel %vm1767_vm0, %v4374_v31, %v1948_v45 }
 0x3ad   : > { %2215 = vrot.lane.b32.xlu0 %v1871_v37, %s3403_s22  ;;  %v2459_v61 = vsel %vm2457_vm1, %v2442_v23, %v4516_v43  ;;  %v1861_v23 = vld [vmem:[#allocation4 + $0x101] sm:$0xff] }
 0x3ae   : > { %v4522_v53 = vpop.permute.xlu1 %2075 }
 0x3af   : > { %v2074_v44 = vpop.permute.xlu0 %2073  ;;  %v2476_v31 = vsel %vm2474_vm2, %v2459_v61, %v4522_v53  ;;  %v1813_v53 = vld [vmem:[#allocation4 + $0xf1] sm:$0xff]  ;;  %v1830_v61 = vld [vmem:[#allocation4 + $0x102] sm:$0xff] }
 0x3b0   : > { %2089 = vrot.lane.b32.xlu1 %v4520_v48, %s3401_s19  ;;  %v2475_v14 = vsel %vm2474_vm2, %v2458_v57, %v2074_v44 }
 0x3b1   : > { %2027 = vrot.lane.b32.xlu0 %v1825_v49, %s3399_s14 }
 0x3b2   : > { %v4527_v15 = vpop.permute.xlu1 %1949 }
 0x3b3   : > { %v2138_v22 = vpop.permute.xlu0 %2137 }
 0x3b4   : > { %2341 = vrot.lane.b32.xlu1 %v1855_v3, %s3405_s28  ;;  %v2492_v1 = vsel %vm2491_vm3, %v2475_v14, %v2138_v22  ;;  %v2443_v22 = vsel %vm1767_vm0, %v4372_v17, %v4527_v15  ;;  %v4624_v15 = vld [vmem:[#allocation4 + $0xf0] sm:$0xff] }
 0x3b5   : > { %2279 = vrot.lane.b32.xlu0 %v1888_v63, %s3404_s12 }
 0x3b6   : > { %v2202_v54 = vpop.permute.xlu1 %2201 }
 0x3b7   : > { %v2140_v29 = vpop.permute.xlu0 %2139  ;;  %v2509_v20 = vsel %vm2508_vm4, %v2492_v1, %v2202_v54 }
 0x3b8   : > { %2153 = vrot.lane.b32.xlu1 %v1809_v42, %s3402_s20  ;;  %v2493_v28 = vsel %vm2491_vm3, %v2476_v31, %v2140_v29  ;;  %v1815_v31 = vld [vmem:[#allocation4 + $0x111] sm:$0xff] }
 0x3b9   : > { %2091 = vrot.lane.b32.xlu0 %v4531_v55, %s3401_s19 }
 0x3ba   : > { %v4536_v51 = vpop.permute.xlu1 %2013 }
 0x3bb   : > { %v4538_v56 = vpop.permute.xlu0 %1951  ;;  %v2460_v54 = vsel %vm2457_vm1, %v2443_v22, %v4536_v51  ;;  %v1829_v51 = vld [vmem:[#allocation4 + $0xf2] sm:$0xff] }
 0x3bc   : > { %2405 = vrot.lane.b32.xlu1 %v1871_v37, %s3406_s10 }
 0x3bd   : > { %2343 = vrot.lane.b32.xlu0 %v1904_v32, %s3405_s28 }
 0x3be   : > { %v2266_v60 = vpop.permute.xlu1 %2265 }
 0x3bf   : > { %v2204_v26 = vpop.permute.xlu0 %2203  ;;  %v2526_v36 = vsel %vm2525_vm5, %v2509_v20, %v2266_v60 }
 0x3c0   : > { %2155 = vrot.lane.b32.xlu1 %v1857_v59, %s3402_s20  ;;  %v2510_v30 = vsel %vm2508_vm4, %v2493_v28, %v2204_v26 }
 0x3c1   : > { %1965 = vrot.lane.b32.xlu0 %v1857_v59, %s3400_s15 }
 0x3c2   : > { %v4544_v0 = vpop.permute.xlu1 %2077 }
 0x3c3   : > { %v4546_v58 = vpop.permute.xlu0 %2015  ;;  %v2477_v29 = vsel %vm2474_vm2, %v2460_v54, %v4544_v0 }
 0x3c4   : > { %2407 = vrot.lane.b32.xlu1 %v1920_v47, %s3406_s10 }
 0x3c5   : > { %2217 = vrot.lane.b32.xlu0 %v1825_v49, %s3403_s22  ;;  %v1828_v49 = vld [vmem:[#allocation4 + $0xe2] sm:$0xff] }
 0x3c6   : > { %v2330_v13 = vpop.permute.xlu1 %2329 }
 0x3c7   : > { %v2268_v7 = vpop.permute.xlu0 %2267  ;;  %v2543_v27 = vsel %vm2542_vm6, %v2526_v36, %v2330_v13 }
 0x3c8   : > { %2029 = vrot.lane.b32.xlu1 %v1826_v38, %s3399_s14  ;;  %v2527_v33 = vsel %vm2525_vm5, %v2510_v30, %v2268_v7 }
 0x3c9   : > { %1967 = vrot.lane.b32.xlu0 %v1811_v52, %s3400_s15 }
 0x3ca   : > { %v2142_v16 = vpop.permute.xlu1 %2141 }
 0x3cb   : > { %v4555_v50 = vpop.permute.xlu0 %2079  ;;  %v2494_v60 = vsel %vm2491_vm3, %v2477_v29, %v2142_v16 }
 0x3cc   : > { %2281 = vrot.lane.b32.xlu1 %v4531_v55, %s3404_s12 }
 0x3cd   : > { %2219 = vrot.lane.b32.xlu0 %v1826_v38, %s3403_s22 }
 0x3ce   : > { %v2394_v2 = vpop.permute.xlu1 %2393 }
 0x3cf   : > { %v2332_v8 = vpop.permute.xlu0 %2331  ;;  %v2560_v25 = vsel %vm2559_vm7, %v2543_v27, %v2394_v2 }
 0x3d0   : > { %2093 = vrot.lane.b32.xlu1 %v4563_v12, %s3401_s19  ;;  %3266 = vmatprep.mubr.msk.f32.mxu0 %vm2585_vm8, %v2560_v25  ;;  %v2544_v39 = vsel %vm2542_vm6, %v2527_v33, %v2332_v8 }
 0x3d1   : > { %2031 = vrot.lane.b32.xlu0 %v1827_v21, %s3399_s14 }
 0x3d2   : > { %v2144_v5 = vpop.permute.xlu1 %2143 }
 0x3d3   : > { %v4577_v6 = vpop.permute.xlu0 %1953 }
 0x3d4   : > { %2345 = vrot.lane.b32.xlu1 %v1857_v59, %s3405_s28  ;;  %v2445_v30 = vsel %vm1767_vm0, %v4433_v24, %v4577_v6  ;;  %v4686_v6 = vld [vmem:[#allocation4 + $0x110] sm:$0xff] }
 0x3d5   : > { %2283 = vrot.lane.b32.xlu0 %v4563_v12, %s3404_s12 }
 0x3d6   : > { %v2396_v46 = vpop.permute.xlu1 %2395 }
 0x3d7   : > { %v2206_v3 = vpop.permute.xlu0 %2205  ;;  %v2561_v4 = vsel %vm2559_vm7, %v2544_v39, %v2396_v46 }
 0x3d8   : > { %2157 = vrot.lane.b32.xlu1 %v1811_v52, %s3402_s20  ;;  %3267 = vmatmul.mubr.msk.f32.vlgmr.msra.gmra.mxu0 %vm2585_vm8, %v2561_v4  ;;  %v2511_v26 = vsel %vm2508_vm4, %v2494_v60, %v2206_v3 }
 0x3d9   : > { %2095 = vrot.lane.b32.xlu0 %v4585_v34, %s3401_s19 }
 0x3da   : > { %v4593_v10 = vpop.permute.xlu1 %2017 }
 0x3db   : > { %v4595_v35 = vpop.permute.xlu0 %1955  ;;  %v2462_v33 = vsel %vm2457_vm1, %v2445_v30, %v4593_v10  ;;  %v1831_v10 = vld [vmem:[#allocation4 + $0x112] sm:$0xff] }
 0x3dc   : > { %2409 = vrot.lane.b32.xlu1 %v1826_v38, %s3406_s10 }
 0x3dd   : > { %2347 = vrot.lane.b32.xlu0 %v1811_v52, %s3405_s28  ;;  %v2444_v52 = vsel %vm1767_vm0, %v4414_v40, %v4538_v56 }
 0x3de   : > { %v2270_v42 = vpop.permute.xlu1 %2269  ;;  %v2461_v11 = vsel %vm2457_vm1, %v2444_v52, %v4546_v58  ;;  %v4647_v58 = vld [vmem:[#allocation4 + $0x100] sm:$0xff] }
 0x3df   : > { %v2208_v37 = vpop.permute.xlu0 %2207  ;;  %v2528_v17 = vsel %vm2525_vm5, %v2511_v26, %v2270_v42  ;;  %v2478_v13 = vsel %vm2474_vm2, %v2461_v11, %v4555_v50 }
 0x3e0   : > { %2159 = vrot.lane.b32.xlu1 %v1859_v62, %s3402_s20  ;;  %v2495_v14 = vsel %vm2491_vm3, %v2478_v13, %v2144_v5  ;;  %v1896_v13 = vld [vmem:[#allocation4 + $0x130] sm:$0xff] }
 0x3e1   : > { %1969 = vrot.lane.b32.xlu0 %v1859_v62, %s3400_s15  ;;  %v2512_v40 = vsel %vm2508_vm4, %v2495_v14, %v2208_v37 }
 0x3e2   : > { %v4601_v43 = vpop.permute.xlu1 %2081 }
 0x3e3   : > { %v4603_v45 = vpop.permute.xlu0 %2019  ;;  %v2479_v39 = vsel %vm2474_vm2, %v2462_v33, %v4601_v43 }
 0x3e4   : > { %2411 = vrot.lane.b32.xlu1 %v1827_v21, %s3406_s10 }
 0x3e5   : > { %2221 = vrot.lane.b32.xlu0 %v1827_v21, %s3403_s22 }
 0x3e6   : > { %v2334_v44 = vpop.permute.xlu1 %2333 }
 0x3e7   : > { %v2272_v63 = vpop.permute.xlu0 %2271  ;;  %v2545_v47 = vsel %vm2542_vm6, %v2528_v17, %v2334_v44 }
 0x3e8   : > { %2033 = vrot.lane.b32.xlu1 %v1828_v49, %s3399_s14  ;;  %v2529_v56 = vsel %vm2525_vm5, %v2512_v40, %v2272_v63 }
 0x3e9   : > { %1971 = vrot.lane.b32.xlu0 %v1813_v53, %s3400_s15 }
 0x3ea   : > { %v2146_v32 = vpop.permute.xlu1 %2145 }
 0x3eb   : > { %v4616_v59 = vpop.permute.xlu0 %2083  ;;  %v2496_v4 = vsel %vm2491_vm3, %v2479_v39, %v2146_v32 }
 0x3ec   : > { %2285 = vrot.lane.b32.xlu1 %v4585_v34, %s3404_s12 }
 0x3ed   : > { %2223 = vrot.lane.b32.xlu0 %v1828_v49, %s3403_s22 }
 0x3ee   : > { %v2398_v0 = vpop.permute.xlu1 %2397 }
 0x3ef   : > { %v2336_v9 = vpop.permute.xlu0 %2335  ;;  %v2562_v38 = vsel %vm2559_vm7, %v2545_v47, %v2398_v0  ;;  %v1863_v47 = vld [vmem:[#allocation4 + $0x121] sm:$0xff] }
 0x3f0   : > { %2097 = vrot.lane.b32.xlu1 %v4624_v15, %s3401_s19  ;;  %3269 = vmatprep.mubr.msk.f32.mxu0 %vm2585_vm8, %v2562_v38  ;;  %v2546_v16 = vsel %vm2542_vm6, %v2529_v56, %v2336_v9  ;;  %v1879_v38 = vld [vmem:[#allocation4 + $0x122] sm:$0xff] }
 0x3f1   : > { %2035 = vrot.lane.b32.xlu0 %v1829_v51, %s3399_s14 }
 0x3f2   : > { %v2148_v7 = vpop.permute.xlu1 %2147 }
 0x3f3   : > { %v4639_v57 = vpop.permute.xlu0 %1957 }
 0x3f4   : > { %2349 = vrot.lane.b32.xlu1 %v1859_v62, %s3405_s28  ;;  %v2447_v40 = vsel %vm1767_vm0, %v4474_v41, %v4639_v57  ;;  %v1928_v57 = vld [vmem:[#allocation4 + $0x132] sm:$0xff] }
 0x3f5   : > { %2287 = vrot.lane.b32.xlu0 %v4624_v15, %s3404_s12 }
 0x3f6   : > { %v2400_v1 = vpop.permute.xlu1 %2399 }
 0x3f7   : > { %v2210_v50 = vpop.permute.xlu0 %2209  ;;  %v2563_v20 = vsel %vm2559_vm7, %v2546_v16, %v2400_v1  ;;  %v1912_v16 = vld [vmem:[#allocation4 + $0x131] sm:$0xff] }
 0x3f8   : > { %2161 = vrot.lane.b32.xlu1 %v1813_v53, %s3402_s20  ;;  %3270 = vmatmul.mubr.msk.f32.gmra.mxu0 %vm2585_vm8, %v2563_v20  ;;  %v2513_v62 = vsel %vm2508_vm4, %v2496_v4, %v2210_v50 }
 0x3f9   : > { %2099 = vrot.lane.b32.xlu0 %v4647_v58, %s3401_s19 }
 0x3fa   : > { %v4655_v36 = vpop.permute.xlu1 %2021 }
 0x3fb   : > { %v4657_v21 = vpop.permute.xlu0 %1959  ;;  %v2464_v56 = vsel %vm2457_vm1, %v2447_v40, %v4655_v36 }
 0x3fc   : > { %2413 = vrot.lane.b32.xlu1 %v1828_v49, %s3406_s10 }
 0x3fd   : > { %2351 = vrot.lane.b32.xlu0 %v1813_v53, %s3405_s28  ;;  %v2446_v53 = vsel %vm1767_vm0, %v4464_v18, %v4595_v35 }
 0x3fe   : > { %v2274_v27 = vpop.permute.xlu1 %2273  ;;  %v2463_v44 = vsel %vm2457_vm1, %v2446_v53, %v4603_v45  ;;  %v1847_v45 = vld [vmem:[#allocation4 + $0x120] sm:$0xff] }
 0x3ff   : > { %v2212_v2 = vpop.permute.xlu0 %2211  ;;  %v2530_v24 = vsel %vm2525_vm5, %v2513_v62, %v2274_v27  ;;  %v2480_v63 = vsel %vm2474_vm2, %v2463_v44, %v4616_v59 }
 0x400   : > { %2163 = vrot.lane.b32.xlu1 %v1861_v23, %s3402_s20  ;;  %v2497_v29 = vsel %vm2491_vm3, %v2480_v63, %v2148_v7 }
 0x401   : > { %1973 = vrot.lane.b32.xlu0 %v1861_v23, %s3400_s15  ;;  %v2514_v18 = vsel %vm2508_vm4, %v2497_v29, %v2212_v2 }
 0x402   : > { %v4663_v8 = vpop.permute.xlu1 %2085 }
 0x403   : > { %v4665_v25 = vpop.permute.xlu0 %2023  ;;  %v2481_v1 = vsel %vm2474_vm2, %v2464_v56, %v4663_v8  ;;  %v2448_v8 = vsel %vm1767_vm0, %v4496_v19, %v4657_v21 }
 0x404   : > { %2415 = vrot.lane.b32.xlu1 %v1829_v51, %s3406_s10 }
 0x405   : > { %2225 = vrot.lane.b32.xlu0 %v1829_v51, %s3403_s22 }
 0x406   : > { %v2338_v5 = vpop.permute.xlu1 %2337 }
 0x407   : > { %v2276_v28 = vpop.permute.xlu0 %2275  ;;  %v2547_v42 = vsel %vm2542_vm6, %v2530_v24, %v2338_v5  ;;  %v2465_v5 = vsel %vm2457_vm1, %v2448_v8, %v4665_v25 }
 0x408   : > { %2037 = vrot.lane.b32.xlu1 %v1830_v61, %s3399_s14  ;;  %v2531_v35 = vsel %vm2525_vm5, %v2514_v18, %v2276_v28 }
 0x409   : > { %1975 = vrot.lane.b32.xlu0 %v1815_v31, %s3400_s15 }
 0x40a   : > { %v2150_v46 = vpop.permute.xlu1 %2149 }
 0x40b   : > { %v4678_v3 = vpop.permute.xlu0 %2087 }
 0x40c   : > { %2289 = vrot.lane.b32.xlu1 %v4647_v58, %s3404_s12  ;;  %v2482_v28 = vsel %vm2474_vm2, %v2465_v5, %v4678_v3 }
 0x40d   : > { %2227 = vrot.lane.b32.xlu0 %v1830_v61, %s3403_s22 }
 0x40e   : > { %v2402_v37 = vpop.permute.xlu1 %2401 }
 0x40f   : > { %v2340_v43 = vpop.permute.xlu0 %2339  ;;  %v2564_v49 = vsel %vm2559_vm7, %v2547_v42, %v2402_v37 }
 0x410   : > { %2101 = vrot.lane.b32.xlu1 %v4686_v6, %s3401_s19  ;;  %3272 = vmatprep.mubr.msk.f32.mxu0 %vm2585_vm8, %v2564_v49  ;;  %v2548_v32 = vsel %vm2542_vm6, %v2531_v35, %v2340_v43  ;;  %v1792_v49 = vld [vmem:[#allocation4 + $0xa0] sm:$0xff] }
 0x411   : > { %2039 = vrot.lane.b32.xlu0 %v1831_v10, %s3399_s14 }
 0x412   : > { %v2152_v22 = vpop.permute.xlu1 %2151 }
 0x413   : > { %v4701_v54 = vpop.permute.xlu0 %1961  ;;  %v2499_v39 = vsel %vm2491_vm3, %v2482_v28, %v2152_v22 }
 0x414   : > { %2353 = vrot.lane.b32.xlu1 %v1861_v23, %s3405_s28  ;;  %v2498_v23 = vsel %vm2491_vm3, %v2481_v1, %v2150_v46  ;;  %v2449_v63 = vsel %vm1767_vm0, %v1792_v49, %v4701_v54 }
 0x415   : > { %2291 = vrot.lane.b32.xlu0 %v4686_v6, %s3404_s12 }
 0x416   : > { %v2404_v60 = vpop.permute.xlu1 %2403 }
 0x417   : > { %v2214_v26 = vpop.permute.xlu0 %2213  ;;  %v2565_v59 = vsel %vm2559_vm7, %v2548_v32, %v2404_v60 }
 0x418   : > { %2165 = vrot.lane.b32.xlu1 %v1815_v31, %s3402_s20  ;;  %3273 = vmatmul.mubr.msk.f32.gmra.mxu0 %vm2585_vm8, %v2565_v59  ;;  %v2515_v27 = vsel %vm2508_vm4, %v2498_v23, %v2214_v26 }
 0x419   : > { %2103 = vrot.lane.b32.xlu0 %v1847_v45, %s3401_s19 }
 0x41a   : > { %v2026_v17 = vpop.permute.xlu1 %2025 }
 0x41b   : > { %v4714_v51 = vpop.permute.xlu0 %1963  ;;  %v2466_v22 = vsel %vm2457_vm1, %v2449_v63, %v2026_v17 }
 0x41c   : > { %2417 = vrot.lane.b32.xlu1 %v1830_v61, %s3406_s10  ;;  %v2450_v54 = vsel %vm1767_vm0, %v4520_v48, %v4714_v51 }
 0x41d   : > { %2355 = vrot.lane.b32.xlu0 %v1815_v31, %s3405_s28 }
 0x41e   : > { %v2278_v0 = vpop.permute.xlu1 %2277 }
 0x41f   : > { %v2216_v9 = vpop.permute.xlu0 %2215  ;;  %v2532_v41 = vsel %vm2525_vm5, %v2515_v27, %v2278_v0 }
 0x420   : > { %2229 = vrot.lane.b32.xlu1 %v1831_v10, %s3403_s22  ;;  %v2516_v46 = vsel %vm2508_vm4, %v2499_v39, %v2216_v9 }
 0x421   : > { %2167 = vrot.lane.b32.xlu0 %v1863_v47, %s3402_s20 }
 0x422   : > { %v2090_v52 = vpop.permute.xlu1 %2089 }
 0x423   : > { %v4720_v11 = vpop.permute.xlu0 %2027  ;;  %v2483_v29 = vsel %vm2474_vm2, %v2466_v22, %v2090_v52 }
 0x424   : > { %2231 = vrot.lane.b32.xlu1 %v1879_v38, %s3403_s22  ;;  %v2467_v17 = vsel %vm2457_vm1, %v2450_v54, %v4720_v11 }
 0x425   : > { %2419 = vrot.lane.b32.xlu0 %v1831_v10, %s3406_s10 }
 0x426   : > { %v2342_v7 = vpop.permute.xlu1 %2341 }
 0x427   : > { %v2280_v14 = vpop.permute.xlu0 %2279  ;;  %v2549_v2 = vsel %vm2542_vm6, %v2532_v41, %v2342_v7 }
 0x428   : > { %2295 = vrot.lane.b32.xlu1 %v1896_v13, %s3404_s12  ;;  %v2533_v19 = vsel %vm2525_vm5, %v2516_v46, %v2280_v14 }
 0x429   : > { %2293 = vrot.lane.b32.xlu0 %v1847_v45, %s3404_s12 }
 0x42a   : > { %v2154_v50 = vpop.permute.xlu1 %2153 }
 0x42b   : > { %v2092_v20 = vpop.permute.xlu0 %2091  ;;  %v2500_v45 = vsel %vm2491_vm3, %v2483_v29, %v2154_v50 }
 0x42c   : > { %2359 = vrot.lane.b32.xlu1 %v1912_v16, %s3405_s28  ;;  %v2484_v9 = vsel %vm2474_vm2, %v2467_v17, %v2092_v20 }
 0x42d   : > { %2357 = vrot.lane.b32.xlu0 %v1863_v47, %s3405_s28 }
 0x42e   : > { %v2406_v36 = vpop.permute.xlu1 %2405 }
 0x42f   : > { %v2344_v61 = vpop.permute.xlu0 %2343  ;;  %v2566_v31 = vsel %vm2559_vm7, %v2549_v2, %v2406_v36 }
 0x430   : > { %2423 = vrot.lane.b32.xlu1 %v1928_v57, %s3406_s10  ;;  %3275 = vmatprep.mubr.msk.f32.mxu0 %vm2585_vm8, %v2566_v31  ;;  %v2550_v21 = vsel %vm2542_vm6, %v2533_v19, %v2344_v61 }
 0x431   : > { %2421 = vrot.lane.b32.xlu0 %v1879_v38, %s3406_s10 }
 0x432   : > { %v2156_v30 = vpop.permute.xlu1 %2155 }
 0x433   : > { %v1966_v33 = vpop.permute.xlu0 %1965  ;;  %v2501_v13 = vsel %vm2491_vm3, %v2484_v9, %v2156_v30 }
 0x434   : > { %v2451_v57 = vsel %vm1767_vm0, %v4531_v55, %v1966_v33 }
 0x436   : > { %v2408_v4 = vpop.permute.xlu1 %2407 }
 0x437   : > { %v2218_v62 = vpop.permute.xlu0 %2217  ;;  %v2567_v24 = vsel %vm2559_vm7, %v2550_v21, %v2408_v4 }
 0x438   : > { %3276 = vmatmul.mubr.msk.f32.gmra.mxu0 %vm2585_vm8, %v2567_v24  ;;  %v2517_v32 = vsel %vm2508_vm4, %v2500_v45, %v2218_v62 }
 0x43a   : > { %v2030_v25 = vpop.permute.xlu1 %2029 }
 0x43b   : > { %v1968_v10 = vpop.permute.xlu0 %1967  ;;  %v2468_v2 = vsel %vm2457_vm1, %v2451_v57, %v2030_v25 }
 0x43c   : > { %v2452_v55 = vsel %vm1767_vm0, %v4563_v12, %v1968_v10 }
 0x43e   : > { %v2282_v42 = vpop.permute.xlu1 %2281 }
 0x43f   : > { %v2220_v3 = vpop.permute.xlu0 %2219  ;;  %v2534_v60 = vsel %vm2525_vm5, %v2517_v32, %v2282_v42 }
 0x440   : > { %v2518_v7 = vsel %vm2508_vm4, %v2501_v13, %v2220_v3 }
 0x442   : > { %v2094_v37 = vpop.permute.xlu1 %2093 }
 0x443   : > { %v2032_v43 = vpop.permute.xlu0 %2031  ;;  %v2485_v36 = vsel %vm2474_vm2, %v2468_v2, %v2094_v37 }
 0x444   : > { %v2469_v33 = vsel %vm2457_vm1, %v2452_v55, %v2032_v43 }
 0x446   : > { %v2346_v53 = vpop.permute.xlu1 %2345 }
 0x447   : > { %v2284_v44 = vpop.permute.xlu0 %2283  ;;  %v2551_v26 = vsel %vm2542_vm6, %v2534_v60, %v2346_v53 }
 0x448   : > { %v2535_v14 = vsel %vm2525_vm5, %v2518_v7, %v2284_v44 }
 0x44a   : > { %v2158_v18 = vpop.permute.xlu1 %2157 }
 0x44b   : > { %v2096_v35 = vpop.permute.xlu0 %2095  ;;  %v2502_v8 = vsel %vm2491_vm3, %v2485_v36, %v2158_v18 }
 0x44c   : > { %v2486_v21 = vsel %vm2474_vm2, %v2469_v33, %v2096_v35 }
 0x44e   : > { %v2410_v59 = vpop.permute.xlu1 %2409 }
 0x44f   : > { %v2348_v47 = vpop.permute.xlu0 %2347  ;;  %v2568_v0 = vsel %vm2559_vm7, %v2551_v26, %v2410_v59 }
 0x450   : > { %3278 = vmatprep.mubr.msk.f32.mxu1 %vm2585_vm8, %v2568_v0  ;;  %v2552_v40 = vsel %vm2542_vm6, %v2535_v14, %v2348_v47 }
 0x452   : > { %v2160_v38 = vpop.permute.xlu1 %2159 }
 0x453   : > { %v1970_v52 = vpop.permute.xlu0 %1969  ;;  %v2503_v24 = vsel %vm2491_vm3, %v2486_v21, %v2160_v38 }
 0x454   : > { %v2453_v35 = vsel %vm1767_vm0, %v4585_v34, %v1970_v52 }
 0x456   : > { %v2412_v56 = vpop.permute.xlu1 %2411 }
 0x457   : > { %v2222_v16 = vpop.permute.xlu0 %2221  ;;  %v2569_v48 = vsel %vm2559_vm7, %v2552_v40, %v2412_v56 }
 0x458   : > { %3279 = vmatmul.mubr.msk.f32.vlgmr.msra.gmra.mxu1 %vm2585_vm8, %v2569_v48  ;;  %v2519_v5 = vsel %vm2508_vm4, %v2502_v8, %v2222_v16 }
 0x45a   : > { %v2034_v51 = vpop.permute.xlu1 %2033 }
 0x45b   : > { %v1972_v11 = vpop.permute.xlu0 %1971  ;;  %v2470_v45 = vsel %vm2457_vm1, %v2453_v35, %v2034_v51 }
 0x45c   : > { %v2454_v34 = vsel %vm1767_vm0, %v4624_v15, %v1972_v11 }
 0x45e   : > { %v2286_v1 = vpop.permute.xlu1 %2285 }
 0x45f   : > { %v2224_v50 = vpop.permute.xlu0 %2223  ;;  %v2536_v28 = vsel %vm2525_vm5, %v2519_v5, %v2286_v1 }
 0x460   : > { %v2520_v25 = vsel %vm2508_vm4, %v2503_v24, %v2224_v50 }
 0x462   : > { %v2098_v20 = vpop.permute.xlu1 %2097 }
 0x463   : > { %v2036_v23 = vpop.permute.xlu0 %2035  ;;  %v2487_v32 = vsel %vm2474_vm2, %v2470_v45, %v2098_v20 }
 0x464   : > { %v2471_v52 = vsel %vm2457_vm1, %v2454_v34, %v2036_v23 }
 0x466   : > { %v2350_v27 = vpop.permute.xlu1 %2349 }
 0x467   : > { %v2288_v41 = vpop.permute.xlu0 %2287  ;;  %v2553_v30 = vsel %vm2542_vm6, %v2536_v28, %v2350_v27 }
 0x468   : > { %v2537_v42 = vsel %vm2525_vm5, %v2520_v25, %v2288_v41 }
 0x46a   : > { %v2162_v61 = vpop.permute.xlu1 %2161 }
 0x46b   : > { %v2100_v31 = vpop.permute.xlu0 %2099  ;;  %v2504_v59 = vsel %vm2491_vm3, %v2487_v32, %v2162_v61 }
 0x46c   : > { %v2488_v13 = vsel %vm2474_vm2, %v2471_v52, %v2100_v31 }
 0x46e   : > { %v2414_v39 = vpop.permute.xlu1 %2413 }
 0x46f   : > { %v2352_v46 = vpop.permute.xlu0 %2351  ;;  %v2570_v19 = vsel %vm2559_vm7, %v2553_v30, %v2414_v39 }
 0x470   : > { %3281 = vmatprep.mubr.msk.f32.mxu1 %vm2585_vm8, %v2570_v19  ;;  %v2554_v3 = vsel %vm2542_vm6, %v2537_v42, %v2352_v46 }
 0x472   : > { %v2164_v4 = vpop.permute.xlu1 %2163 }
 0x473   : > { %v1974_v62 = vpop.permute.xlu0 %1973  ;;  %v2505_v40 = vsel %vm2491_vm3, %v2488_v13, %v2164_v4 }
 0x474   : > { %v2455_v27 = vsel %vm1767_vm0, %v4647_v58, %v1974_v62 }
 0x476   : > { %v2416_v37 = vpop.permute.xlu1 %2415 }
 0x477   : > { %v2226_v49 = vpop.permute.xlu0 %2225  ;;  %v2571_v12 = vsel %vm2559_vm7, %v2554_v3, %v2416_v37 }
 0x478   : > { %3282 = vmatmul.mubr.msk.f32.gmra.mxu1 %vm2585_vm8, %v2571_v12  ;;  %v2521_v47 = vsel %vm2508_vm4, %v2504_v59, %v2226_v49 }
 0x47a   : > { %v2038_v10 = vpop.permute.xlu1 %2037 }
 0x47b   : > { %v1976_v43 = vpop.permute.xlu0 %1975  ;;  %v2472_v31 = vsel %vm2457_vm1, %v2455_v27, %v2038_v10 }
 0x47c   : > { %v2456_v57 = vsel %vm1767_vm0, %v4686_v6, %v1976_v43 }
 0x47e   : > { %v2290_v53 = vpop.permute.xlu1 %2289 }
 0x47f   : > { %v2228_v44 = vpop.permute.xlu0 %2227  ;;  %v2538_v0 = vsel %vm2525_vm5, %v2521_v47, %v2290_v53 }
 0x480   : > { %v2522_v56 = vsel %vm2508_vm4, %v2505_v40, %v2228_v44 }
 0x482   : > { %v2102_v63 = vpop.permute.xlu1 %2101 }
 0x483   : > { %v2040_v22 = vpop.permute.xlu0 %2039  ;;  %v2489_v28 = vsel %vm2474_vm2, %v2472_v31, %v2102_v63 }
 0x484   : > { %v2473_v8 = vsel %vm2457_vm1, %v2456_v57, %v2040_v22 }
 0x486   : > { %v2354_v29 = vpop.permute.xlu1 %2353 }
 0x487   : > { %v2292_v18 = vpop.permute.xlu0 %2291  ;;  %v2555_v54 = vsel %vm2542_vm6, %v2538_v0, %v2354_v29 }
 0x488   : > { %v2539_v16 = vsel %vm2525_vm5, %v2522_v56, %v2292_v18 }
 0x48a   : > { %v2166_v60 = vpop.permute.xlu1 %2165 }
 0x48b   : > { %v2104_v26 = vpop.permute.xlu0 %2103  ;;  %v2506_v19 = vsel %vm2491_vm3, %v2489_v28, %v2166_v60 }
 0x48c   : > { %v2490_v58 = vsel %vm2474_vm2, %v2473_v8, %v2104_v26 }
 0x48e   : > { %v2418_v17 = vpop.permute.xlu1 %2417 }
 0x48f   : > { %v2356_v9 = vpop.permute.xlu0 %2355  ;;  %v2572_v38 = vsel %vm2559_vm7, %v2555_v54, %v2418_v17 }
 0x490   : > { %3284 = vmatprep.mubr.msk.f32.mxu1 %vm2585_vm8, %v2572_v38  ;;  %v2556_v48 = vsel %vm2542_vm6, %v2539_v16, %v2356_v9 }
 0x492   : > { %v2230_v7 = vpop.permute.xlu1 %2229 }
 0x493   : > { %v2168_v14 = vpop.permute.xlu0 %2167  ;;  %v2523_v21 = vsel %vm2508_vm4, %v2506_v19, %v2230_v7 }
 0x494   : > { %v2507_v55 = vsel %vm2491_vm3, %v2490_v58, %v2168_v14 }
 0x496   : > { %v2232_v51 = vpop.permute.xlu1 %2231 }
 0x497   : > { %v2420_v1 = vpop.permute.xlu0 %2419  ;;  %v2524_v4 = vsel %vm2508_vm4, %v2507_v55, %v2232_v51 }
 0x498   : > { %v2573_v15 = vsel %vm2559_vm7, %v2556_v48, %v2420_v1  ;;  %v3268_v11 = vpop.f32.mrf.mxu0 }
 0x499   : > { %3285 = vmatmul.mubr.msk.f32.gmra.mxu1 %vm2585_vm8, %v2573_v15  ;;  %2780 = vst.msk [vmem:[#allocation2 + $0x8] sm:$0xff] %vm1767_vm0, %v3268_v11  ;;  %v2838_v50 = vmul.f32 %v3268_v11, %v3268_v11  ;;  %v2797_v2 = vsel %vm1767_vm0, %v3268_v11, 0.0 }
 0x49a   : > { %v2296_v20 = vpop.permute.xlu1 %2295  ;;  %v2700_v41 = vpop.f32.mrf.mxu0 }
 0x49b   : > { %v2294_v23 = vpop.permute.xlu0 %2293  ;;  %2779 = vst.msk [vmem:[#allocation2] sm:$0xff] %vm1767_vm0, %v2700_v41  ;;  %v2796_v36 = vsel %vm1767_vm0, %v2700_v41, 0.0  ;;  %v2837_v61 = vmul.f32 %v2700_v41, %v2700_v41  ;;  %v2854_v30 = vsel %vm1767_vm0, %v2838_v50, 0.0  ;;  %v2541_v62 = vsel %vm2525_vm5, %v2524_v4, %v2296_v20 }
 0x49c   : > { %v2798_v5 = vadd.f32 %v2797_v2, %v2796_v36  ;;  %v2540_v24 = vsel %vm2525_vm5, %v2523_v21, %v2294_v23 }
 0x49d   : > { %v2853_v6 = vsel %vm1767_vm0, %v2837_v61, 0.0 }
 0x49e   : > { %v2360_v39 = vpop.permute.xlu1 %2359  ;;  %v2855_v33 = vadd.f32 %v2854_v30, %v2853_v6 }
 0x49f   : > { %v2358_v46 = vpop.permute.xlu0 %2357  ;;  %v2558_v25 = vsel %vm2542_vm6, %v2541_v62, %v2360_v39 }
 0x4a0   : > { %v2557_v42 = vsel %vm2542_vm6, %v2540_v24, %v2358_v46 }
 0x4a2   : > { %v2424_v3 = vpop.permute.xlu1 %2423 }
 0x4a3   : > { %v2422_v37 = vpop.permute.xlu0 %2421  ;;  %v2575_v49 = vsel %vm2559_vm7, %v2558_v25, %v2424_v3 }
 0x4a4   : > { %v2574_v12 = vsel %vm2559_vm7, %v2557_v42, %v2422_v37 }
 0x4a5   : > { %3287 = vmatprep.mubr.msk.f32.mxu1 %vm2585_vm8, %v2574_v12 }
 0x4a6   : > { %3288 = vmatmul.mubr.msk.f32.gmra.mxu1 %vm2585_vm8, %v2575_v49 }
 0x4b8   : > { %v3271_v10 = vpop.f32.mrf.mxu0 }
 0x4b9   : > { %2782 = vst.msk [vmem:[#allocation2 + $0x18] sm:$0xff] %vm1767_vm0, %v3271_v10  ;;  %v2840_v53 = vmul.f32 %v3271_v10, %v3271_v10  ;;  %v2801_v29 = vsel %vm1767_vm0, %v3271_v10, 0.0 }
 0x4ba   : > { %v2710_v43 = vpop.f32.mrf.mxu0 }
 0x4bb   : > { %2781 = vst.msk [vmem:[#allocation2 + $0x10] sm:$0xff] %vm1767_vm0, %v2710_v43  ;;  %v2799_v44 = vsel %vm1767_vm0, %v2710_v43, 0.0  ;;  %v2839_v63 = vmul.f32 %v2710_v43, %v2710_v43  ;;  %v2858_v32 = vsel %vm1767_vm0, %v2840_v53, 0.0 }
 0x4bc   : > { %v2800_v22 = vadd.f32 %v2799_v44, %v2798_v5 }
 0x4bd   : > { %v2856_v18 = vsel %vm1767_vm0, %v2839_v63, 0.0 }
 0x4be   : > { %v2857_v35 = vadd.f32 %v2856_v18, %v2855_v33  ;;  %v2802_v45 = vadd.f32 %v2801_v29, %v2800_v22 }
 0x4c0   : > { %v2859_v60 = vadd.f32 %v2858_v32, %v2857_v35 }
 0x4d8   : > { %v3274_v26 = vpop.f32.mrf.mxu0 }
 0x4d9   : > { %2784 = vst.msk [vmem:[#allocation2 + $0x28] sm:$0xff] %vm1767_vm0, %v3274_v26  ;;  %v2842_v47 = vmul.f32 %v3274_v26, %v3274_v26  ;;  %v2805_v9 = vsel %vm1767_vm0, %v3274_v26, 0.0 }
 0x4da   : > { %v2720_v59 = vpop.f32.mrf.mxu0 }
 0x4db   : > { %2783 = vst.msk [vmem:[#allocation2 + $0x20] sm:$0xff] %vm1767_vm0, %v2720_v59  ;;  %v2803_v0 = vsel %vm1767_vm0, %v2720_v59, 0.0  ;;  %v2841_v54 = vmul.f32 %v2720_v59, %v2720_v59  ;;  %v2862_v13 = vsel %vm1767_vm0, %v2842_v47, 0.0 }
 0x4dc   : > { %v2804_v17 = vadd.f32 %v2803_v0, %v2802_v45 }
 0x4dd   : > { %v2860_v38 = vsel %vm1767_vm0, %v2841_v54, 0.0 }
 0x4de   : > { %v2861_v34 = vadd.f32 %v2860_v38, %v2859_v60  ;;  %v2806_v52 = vadd.f32 %v2805_v9, %v2804_v17 }
 0x4e0   : > { %v2863_v7 = vadd.f32 %v2862_v13, %v2861_v34 }
 0x4f8   : > { %v3277_v14 = vpop.f32.mrf.mxu0 }
 0x4f9   : > { %2786 = vst.msk [vmem:[#allocation2 + $0x38] sm:$0xff] %vm1767_vm0, %v3277_v14  ;;  %v2844_v56 = vmul.f32 %v3277_v14, %v3277_v14  ;;  %v2809_v1 = vsel %vm1767_vm0, %v3277_v14, 0.0 }
 0x4fa   : > { %v2730_v40 = vpop.f32.mrf.mxu0 }
 0x4fb   : > { %2785 = vst.msk [vmem:[#allocation2 + $0x30] sm:$0xff] %vm1767_vm0, %v2730_v40  ;;  %v2807_v16 = vsel %vm1767_vm0, %v2730_v40, 0.0  ;;  %v2843_v48 = vmul.f32 %v2730_v40, %v2730_v40  ;;  %v2866_v20 = vsel %vm1767_vm0, %v2844_v56, 0.0 }
 0x4fc   : > { %v2808_v51 = vadd.f32 %v2807_v16, %v2806_v52 }
 0x4fd   : > { %v2864_v15 = vsel %vm1767_vm0, %v2843_v48, 0.0 }
 0x4fe   : > { %v2810_v11 = vadd.f32 %v2809_v1, %v2808_v51  ;;  %v2865_v50 = vadd.f32 %v2864_v15, %v2863_v7  ;;  %v2795_v51 = vld [vmem:[#allocation7] sm:$0x1] }
 0x500   : > { %v2867_v23 = vadd.f32 %v2866_v20, %v2865_v50 }
 0x518   : > { %v3280_v27 = vpop.f32.mrf.mxu1 }
 0x519   : > { %2788 = vst.msk [vmem:[#allocation2 + $0x48] sm:$0xff] %vm1767_vm0, %v3280_v27  ;;  %v2846_v57 = vmul.f32 %v3280_v27, %v3280_v27  ;;  %v2813_v31 = vsel %vm1767_vm0, %v3280_v27, 0.0 }
 0x51a   : > { %v2740_v41 = vpop.f32.mrf.mxu1 }
 0x51b   : > { %2787 = vst.msk [vmem:[#allocation2 + $0x40] sm:$0xff] %vm1767_vm0, %v2740_v41  ;;  %v2811_v2 = vsel %vm1767_vm0, %v2740_v41, 0.0  ;;  %v2845_v36 = vmul.f32 %v2740_v41, %v2740_v41  ;;  %v2870_v58 = vsel %vm1767_vm0, %v2846_v57, 0.0 }
 0x51c   : > { %v2812_v61 = vadd.f32 %v2811_v2, %v2810_v11  ;;  %v2836_v11 = vld [vmem:[#allocation8] sm:$0x1] }
 0x51d   : > { %v2868_v8 = vsel %vm1767_vm0, %v2845_v36, 0.0 }
 0x51e   : > { %v2869_v5 = vadd.f32 %v2868_v8, %v2867_v23  ;;  %v2814_v28 = vadd.f32 %v2813_v31, %v2812_v61 }
 0x520   : > { %v2871_v30 = vadd.f32 %v2870_v58, %v2869_v5 }
 0x538   : > { %v3283_v6 = vpop.f32.mrf.mxu1 }
 0x539   : > { %2790 = vst.msk [vmem:[#allocation2 + $0x58] sm:$0xff] %vm1767_vm0, %v3283_v6  ;;  %v2848_v62 = vmul.f32 %v3283_v6, %v3283_v6  ;;  %v2817_v42 = vsel %vm1767_vm0, %v3283_v6, 0.0 }
 0x53a   : > { %v2750_v39 = vpop.f32.mrf.mxu1 }
 0x53b   : > { %2789 = vst.msk [vmem:[#allocation2 + $0x50] sm:$0xff] %vm1767_vm0, %v2750_v39  ;;  %v2847_v46 = vmul.f32 %v2750_v39, %v2750_v39  ;;  %v2815_v55 = vsel %vm1767_vm0, %v2750_v39, 0.0  ;;  %v2874_v49 = vsel %vm1767_vm0, %v2848_v62, 0.0 }
 0x53c   : > { %v2816_v4 = vadd.f32 %v2815_v55, %v2814_v28 }
 0x53d   : > { %v2872_v21 = vsel %vm1767_vm0, %v2847_v46, 0.0 }
 0x53e   : > { %v2873_v25 = vadd.f32 %v2872_v21, %v2871_v30  ;;  %v2818_v37 = vadd.f32 %v2817_v42, %v2816_v4 }
 0x540   : > { %v2875_v43 = vadd.f32 %v2874_v49, %v2873_v25 }
 0x559   : > { %v3286_v19 = vpop.f32.mrf.mxu1 }
 0x55a   : > { %2792 = vst.msk [vmem:[#allocation2 + $0x68] sm:$0xff] %vm1767_vm0, %v3286_v19  ;;  %v2850_v53 = vmul.f32 %v3286_v19, %v3286_v19  ;;  %v2821_v22 = vsel %vm1767_vm0, %v3286_v19, 0.0 }
 0x55b   : > { %v2760_v33 = vpop.f32.mrf.mxu1 }
 0x55c   : > { %2791 = vst.msk [vmem:[#allocation2 + $0x60] sm:$0xff] %vm1767_vm0, %v2760_v33  ;;  %v2849_v24 = vmul.f32 %v2760_v33, %v2760_v33  ;;  %v2819_v3 = vsel %vm1767_vm0, %v2760_v33, 0.0  ;;  %v2878_v35 = vsel %vm1767_vm0, %v2850_v53, 0.0 }
 0x55d   : > { %v2820_v10 = vadd.f32 %v2819_v3, %v2818_v37 }
 0x55e   : > { %v2876_v12 = vsel %vm1767_vm0, %v2849_v24, 0.0 }
 0x55f   : > { %v2877_v44 = vadd.f32 %v2876_v12, %v2875_v43  ;;  %v2822_v18 = vadd.f32 %v2821_v22, %v2820_v10 }
 0x561   : > { %v2879_v59 = vadd.f32 %v2878_v35, %v2877_v44 }
 0x566   : > { %v3289_v63 = vpop.f32.mrf.mxu1 }
 0x567   : > { %2794 = vst.msk [vmem:[#allocation2 + $0x78] sm:$0xff] %vm1767_vm0, %v3289_v63  ;;  %v2852_v45 = vmul.f32 %v3289_v63, %v3289_v63  ;;  %v2825_v47 = vsel %vm1767_vm0, %v3289_v63, 0.0 }
 0x568   : > { %v2770_v29 = vpop.f32.mrf.mxu1 }
 0x569   : > { %2793 = vst.msk [vmem:[#allocation2 + $0x70] sm:$0xff] %vm1767_vm0, %v2770_v29  ;;  %v2823_v32 = vsel %vm1767_vm0, %v2770_v29, 0.0  ;;  %v2851_v60 = vmul.f32 %v2770_v29, %v2770_v29  ;;  %v2882_v9 = vsel %vm1767_vm0, %v2852_v45, 0.0 }
 0x56a   : > { %v2824_v26 = vadd.f32 %v2823_v32, %v2822_v18 }
 0x56b   : > { %v2880_v0 = vsel %vm1767_vm0, %v2851_v60, 0.0 }
 0x56c   : > { %v2826_v54 = vadd.f32 %v2825_v47, %v2824_v26  ;;  %v2881_v17 = vadd.f32 %v2880_v0, %v2879_v59 }
 0x56e   : > { %v2827_v38 = vrot.slane %v2826_v54, 4  ;;  %v2883_v34 = vadd.f32 %v2882_v9, %v2881_v17 }
 0x570   : > { %v2828_v52 = vadd.f32 %v2827_v38, %v2826_v54  ;;  %v2884_v13 = vrot.slane %v2883_v34, 4 }
 0x572   : > { %v2829_v7 = vrot.slane %v2828_v52, 2  ;;  %v2885_v14 = vadd.f32 %v2884_v13, %v2883_v34 }
 0x574   : > { %v2830_v40 = vadd.f32 %v2829_v7, %v2828_v52  ;;  %v2886_v56 = vrot.slane %v2885_v14, 2 }
 0x576   : > { %v2831_v16 = vrot.slane %v2830_v40, 1  ;;  %v2887_v48 = vadd.f32 %v2886_v56, %v2885_v14 }
 0x578   : > { %v2832_v1 = vadd.f32 %v2831_v16, %v2830_v40  ;;  %v2888_v15 = vrot.slane %v2887_v48, 1 }
 0x57a   : > { %v2833_v50 = vadd.f32 %v2832_v1, %v2795_v51  ;;  %v2889_v20 = vadd.f32 %v2888_v15, %v2887_v48 }
 0x57c   : > { %2835 = vst.msk [vmem:[#allocation7] sm:$0x1] %vm2834_vm9, %v2833_v50  ;;  %v2890_v23 = vadd.f32 %v2889_v20, %v2836_v11 }
 0x57e   : > { %2891 = vst.msk [vmem:[#allocation8] sm:$0x1] %vm2834_vm9, %v2890_v23 }
 0x57f PF: > { %p3163_p7 = scmp.ne.s32.totalorder %s3379_s24, 2 }
 0x581   : > { %2895 = sbr.rel (%p3163_p7) target bundleno = 1573 (0x625), region = 64 }
 0x586   : > { %v2896_v27 = vld [vmem:[#allocation7] sm:$0x1]  ;;  %v2898_v41 = vld [vmem:[#allocation8] sm:$0x1]  ;;  %v2924_v31 = vlaneseq  ;;  %v2945_v6 = vld [vmem:[%s4967_s5] sm:$0x1] }
 0x587   : > { %v2897_v57 = vmul.f32 0.0078125, %v2896_v27  ;;  %v2899_v2 = vmul.f32 0.0078125, %v2898_v41  ;;  %v2915_v30 = vld [vmem:[#allocation2 + $0x40] sm:$0xff]  ;;  %v2916_v46 = vld [vmem:[#allocation2 + $0x48] sm:$0xff]  ;;  %v2917_v55 = vld [vmem:[#allocation2 + $0x50] sm:$0xff]  ;;  %vm3074_vm10 = vcmask 523264  }
 0x588   : > { %v2925_v5 = vshrl.u32 %v2924_v31, 7  ;;  %v2907_v39 = vld [vmem:[#allocation2] sm:$0xff]  ;;  %v2908_v19 = vld [vmem:[#allocation2 + $0x8] sm:$0xff]  ;;  %v2909_v33 = vld [vmem:[#allocation2 + $0x10] sm:$0xff] }
 0x589   : > { %v2900_v36 = vmul.f32 %v2897_v57, %v2897_v57  ;;  %v2918_v12 = vld [vmem:[#allocation2 + $0x58] sm:$0xff]  ;;  %v4903_v43 = vld [vmem:[%s4968_s6] ss:$0 sm:$0xff]  ;;  %v2920_v56 = vld [vmem:[#allocation2 + $0x68] sm:$0xff] }
 0x58a   : > { %v2926_v28 = vsub.s32 0, %v2925_v5  ;;  %v2910_v10 = vld [vmem:[#allocation2 + $0x18] sm:$0xff]  ;;  %v2919_v47 = vld [vmem:[#allocation2 + $0x60] sm:$0xff]  ;;  %v2912_v16 = vld [vmem:[#allocation2 + $0x28] sm:$0xff] }
 0x58b   : > { %v2901_v61 = vsub.f32 %v2899_v2, %v2900_v36  ;;  %v2911_v0 = vld [vmem:[#allocation2 + $0x20] sm:$0xff]  ;;  %v2921_v27 = vld [vmem:[#allocation2 + $0x70] sm:$0xff] }
 0x58c   : > { %v4887_v58 = vrot.slane %v2897_v57, %v2926_v28  ;;  %v2913_v41 = vld [vmem:[#allocation2 + $0x30] sm:$0xff] }
 0x58d   : > { %v2902_v8 = vadd.f32 1e-05, %v2901_v61 }
 0x58e   : > { %v2937_v4 = vsub.f32 %v2915_v30, %v4887_v58  ;;  %v2929_v24 = vsub.f32 %v2907_v39, %v4887_v58  ;;  %v2938_v25 = vsub.f32 %v2916_v46, %v4887_v58  ;;  %v2930_v42 = vsub.f32 %v2908_v19, %v4887_v58  ;;  %v2922_v30 = vld [vmem:[#allocation2 + $0x78] sm:$0xff] }
 0x58f   : > { %3363 = vrsqrt.f32 %v2902_v8  ;;  %v2939_v3 = vsub.f32 %v2917_v55, %v4887_v58  ;;  %v2931_v37 = vsub.f32 %v2909_v33, %v4887_v58  ;;  %v2940_v35 = vsub.f32 %v2918_v12, %v4887_v58 }
 0x590   : > { %v2932_v45 = vsub.f32 %v2910_v10, %v4887_v58  ;;  %v2941_v34 = vsub.f32 %v2919_v47, %v4887_v58  ;;  %v2933_v52 = vsub.f32 %v2911_v0, %v4887_v58  ;;  %v2942_v1 = vsub.f32 %v2920_v56, %v4887_v58 }
 0x591   : > { %v2934_v15 = vsub.f32 %v2912_v16, %v4887_v58  ;;  %v2943_v36 = vsub.f32 %v2921_v27, %v4887_v58  ;;  %v2935_v61 = vsub.f32 %v2913_v41, %v4887_v58  ;;  %v2944_v19 = vsub.f32 %v2922_v30, %v4887_v58 }
 0x59c   : > { %v3364_v21 = vpop.eup %3363 }
 0x59d   : > { %v2946_v62 = vmul.f32 %v3364_v21, %v2945_v6  ;;  %v2914_v6 = vld [vmem:[#allocation2 + $0x38] sm:$0xff] }
 0x59e   : > { %v2936_v55 = vsub.f32 %v2914_v6, %v4887_v58 }
 0x59f   : > { %v4898_v49 = vrot.slane %v2946_v62, %v2926_v28 }
 0x5a1   : > { %v2961_v53 = vmul.f32 %v4898_v49, %v2937_v4  ;;  %v2953_v44 = vmul.f32 %v4898_v49, %v2929_v24  ;;  %v2962_v63 = vmul.f32 %v4898_v49, %v2938_v25  ;;  %v2954_v22 = vmul.f32 %v4898_v49, %v2930_v42 }
 0x5a2   : > { %v2963_v29 = vmul.f32 %v4898_v49, %v2939_v3  ;;  %v2955_v18 = vmul.f32 %v4898_v49, %v2931_v37  ;;  %v2964_v9 = vmul.f32 %v4898_v49, %v2940_v35  ;;  %v2956_v38 = vmul.f32 %v4898_v49, %v2932_v45 }
 0x5a3   : > { %v2984_v32 = vadd.f32 %v4903_v43, %v2961_v53  ;;  %v2976_v60 = vadd.f32 %v4903_v43, %v2953_v44  ;;  %v2985_v26 = vadd.f32 %v4903_v43, %v2962_v63  ;;  %v2977_v59 = vadd.f32 %v4903_v43, %v2954_v22 }
 0x5a4   : > { %v2986_v14 = vadd.f32 %v4903_v43, %v2963_v29  ;;  %v2978_v40 = vadd.f32 %v4903_v43, %v2955_v18  ;;  %v2987_v48 = vadd.f32 %v4903_v43, %v2964_v9  ;;  %v2979_v51 = vadd.f32 %v4903_v43, %v2956_v38 }
 0x5a5   : > { %v3000_v54 = vmax.f32 %v2984_v32, 0.0  ;;  %v2992_v17 = vmax.f32 %v2976_v60, 0.0  ;;  %v3001_v13 = vmax.f32 %v2985_v26, 0.0  ;;  %v2993_v7 = vmax.f32 %v2977_v59, 0.0 }
 0x5a6   : > { %v3002_v11 = vmax.f32 %v2986_v14, 0.0  ;;  %v2994_v50 = vmax.f32 %v2978_v40, 0.0  ;;  %v2965_v20 = vmul.f32 %v4898_v49, %v2941_v34  ;;  %v2957_v23 = vmul.f32 %v4898_v49, %v2933_v52 }
 0x5a7   : > { %3040 = vxpose.xlu1.b32.start [1/8] (short) (narrow) %v3000_v54, 8  ;;  %3008 = vxpose.xlu0.b32.start [1/8] (short) (narrow) %v2992_v17, 8  ;;  %v3003_v57 = vmax.f32 %v2987_v48, 0.0  ;;  %v2966_v2 = vmul.f32 %v4898_v49, %v2942_v1  ;;  %v2995_v31 = vmax.f32 %v2979_v51, 0.0  ;;  %v2958_v28 = vmul.f32 %v4898_v49, %v2934_v15 }
 0x5a8   : > { %v2988_v8 = vadd.f32 %v4903_v43, %v2965_v20  ;;  %v2980_v5 = vadd.f32 %v4903_v43, %v2957_v23  ;;  %v2967_v39 = vmul.f32 %v4898_v49, %v2943_v36  ;;  %v2959_v46 = vmul.f32 %v4898_v49, %v2935_v61 }
 0x5a9   : > { %v2989_v4 = vadd.f32 %v4903_v43, %v2966_v2  ;;  %v2981_v62 = vadd.f32 %v4903_v43, %v2958_v28  ;;  %v2968_v24 = vmul.f32 %v4898_v49, %v2944_v19  ;;  %v2960_v25 = vmul.f32 %v4898_v49, %v2936_v55 }
 0x5aa   : > { %v3004_v33 = vmax.f32 %v2988_v8, 0.0  ;;  %v2996_v21 = vmax.f32 %v2980_v5, 0.0  ;;  %v2990_v37 = vadd.f32 %v4903_v43, %v2967_v39  ;;  %v2982_v58 = vadd.f32 %v4903_v43, %v2959_v46 }
 0x5ab   : > { %3041 = vxpose.xlu1.b32.cont [2/8] (short) (narrow) %v3001_v13, 8  ;;  %3009 = vxpose.xlu0.b32.cont [2/8] (short) (narrow) %v2993_v7, 8  ;;  %v3005_v42 = vmax.f32 %v2989_v4, 0.0  ;;  %v2997_v3 = vmax.f32 %v2981_v62, 0.0  ;;  %v2991_v53 = vadd.f32 %v4903_v43, %v2968_v24  ;;  %v2983_v44 = vadd.f32 %v4903_v43, %v2960_v25 }
 0x5ac   : > { %v3006_v12 = vmax.f32 %v2990_v37, 0.0  ;;  %v2998_v10 = vmax.f32 %v2982_v58, 0.0 }
 0x5ad   : > { %v3007_v63 = vmax.f32 %v2991_v53, 0.0  ;;  %v2999_v49 = vmax.f32 %v2983_v44, 0.0 }
 0x5af   : > { %3042 = vxpose.xlu1.b32.cont [3/8] (short) (narrow) %v3002_v11, 8  ;;  %3010 = vxpose.xlu0.b32.cont [3/8] (short) (narrow) %v2994_v50, 8 }
 0x5b3   : > { %3043 = vxpose.xlu1.b32.cont [4/8] (short) (narrow) %v3003_v57, 8  ;;  %3011 = vxpose.xlu0.b32.cont [4/8] (short) (narrow) %v2995_v31, 8 }
 0x5b7   : > { %3044 = vxpose.xlu1.b32.cont [5/8] (short) (narrow) %v3004_v33, 8  ;;  %3012 = vxpose.xlu0.b32.cont [5/8] (short) (narrow) %v2996_v21, 8 }
 0x5bb   : > { %3045 = vxpose.xlu1.b32.cont [6/8] (short) (narrow) %v3005_v42, 8  ;;  %3013 = vxpose.xlu0.b32.cont [6/8] (short) (narrow) %v2997_v3, 8 }
 0x5bf   : > { %3046 = vxpose.xlu1.b32.cont [7/8] (short) (narrow) %v3006_v12, 8  ;;  %3014 = vxpose.xlu0.b32.cont [7/8] (short) (narrow) %v2998_v10, 8 }
 0x5c3   : > { %3047 = vxpose.xlu1.b32.end [8/8] (short) (narrow) %v3007_v63, 8  ;;  %3015 = vxpose.xlu0.b32.end [8/8] (short) (narrow) %v2999_v49, 8 }
 0x623   : > { %v3056_v22 = vpop.trf.xlu1  ;;  %v3024_v29 = vpop.trf.xlu0 }
 0x624   : > { %3076 = vst.msk [vmem:[%s4969_s7 + $0x8] sm:$0xff] %vm3074_vm10, %v3056_v22  ;;  %3075 = vst.msk [vmem:[%s4969_s7] sm:$0xff] %vm3074_vm10, %v3024_v29 }
 0x625 PF: > { %s17_s26 = sadd.s32 1, %s3387_s26   ;;  %s4970_s24 = smov %s3383_s25 }
 0x626   : > { %p14_p8 = scmp.ge.s32.totalorder %s17_s26, 5   ;;  %s4971_s25 = smov %s4973_s27 }
 0x628   :  { %16 = sbr.rel (!%p14_p8) target bundleno = 2 (0x2), region = 98 }

</bundles_post_ra>
